<compile_context>
chip_gen: v5e
topology: v5e:2x2
jax: 0.10.0
libtpu: 0.0.40
codegen_flags: <defaults>
</compile_context>

<pallas_src>
import time
import functools

import jax
import jax.numpy as jnp
from jax import lax
from jax.experimental import pallas as pl
from jax.experimental.pallas import tpu as pltpu

# ----------------------------- config (cfg) --------------------------------
X_BOUND = (-8.0, 8.0, 1.0)      # -> 16 BEV cells
Y_BOUND = (-8.0, 8.0, 1.0)      # -> 16 BEV cells
Z_BOUND = (-10.0, 10.0, 20.0)   # -> 1  BEV cell
D_BOUND = (2.0, 10.0, 1.0)      # -> 8  depth slices
FINAL_DIM = (32, 64)            # IMAGE.FINAL_DIM (h, w)
DOWNSAMPLE = 8                  # MODEL.ENCODER.DOWNSAMPLE
ENC_C = 8                       # MODEL.ENCODER.OUT_CHANNELS
IN_CH = 3
ENC_HIDDEN = 16
DEC_HIDDEN = 16
RECEPTIVE_FIELD = 2             # TIME_RECEPTIVE_FIELD
N_FUTURE = 0                    # N_FUTURE_FRAMES -> identity temporal model + decoder
N_CLASSES = 2                   # len(SEMANTIC_SEG.WEIGHTS)
PREDICT_FLOW = True             # INSTANCE_FLOW.ENABLED
N_CAM = 2

BEV_RES = (X_BOUND[2], Y_BOUND[2], Z_BOUND[2])
BEV_START = (X_BOUND[0] + X_BOUND[2] / 2.0,
             Y_BOUND[0] + Y_BOUND[2] / 2.0,
             Z_BOUND[0] + Z_BOUND[2] / 2.0)
BEV_X = int(round((X_BOUND[1] - X_BOUND[0]) / X_BOUND[2]))
BEV_Y = int(round((Y_BOUND[1] - Y_BOUND[0]) / Y_BOUND[2]))
BEV_Z = int(round((Z_BOUND[1] - Z_BOUND[0]) / Z_BOUND[2]))
BEV_XY = BEV_X * BEV_Y          # 256 -> lane-dense
DEPTH = int(round((D_BOUND[1] - D_BOUND[0]) / D_BOUND[2]))
DH, DW = FINAL_DIM[0] // DOWNSAMPLE, FINAL_DIM[1] // DOWNSAMPLE
HW = DH * DW                    # 32
XY_TILE = 128                   # process BEV_XY in 128-lane tiles (vreg pressure)
DEC_ROWS = N_CLASSES + 1 + 2 + 2 + 1   # seg2 + center1 + offset2 + flow2 + pad1 = 8

# voxelization constants (Python floats -> folded at trace time)
OFFX = BEV_START[0] - BEV_RES[0] / 2.0
OFFY = BEV_START[1] - BEV_RES[1] / 2.0
OFFZ = BEV_START[2] - BEV_RES[2] / 2.0
IRESX, IRESY, IRESZ = 1.0 / BEV_RES[0], 1.0 / BEV_RES[1], 1.0 / BEV_RES[2]


def calculate_birds_eye_view_parameters(x_bounds, y_bounds, z_bounds):
    rows = [x_bounds, y_bounds, z_bounds]
    res = jnp.array([r[2] for r in rows], jnp.float32)
    start = jnp.array([r[0] + r[2] / 2.0 for r in rows], jnp.float32)
    dim = jnp.array([int(round((r[1] - r[0]) / r[2])) for r in rows], jnp.int32)
    return res, start, dim


def create_frustum():
    h, w = FINAL_DIM
    depth_grid = jnp.arange(D_BOUND[0], D_BOUND[1], D_BOUND[2], dtype=jnp.float32)
    depth_grid = jnp.broadcast_to(depth_grid[:, None, None], (DEPTH, DH, DW))
    x_grid = jnp.linspace(0.0, w - 1, DW, dtype=jnp.float32)
    x_grid = jnp.broadcast_to(x_grid[None, None, :], (DEPTH, DH, DW))
    y_grid = jnp.linspace(0.0, h - 1, DH, dtype=jnp.float32)
    y_grid = jnp.broadcast_to(y_grid[None, :, None], (DEPTH, DH, DW))
    return jnp.stack([x_grid, y_grid, depth_grid], axis=-1)  # (D, DH, DW, 3)


# ======= Pallas kernel: fused geometry + encoder/lift + splat + decoder =====
# One grid step == one (batch, time) frame; all cameras handled inside.
# TODO(synk): EfficientNet backbone replaced by a deterministic 2-layer 1x1-conv
# encoder; depth-softmax lift + scatter-sum splat match lift-splat semantics.
# TODO(synk): ResNet decoder replaced by deterministic 1x1-conv heads (segmentation,
# instance_center w/ sigmoid, instance_offset, instance_flow), same output layout.
def _powerbev_kernel(mat_sm, trans_sm, fr_ref, xck_ref, xkc_ref,
                     w1_ref, b1c_ref, w1t_ref, b1r_ref,
                     w2f_ref, b2fc_ref, w2dt_ref, b2dr_ref,
                     dw0_ref, db0_ref, hw_ref, hb_ref,
                     bev_ref, dec_ref, *, n_cam):
    f = pl.program_id(0)                       # frame index (b*s flattened)
    k_pts = n_cam * HW                         # 64 points per frame (over cams)

    # ---- encoder trunk, (channels, points) orientation -> features head ----
    x_ck = xck_ref[0]                                              # (IN_CH, K)
    h_ck = jnp.maximum(
        jnp.dot(w1_ref[...], x_ck, preferred_element_type=jnp.float32)
        + b1c_ref[...], 0.0)                                       # (H, K)
    feats = (jnp.dot(w2f_ref[...], h_ck, preferred_element_type=jnp.float32)
             + b2fc_ref[...])                                      # (C, K)

    # ---- encoder trunk, (points, channels) orientation -> depth head -------
    # Same trunk weights, pre-transposed by the wrapper; this avoids any
    # in-kernel transpose / TN matmul while giving depth the (K, D) layout the
    # lane-dense splat needs (points on sublanes).
    x_kc = xkc_ref[0]                                              # (K, IN_CH)
    h_kc = jnp.maximum(
        jnp.dot(x_kc, w1t_ref[...], preferred_element_type=jnp.float32)
        + b1r_ref[...], 0.0)                                       # (K, H)
    dl = (jnp.dot(h_kc, w2dt_ref[...], preferred_element_type=jnp.float32)
          + b2dr_ref[...])                                         # (K, D)
    dl = dl - jnp.max(dl, axis=1, keepdims=True)
    e = jnp.exp(dl)
    depth = e / jnp.sum(e, axis=1, keepdims=True)                  # exact softmax

    # ---- geometry: per-camera pinhole -> ego -> BEV bin ---------------------
    # frustum columns are [x*d, y*d, d], laid out (HW sublanes, D lanes).
    px = fr_ref[0]
    py = fr_ref[1]
    pz = fr_ref[2]                                                 # (HW, D) each
    flat_parts = []
    for cam in range(n_cam):                                       # n_cam == 2, static
        base9 = (f * n_cam + cam) * 9
        base3 = (f * n_cam + cam) * 3
        m00 = mat_sm[base9 + 0]; m01 = mat_sm[base9 + 1]; m02 = mat_sm[base9 + 2]
        m10 = mat_sm[base9 + 3]; m11 = mat_sm[base9 + 4]; m12 = mat_sm[base9 + 5]
        m20 = mat_sm[base9 + 6]; m21 = mat_sm[base9 + 7]; m22 = mat_sm[base9 + 8]
        t0 = trans_sm[base3 + 0]; t1 = trans_sm[base3 + 1]; t2 = trans_sm[base3 + 2]

        gx = m00 * px + m01 * py + m02 * pz + t0
        gy = m10 * px + m11 * py + m12 * pz + t1
        gz = m20 * px + m21 * py + m22 * pz + t2

        # trunc-toward-zero voxelization (matches torch .long())
        ix = ((gx - OFFX) * IRESX).astype(jnp.int32)
        iy = ((gy - OFFY) * IRESY).astype(jnp.int32)
        iz = ((gz - OFFZ) * IRESZ).astype(jnp.int32)
        valid = ((ix >= 0) & (ix < BEV_X) & (iy >= 0) & (iy < BEV_Y)
                 & (iz >= 0) & (iz < BEV_Z))
        flat_parts.append(jnp.where(valid, ix * BEV_Y + iy, -1))   # (HW, D)
    flat = jnp.concatenate(flat_parts, axis=0)                     # (K, D) int32

    # ---- weighted one-hot splat, BEV_XY lane-dense, MXU contraction --------
    # W[k, xy] = sum_d depth[k, d] * [flat[k, d] == xy]  (validity folded in).
    # bev[c, xy] = sum_k feats[c, k] * W[k, xy]   -> duplicates sum correctly.
    bev_tiles = []
    for x0 in range(0, BEV_XY, XY_TILE):                           # 2 lane tiles
        iota_t = x0 + lax.broadcasted_iota(jnp.int32, (k_pts, XY_TILE), 1)
        w_t = jnp.zeros((k_pts, XY_TILE), jnp.float32)
        for d in range(DEPTH):                                     # 8 static iters
            w_t = w_t + jnp.where(iota_t == flat[:, d:d + 1],
                                  depth[:, d:d + 1], 0.0)
        bev_tiles.append(jnp.dot(feats, w_t, preferred_element_type=jnp.float32))
    bev = jnp.concatenate(bev_tiles, axis=1)                       # (C, BEV_XY)
    bev_ref[0] = bev

    # ---- fused decoder heads (run per frame; wrapper keeps the present one) -
    hd = jnp.maximum(
        jnp.dot(dw0_ref[...], bev, preferred_element_type=jnp.float32)
        + db0_ref[...], 0.0)                                       # (DEC_HIDDEN, XY)
    heads = (jnp.dot(hw_ref[...], hd, preferred_element_type=jnp.float32)
             + hb_ref[...])                                        # (DEC_ROWS, XY)
    row = lax.broadcasted_iota(jnp.int32, heads.shape, 0)
    sig = 1.0 / (1.0 + jnp.exp(-heads))                            # exact sigmoid
    dec_ref[0] = jnp.where(row == N_CLASSES, sig, heads)           # sigmoid on center


def powerbev_frame_kernel_call(mat_flat, trans_flat, frustum_pts,
                               pooled_ck, pooled_kc, weights, bs, n_cam):
    (w1, b1c, w1t, b1r, w2f, b2fc, w2dt, b2dr, dw0, db0, hw_, hb_) = weights
    k_pts = n_cam * HW

    def wspec(a):
        return pl.BlockSpec(a.shape, lambda i: (0,) * a.ndim)

    kern = functools.partial(_powerbev_kernel, n_cam=n_cam)
    return pl.pallas_call(
        kern,
        out_shape=(jax.ShapeDtypeStruct((bs, ENC_C, BEV_XY), jnp.float32),
                   jax.ShapeDtypeStruct((bs, DEC_ROWS, BEV_XY), jnp.float32)),
        grid=(bs,),
        in_specs=[pl.BlockSpec(memory_space=pltpu.MemorySpace.SMEM),
                  pl.BlockSpec(memory_space=pltpu.MemorySpace.SMEM),
                  pl.BlockSpec((3, HW, DEPTH), lambda i: (0, 0, 0)),
                  pl.BlockSpec((1, IN_CH, k_pts), lambda i: (i, 0, 0)),
                  pl.BlockSpec((1, k_pts, IN_CH), lambda i: (i, 0, 0)),
                  wspec(w1), wspec(b1c), wspec(w1t), wspec(b1r),
                  wspec(w2f), wspec(b2fc), wspec(w2dt), wspec(b2dr),
                  wspec(dw0), wspec(db0), wspec(hw_), wspec(hb_)],
        out_specs=(pl.BlockSpec((1, ENC_C, BEV_XY), lambda i: (i, 0, 0)),
                   pl.BlockSpec((1, DEC_ROWS, BEV_XY), lambda i: (i, 0, 0))),
        compiler_params=pltpu.CompilerParams(dimension_semantics=("parallel",)),
    )(mat_flat, trans_flat, frustum_pts, pooled_ck, pooled_kc,
      w1, b1c, w1t, b1r, w2f, b2fc, w2dt, b2dr, dw0, db0, hw_, hb_)


# ==================== egomotion warp (plain-JAX glue) ========================
# TODO(synk): affine_grid + bilinear grid_sample is a data-dependent gather; kept in
# plain JAX rather than Pallas.
def euler2mat(angle):
    x, y, z = angle[..., 0], angle[..., 1], angle[..., 2]
    cz, sz = jnp.cos(z), jnp.sin(z)
    cy, sy = jnp.cos(y), jnp.sin(y)
    cx, sx = jnp.cos(x), jnp.sin(x)
    zeros, ones = jnp.zeros_like(z), jnp.ones_like(z)
    zmat = jnp.stack([cz, -sz, zeros, sz, cz, zeros, zeros, zeros, ones], -1).reshape(z.shape + (3, 3))
    ymat = jnp.stack([cy, zeros, sy, zeros, ones, zeros, -sy, zeros, cy], -1).reshape(y.shape + (3, 3))
    xmat = jnp.stack([ones, zeros, zeros, zeros, cx, -sx, zeros, sx, cx], -1).reshape(x.shape + (3, 3))
    return xmat @ ymat @ zmat


def pose_vec2mat(vec):
    translation = vec[..., :3][..., None]
    rot = euler2mat(vec[..., 3:6])
    mat = jnp.concatenate([rot, translation], axis=-1)
    bottom = jnp.broadcast_to(jnp.array([0.0, 0.0, 0.0, 1.0], jnp.float32),
                              mat.shape[:-2] + (1, 4))
    return jnp.concatenate([mat, bottom], axis=-2)


def mat2pose_vec(matrix):
    rotx = jnp.arctan2(matrix[..., 2, 1], matrix[..., 2, 2])
    roty = jnp.arctan2(-matrix[..., 2, 0],
                       jnp.sqrt(matrix[..., 2, 1] ** 2 + matrix[..., 2, 2] ** 2))
    rotz = jnp.arctan2(matrix[..., 1, 0], matrix[..., 0, 0])
    trans = matrix[..., :3, 3]
    return jnp.concatenate([trans, rotx[..., None], roty[..., None], rotz[..., None]], axis=-1)


def grid_sample_bilinear_zeros(x, grid):
    b, c, h, w = x.shape
    px = (grid[..., 0] + 1.0) * w * 0.5 - 0.5
    py = (grid[..., 1] + 1.0) * h * 0.5 - 0.5
    x0, y0 = jnp.floor(px), jnp.floor(py)

    def gather(ix, iy):
        valid = (ix >= 0) & (ix <= w - 1) & (iy >= 0) & (iy <= h - 1)
        ixc = jnp.clip(ix, 0, w - 1).astype(jnp.int32)
        iyc = jnp.clip(iy, 0, h - 1).astype(jnp.int32)
        flat = (iyc * w + ixc).reshape(b, 1, h * w)
        flat = jnp.broadcast_to(flat, (b, c, h * w))
        vals = jnp.take_along_axis(x.reshape(b, c, h * w), flat, axis=2).reshape(b, c, h, w)
        return vals * valid.astype(x.dtype)[:, None]

    wx1 = (px - x0)[:, None]
    wx0 = 1.0 - wx1
    wy1 = (py - y0)[:, None]
    wy0 = 1.0 - wy1
    return (gather(x0, y0) * wx0 * wy0 + gather(x0 + 1, y0) * wx1 * wy0
            + gather(x0, y0 + 1) * wx0 * wy1 + gather(x0 + 1, y0 + 1) * wx1 * wy1)


def warp_features_jax(x, flow_vec, spatial_extent):
    # TODO(synk): exact sign convention of powerbev.utils.geometry.warp_features approximated.
    b, c, h, w = x.shape
    angle = flow_vec[:, 5]
    tx = flow_vec[:, 0] / spatial_extent[0]
    ty = flow_vec[:, 1] / spatial_extent[1]
    cos_t, sin_t = jnp.cos(angle), jnp.sin(angle)
    theta = jnp.stack([cos_t, -sin_t, ty, sin_t, cos_t, -tx], axis=-1).reshape(b, 2, 3)
    xs = (jnp.arange(w, dtype=jnp.float32) * 2.0 + 1.0) / w - 1.0
    ys = (jnp.arange(h, dtype=jnp.float32) * 2.0 + 1.0) / h - 1.0
    gx, gy = jnp.meshgrid(xs, ys)
    base = jnp.stack([gx, gy, jnp.ones_like(gx)], -1)            # (h, w, 3)
    grid = jnp.einsum('bij,hwj->bhwi', theta, base)              # (b, h, w, 2)
    return grid_sample_bilinear_zeros(x, grid)


def cumulative_warp_features(x, flow, spatial_extent):
    s = x.shape[1]
    if s == 1:
        return x
    flow_mat = pose_vec2mat(flow)
    out = [x[:, -1]]                      # present frame is never warped
    cum_flow = flow_mat[:, -2]
    for t in reversed(range(s - 1)):
        out.append(warp_features_jax(x[:, t], mat2pose_vec(cum_flow), spatial_extent))
        if t > 0:
            cum_flow = flow_mat[:, t - 1] @ cum_flow
    return jnp.stack(out[::-1], axis=1)


# ================================ model =====================================
class PowerBEVPallas:
    def __init__(self, key):
        (self.bev_resolution, self.bev_start_position,
         self.bev_dimension) = calculate_birds_eye_view_parameters(X_BOUND, Y_BOUND, Z_BOUND)
        self.receptive_field = RECEPTIVE_FIELD
        self.n_future = N_FUTURE
        self.spatial_extent = (X_BOUND[1], Y_BOUND[1])
        self.frustum = create_frustum()                                   # (D, DH, DW, 3)
        # (HW sublanes, D lanes) layout of [x*d, y*d, d] for the kernel
        fr = self.frustum.reshape(DEPTH, HW, 3)
        self.frustum_pts = jnp.stack([(fr[..., 0] * fr[..., 2]).T,
                                      (fr[..., 1] * fr[..., 2]).T,
                                      fr[..., 2].T], axis=0)              # (3, HW, D)

        ks = jax.random.split(key, 8)

        def init(k, shape):
            return 0.1 * jax.random.normal(k, shape, jnp.float32)

        # deterministic stand-in encoder weights
        enc_w1 = init(ks[0], (ENC_HIDDEN, IN_CH))
        enc_b1 = jnp.zeros((ENC_HIDDEN,), jnp.float32)
        enc_w2 = init(ks[1], (DEPTH + ENC_C, ENC_HIDDEN))
        enc_b2 = jnp.zeros((DEPTH + ENC_C,), jnp.float32)
        # deterministic stand-in decoder weights
        dec_w0 = init(ks[2], (DEC_HIDDEN, ENC_C))
        dec_b0 = jnp.zeros((DEC_HIDDEN,), jnp.float32)
        seg_w = init(ks[3], (N_CLASSES, DEC_HIDDEN))
        cen_w = init(ks[4], (1, DEC_HIDDEN))
        off_w = init(ks[5], (2, DEC_HIDDEN))
        flow_w = init(ks[6], (2, DEC_HIDDEN))
        head_w = jnp.concatenate(
            [seg_w, cen_w, off_w, flow_w,
             jnp.zeros((1, DEC_HIDDEN), jnp.float32)], axis=0)            # (8, DEC_HIDDEN)
        head_b = jnp.zeros((DEC_ROWS,), jnp.float32)

        # kernel-ready (pre-transposed / pre-split) weight layouts
        self.kernel_weights = (
            enc_w1,                                   # (H, IN_CH)   trunk, CK path
            enc_b1.reshape(ENC_HIDDEN, 1),
            enc_w1.T,                                 # (IN_CH, H)   trunk, KC path
            enc_b1.reshape(1, ENC_HIDDEN),
            enc_w2[DEPTH:, :],                        # (C, H)       features head
            enc_b2[DEPTH:].reshape(ENC_C, 1),
            enc_w2[:DEPTH, :].T,                      # (H, D)       depth head (transposed)
            enc_b2[:DEPTH].reshape(1, DEPTH),
            dec_w0,                                   # (DEC_HIDDEN, C)
            dec_b0.reshape(DEC_HIDDEN, 1),
            head_w,                                   # (DEC_ROWS, DEC_HIDDEN)
            head_b.reshape(DEC_ROWS, 1))

    def calculate_birds_eye_view_features(self, x, intrinsics, extrinsics):
        b, s, n, c, h, w = x.shape
        bs, bsn = b * s, b * s * n

        # get_geometry glue: combined = R @ K^-1 (tiny), rest fused in the kernel
        intr = intrinsics.reshape(bsn, 3, 3)
        extr = extrinsics.reshape(bsn, 4, 4)
        rotation = extr[:, :3, :3]
        translation = extr[:, :3, 3]
        combined = jnp.matmul(rotation, jnp.linalg.inv(intr))
        mat_flat = combined.reshape(-1).astype(jnp.float32)               # (bsn*9,)
        trans_flat = translation.reshape(-1).astype(jnp.float32)          # (bsn*3,)

        # encoder_forward glue: avg-pool downsample, both orientations
        pooled = x.reshape(bsn, c, DH, DOWNSAMPLE, DW, DOWNSAMPLE).mean(axis=(3, 5))
        pooled = pooled.reshape(bs, n, c, HW)
        pooled_ck = pooled.transpose(0, 2, 1, 3).reshape(bs, c, n * HW)   # (bs, C, K)
        pooled_kc = pooled.transpose(0, 1, 3, 2).reshape(bs, n * HW, c)   # (bs, K, C)

        bev, dec = powerbev_frame_kernel_call(mat_flat, trans_flat, self.frustum_pts,
                                              pooled_ck, pooled_kc,
                                              self.kernel_weights, bs, n)
        bev = bev.reshape(b, s, ENC_C, BEV_X, BEV_Y)
        dec = dec.reshape(b, s, DEC_ROWS, BEV_X, BEV_Y)
        return bev, dec

    def decoder_outputs(self, dec_heads):
        # Decoder heads were fused into the BEV kernel; keep the present frame.
        d = dec_heads[:, -1]                                             # (b, 8, X, Y)
        out = {'segmentation': d[:, 0:N_CLASSES][:, None],
               'instance_center': d[:, N_CLASSES:N_CLASSES + 1][:, None],
               'instance_offset': d[:, N_CLASSES + 1:N_CLASSES + 3][:, None]}
        if PREDICT_FLOW:
            out['instance_flow'] = d[:, N_CLASSES + 3:N_CLASSES + 5][:, None]
        return out

    def __call__(self, image, intrinsics, extrinsics, future_egomotion):
        output = {}
        start_time = time.time()
        rf = self.receptive_field
        image = image[:, :rf]
        intrinsics = intrinsics[:, :rf]
        extrinsics = extrinsics[:, :rf]
        future_egomotion = future_egomotion[:, :rf]

        x, dec_heads = self.calculate_birds_eye_view_features(image, intrinsics, extrinsics)
        output['raw_bev_feat'] = x
        x = cumulative_warp_features(x, future_egomotion, spatial_extent=self.spatial_extent)
        # NOTE: like the reference, these timings wrap async dispatch, not device exec.
        perception_time = time.time()

        # n_future == 0: TemporalModelIdentity + decoder on the present frame.
        # cumulative_warp_features leaves the present frame untouched, so the
        # fused in-kernel decoder heads are exactly decoder(states[:, -1:]).
        bev_output = self.decoder_outputs(dec_heads)
        prediction_time = time.time()

        output['perception_time'] = perception_time - start_time
        output['prediction_time'] = prediction_time - perception_time
        output['total_time'] = output['perception_time'] + output['prediction_time']
        output = {**output, **bev_output}
        return output


# ================================= main =====================================
if __name__ == "__main__":
    key = jax.random.PRNGKey(0)
    k_param, k_img, k_ext, k_ego = jax.random.split(key, 4)
    model = PowerBEVPallas(k_param)

    B, S, NCAM = 1, RECEPTIVE_FIELD, N_CAM
    H, W = FINAL_DIM
    image = 0.1 * jax.random.normal(k_img, (B, S, NCAM, IN_CH, H, W), jnp.float32)
    intr = jnp.array([[30.0, 0.0, W / 2.0],
                      [0.0, 30.0, H / 2.0],
                      [0.0, 0.0, 1.0]], jnp.float32)
    intrinsics = jnp.broadcast_to(intr, (B, S, NCAM, 3, 3))
    extrinsics = jnp.broadcast_to(jnp.eye(4, dtype=jnp.float32), (B, S, NCAM, 4, 4))
    extrinsics = extrinsics.at[..., :3, 3].set(
        0.5 * jax.random.normal(k_ext, (B, S, NCAM, 3), jnp.float32))
    future_egomotion = 0.05 * jax.random.normal(k_ego, (B, S, 6), jnp.float32)

    out = model(image, intrinsics, extrinsics, future_egomotion)
    jax.block_until_ready((out['raw_bev_feat'], out['segmentation'],
                           out['instance_center'], out['instance_offset'],
                           out['instance_flow']))
    print("KERNEL_OK")
</pallas_src>

<mosaic_0001>
module attributes {stable_mosaic.version = 11 : i64} {
  func.func @_powerbev_kernel(%arg0: i32, %arg1: memref<36xf32, #tpu.memory_space<smem>>, %arg2: memref<12xf32, #tpu.memory_space<smem>>, %arg3: memref<3x32x8xf32, #tpu.memory_space<vmem>>, %arg4: memref<1x3x64xf32, #tpu.memory_space<vmem>>, %arg5: memref<1x64x3xf32, #tpu.memory_space<vmem>>, %arg6: memref<16x3xf32, #tpu.memory_space<vmem>>, %arg7: memref<16x1xf32, #tpu.memory_space<vmem>>, %arg8: memref<3x16xf32, #tpu.memory_space<vmem>>, %arg9: memref<1x16xf32, #tpu.memory_space<vmem>>, %arg10: memref<8x16xf32, #tpu.memory_space<vmem>>, %arg11: memref<8x1xf32, #tpu.memory_space<vmem>>, %arg12: memref<16x8xf32, #tpu.memory_space<vmem>>, %arg13: memref<1x8xf32, #tpu.memory_space<vmem>>, %arg14: memref<16x8xf32, #tpu.memory_space<vmem>>, %arg15: memref<16x1xf32, #tpu.memory_space<vmem>>, %arg16: memref<8x16xf32, #tpu.memory_space<vmem>>, %arg17: memref<8x1xf32, #tpu.memory_space<vmem>>, %arg18: memref<1x8x256xf32, #tpu.memory_space<vmem>>, %arg19: memref<1x8x256xf32, #tpu.memory_space<vmem>>) attributes {dimension_semantics = [#tpu.dimension_semantics<parallel>], iteration_bounds = array<i64: 2>, scalar_prefetch = 0 : i64, scratch_operands = 0 : i64, tpu.core_type = #tpu.core_type<tc>, window_params = [{transform_indices = @transform_0, window_bounds = array<i64: 36>}, {transform_indices = @transform_1, window_bounds = array<i64: 12>}, {pipeline_mode = #tpu.pipeline_mode<synchronous>, transform_indices = @transform_2, window_bounds = array<i64: 3, 32, 8>}, {transform_indices = @transform_3, window_bounds = array<i64: 1, 3, 64>}, {transform_indices = @transform_4, window_bounds = array<i64: 1, 64, 3>}, {pipeline_mode = #tpu.pipeline_mode<synchronous>, transform_indices = @transform_5, window_bounds = array<i64: 16, 3>}, {pipeline_mode = #tpu.pipeline_mode<synchronous>, transform_indices = @transform_6, window_bounds = array<i64: 16, 1>}, {pipeline_mode = #tpu.pipeline_mode<synchronous>, transform_indices = @transform_7, window_bounds = array<i64: 3, 16>}, {pipeline_mode = #tpu.pipeline_mode<synchronous>, transform_indices = @transform_8, window_bounds = array<i64: 1, 16>}, {pipeline_mode = #tpu.pipeline_mode<synchronous>, transform_indices = @transform_9, window_bounds = array<i64: 8, 16>}, {pipeline_mode = #tpu.pipeline_mode<synchronous>, transform_indices = @transform_10, window_bounds = array<i64: 8, 1>}, {pipeline_mode = #tpu.pipeline_mode<synchronous>, transform_indices = @transform_11, window_bounds = array<i64: 16, 8>}, {pipeline_mode = #tpu.pipeline_mode<synchronous>, transform_indices = @transform_12, window_bounds = array<i64: 1, 8>}, {pipeline_mode = #tpu.pipeline_mode<synchronous>, transform_indices = @transform_13, window_bounds = array<i64: 16, 8>}, {pipeline_mode = #tpu.pipeline_mode<synchronous>, transform_indices = @transform_14, window_bounds = array<i64: 16, 1>}, {pipeline_mode = #tpu.pipeline_mode<synchronous>, transform_indices = @transform_15, window_bounds = array<i64: 8, 16>}, {pipeline_mode = #tpu.pipeline_mode<synchronous>, transform_indices = @transform_16, window_bounds = array<i64: 8, 1>}, {transform_indices = @transform_17, window_bounds = array<i64: 1, 8, 256>}, {transform_indices = @transform_18, window_bounds = array<i64: 1, 8, 256>}]} {
    %c0 = arith.constant 0 : index
    %c0_0 = arith.constant 0 : index
    %c0_1 = arith.constant 0 : index
    %0 = vector.load %arg4[%c0, %c0_0, %c0_1] : memref<1x3x64xf32, #tpu.memory_space<vmem>>, vector<1x3x64xf32>
    %1 = vector.shape_cast %0 : vector<1x3x64xf32> to vector<3x64xf32>
    %c0_2 = arith.constant 0 : index
    %c0_3 = arith.constant 0 : index
    %2 = vector.load %arg6[%c0_2, %c0_3] : memref<16x3xf32, #tpu.memory_space<vmem>>, vector<16x3xf32>
    %cst = arith.constant dense<0.000000e+00> : vector<16x64xf32>
    %3 = tpu.matmul %2, %1, %cst {dimension_numbers = #tpu.dot_dimension_numbers<[1], [0], [0], [1], [0, 0, 1, 1], [], []>} : vector<16x3xf32>, vector<3x64xf32>, vector<16x64xf32> -> vector<16x64xf32>
    %c0_4 = arith.constant 0 : index
    %c0_5 = arith.constant 0 : index
    %4 = vector.load %arg7[%c0_4, %c0_5] : memref<16x1xf32, #tpu.memory_space<vmem>>, vector<16x1xf32>
    %5 = vector.broadcast %4 : vector<16x1xf32> to vector<16x64xf32>
    %6 = arith.addf %3, %5 : vector<16x64xf32>
    %cst_6 = arith.constant 0.000000e+00 : f32
    %7 = vector.broadcast %cst_6 : f32 to vector<16x64xf32>
    %8 = arith.maximumf %6, %7 : vector<16x64xf32>
    %c0_7 = arith.constant 0 : index
    %c0_8 = arith.constant 0 : index
    %9 = vector.load %arg10[%c0_7, %c0_8] : memref<8x16xf32, #tpu.memory_space<vmem>>, vector<8x16xf32>
    %cst_9 = arith.constant dense<0.000000e+00> : vector<8x64xf32>
    %10 = tpu.matmul %9, %8, %cst_9 {dimension_numbers = #tpu.dot_dimension_numbers<[1], [0], [0], [1], [0, 0, 1, 1], [], []>} : vector<8x16xf32>, vector<16x64xf32>, vector<8x64xf32> -> vector<8x64xf32>
    %c0_10 = arith.constant 0 : index
    %c0_11 = arith.constant 0 : index
    %11 = vector.load %arg11[%c0_10, %c0_11] : memref<8x1xf32, #tpu.memory_space<vmem>>, vector<8x1xf32>
    %12 = vector.broadcast %11 : vector<8x1xf32> to vector<8x64xf32>
    %13 = arith.addf %10, %12 : vector<8x64xf32>
    %c0_12 = arith.constant 0 : index
    %c0_13 = arith.constant 0 : index
    %c0_14 = arith.constant 0 : index
    %14 = vector.load %arg5[%c0_12, %c0_13, %c0_14] : memref<1x64x3xf32, #tpu.memory_space<vmem>>, vector<1x64x3xf32>
    %15 = vector.shape_cast %14 : vector<1x64x3xf32> to vector<64x3xf32>
    %c0_15 = arith.constant 0 : index
    %c0_16 = arith.constant 0 : index
    %16 = vector.load %arg8[%c0_15, %c0_16] : memref<3x16xf32, #tpu.memory_space<vmem>>, vector<3x16xf32>
    %cst_17 = arith.constant dense<0.000000e+00> : vector<64x16xf32>
    %17 = tpu.matmul %15, %16, %cst_17 {dimension_numbers = #tpu.dot_dimension_numbers<[1], [0], [0], [1], [0, 0, 1, 1], [], []>} : vector<64x3xf32>, vector<3x16xf32>, vector<64x16xf32> -> vector<64x16xf32>
    %c0_18 = arith.constant 0 : index
    %c0_19 = arith.constant 0 : index
    %18 = vector.load %arg9[%c0_18, %c0_19] : memref<1x16xf32, #tpu.memory_space<vmem>>, vector<1x16xf32>
    %19 = vector.broadcast %18 : vector<1x16xf32> to vector<64x16xf32>
    %20 = arith.addf %17, %19 : vector<64x16xf32>
    %cst_20 = arith.constant 0.000000e+00 : f32
    %21 = vector.broadcast %cst_20 : f32 to vector<64x16xf32>
    %22 = arith.maximumf %20, %21 : vector<64x16xf32>
    %c0_21 = arith.constant 0 : index
    %c0_22 = arith.constant 0 : index
    %23 = vector.load %arg12[%c0_21, %c0_22] : memref<16x8xf32, #tpu.memory_space<vmem>>, vector<16x8xf32>
    %cst_23 = arith.constant dense<0.000000e+00> : vector<64x8xf32>
    %24 = tpu.matmul %22, %23, %cst_23 {dimension_numbers = #tpu.dot_dimension_numbers<[1], [0], [0], [1], [0, 0, 1, 1], [], []>} : vector<64x16xf32>, vector<16x8xf32>, vector<64x8xf32> -> vector<64x8xf32>
    %c0_24 = arith.constant 0 : index
    %c0_25 = arith.constant 0 : index
    %25 = vector.load %arg13[%c0_24, %c0_25] : memref<1x8xf32, #tpu.memory_space<vmem>>, vector<1x8xf32>
    %26 = vector.broadcast %25 : vector<1x8xf32> to vector<64x8xf32>
    %27 = arith.addf %24, %26 : vector<64x8xf32>
    %cst_26 = arith.constant dense<0xFF800000> : vector<64xf32>
    %28 = vector.multi_reduction <maximumf>, %27, %cst_26 [1] : vector<64x8xf32> to vector<64xf32>
    %29 = vector.shape_cast %28 : vector<64xf32> to vector<64x1xf32>
    %30 = vector.broadcast %29 : vector<64x1xf32> to vector<64x8xf32>
    %31 = arith.subf %27, %30 : vector<64x8xf32>
    %32 = math.exp %31 : vector<64x8xf32>
    %cst_27 = arith.constant dense<0.000000e+00> : vector<64xf32>
    %33 = vector.multi_reduction <add>, %32, %cst_27 [1] : vector<64x8xf32> to vector<64xf32>
    %34 = vector.shape_cast %33 : vector<64xf32> to vector<64x1xf32>
    %35 = vector.broadcast %34 : vector<64x1xf32> to vector<64x8xf32>
    %36 = arith.divf %32, %35 : vector<64x8xf32>
    %c0_28 = arith.constant 0 : index
    %c0_29 = arith.constant 0 : index
    %c0_30 = arith.constant 0 : index
    %37 = vector.load %arg3[%c0_28, %c0_29, %c0_30] : memref<3x32x8xf32, #tpu.memory_space<vmem>>, vector<1x32x8xf32>
    %38 = vector.shape_cast %37 : vector<1x32x8xf32> to vector<32x8xf32>
    %c1 = arith.constant 1 : index
    %c0_31 = arith.constant 0 : index
    %c0_32 = arith.constant 0 : index
    %39 = vector.load %arg3[%c1, %c0_31, %c0_32] : memref<3x32x8xf32, #tpu.memory_space<vmem>>, vector<1x32x8xf32>
    %40 = vector.shape_cast %39 : vector<1x32x8xf32> to vector<32x8xf32>
    %c2 = arith.constant 2 : index
    %c0_33 = arith.constant 0 : index
    %c0_34 = arith.constant 0 : index
    %41 = vector.load %arg3[%c2, %c0_33, %c0_34] : memref<3x32x8xf32, #tpu.memory_space<vmem>>, vector<1x32x8xf32>
    %42 = vector.shape_cast %41 : vector<1x32x8xf32> to vector<32x8xf32>
    %c2_i32 = arith.constant 2 : i32
    %43 = arith.muli %arg0, %c2_i32 : i32
    %c0_i32 = arith.constant 0 : i32
    %44 = arith.addi %43, %c0_i32 : i32
    %c9_i32 = arith.constant 9 : i32
    %45 = arith.muli %44, %c9_i32 : i32
    %c2_i32_35 = arith.constant 2 : i32
    %46 = arith.muli %arg0, %c2_i32_35 : i32
    %c0_i32_36 = arith.constant 0 : i32
    %47 = arith.addi %46, %c0_i32_36 : i32
    %c3_i32 = arith.constant 3 : i32
    %48 = arith.muli %47, %c3_i32 : i32
    %c0_i32_37 = arith.constant 0 : i32
    %49 = arith.addi %45, %c0_i32_37 : i32
    %50 = arith.index_cast %49 : i32 to index
    %51 = memref.load %arg1[%50] : memref<36xf32, #tpu.memory_space<smem>>
    %c1_i32 = arith.constant 1 : i32
    %52 = arith.addi %45, %c1_i32 : i32
    %53 = arith.index_cast %52 : i32 to index
    %54 = memref.load %arg1[%53] : memref<36xf32, #tpu.memory_space<smem>>
    %c2_i32_38 = arith.constant 2 : i32
    %55 = arith.addi %45, %c2_i32_38 : i32
    %56 = arith.index_cast %55 : i32 to index
    %57 = memref.load %arg1[%56] : memref<36xf32, #tpu.memory_space<smem>>
    %c3_i32_39 = arith.constant 3 : i32
    %58 = arith.addi %45, %c3_i32_39 : i32
    %59 = arith.index_cast %58 : i32 to index
    %60 = memref.load %arg1[%59] : memref<36xf32, #tpu.memory_space<smem>>
    %c4_i32 = arith.constant 4 : i32
    %61 = arith.addi %45, %c4_i32 : i32
    %62 = arith.index_cast %61 : i32 to index
    %63 = memref.load %arg1[%62] : memref<36xf32, #tpu.memory_space<smem>>
    %c5_i32 = arith.constant 5 : i32
    %64 = arith.addi %45, %c5_i32 : i32
    %65 = arith.index_cast %64 : i32 to index
    %66 = memref.load %arg1[%65] : memref<36xf32, #tpu.memory_space<smem>>
    %c6_i32 = arith.constant 6 : i32
    %67 = arith.addi %45, %c6_i32 : i32
    %68 = arith.index_cast %67 : i32 to index
    %69 = memref.load %arg1[%68] : memref<36xf32, #tpu.memory_space<smem>>
    %c7_i32 = arith.constant 7 : i32
    %70 = arith.addi %45, %c7_i32 : i32
    %71 = arith.index_cast %70 : i32 to index
    %72 = memref.load %arg1[%71] : memref<36xf32, #tpu.memory_space<smem>>
    %c8_i32 = arith.constant 8 : i32
    %73 = arith.addi %45, %c8_i32 : i32
    %74 = arith.index_cast %73 : i32 to index
    %75 = memref.load %arg1[%74] : memref<36xf32, #tpu.memory_space<smem>>
    %c0_i32_40 = arith.constant 0 : i32
    %76 = arith.addi %48, %c0_i32_40 : i32
    %77 = arith.index_cast %76 : i32 to index
    %78 = memref.load %arg2[%77] : memref<12xf32, #tpu.memory_space<smem>>
    %c1_i32_41 = arith.constant 1 : i32
    %79 = arith.addi %48, %c1_i32_41 : i32
    %80 = arith.index_cast %79 : i32 to index
    %81 = memref.load %arg2[%80] : memref<12xf32, #tpu.memory_space<smem>>
    %c2_i32_42 = arith.constant 2 : i32
    %82 = arith.addi %48, %c2_i32_42 : i32
    %83 = arith.index_cast %82 : i32 to index
    %84 = memref.load %arg2[%83] : memref<12xf32, #tpu.memory_space<smem>>
    %85 = vector.broadcast %51 : f32 to vector<32x8xf32>
    %86 = arith.mulf %85, %38 : vector<32x8xf32>
    %87 = vector.broadcast %54 : f32 to vector<32x8xf32>
    %88 = arith.mulf %87, %40 : vector<32x8xf32>
    %89 = arith.addf %86, %88 : vector<32x8xf32>
    %90 = vector.broadcast %57 : f32 to vector<32x8xf32>
    %91 = arith.mulf %90, %42 : vector<32x8xf32>
    %92 = arith.addf %89, %91 : vector<32x8xf32>
    %93 = vector.broadcast %78 : f32 to vector<32x8xf32>
    %94 = arith.addf %92, %93 : vector<32x8xf32>
    %95 = vector.broadcast %60 : f32 to vector<32x8xf32>
    %96 = arith.mulf %95, %38 : vector<32x8xf32>
    %97 = vector.broadcast %63 : f32 to vector<32x8xf32>
    %98 = arith.mulf %97, %40 : vector<32x8xf32>
    %99 = arith.addf %96, %98 : vector<32x8xf32>
    %100 = vector.broadcast %66 : f32 to vector<32x8xf32>
    %101 = arith.mulf %100, %42 : vector<32x8xf32>
    %102 = arith.addf %99, %101 : vector<32x8xf32>
    %103 = vector.broadcast %81 : f32 to vector<32x8xf32>
    %104 = arith.addf %102, %103 : vector<32x8xf32>
    %105 = vector.broadcast %69 : f32 to vector<32x8xf32>
    %106 = arith.mulf %105, %38 : vector<32x8xf32>
    %107 = vector.broadcast %72 : f32 to vector<32x8xf32>
    %108 = arith.mulf %107, %40 : vector<32x8xf32>
    %109 = arith.addf %106, %108 : vector<32x8xf32>
    %110 = vector.broadcast %75 : f32 to vector<32x8xf32>
    %111 = arith.mulf %110, %42 : vector<32x8xf32>
    %112 = arith.addf %109, %111 : vector<32x8xf32>
    %113 = vector.broadcast %84 : f32 to vector<32x8xf32>
    %114 = arith.addf %112, %113 : vector<32x8xf32>
    %cst_43 = arith.constant -8.000000e+00 : f32
    %115 = vector.broadcast %cst_43 : f32 to vector<32x8xf32>
    %116 = arith.subf %94, %115 : vector<32x8xf32>
    %cst_44 = arith.constant 1.000000e+00 : f32
    %117 = vector.broadcast %cst_44 : f32 to vector<32x8xf32>
    %118 = arith.mulf %116, %117 : vector<32x8xf32>
    %119 = arith.fptosi %118 : vector<32x8xf32> to vector<32x8xi32>
    %cst_45 = arith.constant -8.000000e+00 : f32
    %120 = vector.broadcast %cst_45 : f32 to vector<32x8xf32>
    %121 = arith.subf %104, %120 : vector<32x8xf32>
    %cst_46 = arith.constant 1.000000e+00 : f32
    %122 = vector.broadcast %cst_46 : f32 to vector<32x8xf32>
    %123 = arith.mulf %121, %122 : vector<32x8xf32>
    %124 = arith.fptosi %123 : vector<32x8xf32> to vector<32x8xi32>
    %cst_47 = arith.constant -1.000000e+01 : f32
    %125 = vector.broadcast %cst_47 : f32 to vector<32x8xf32>
    %126 = arith.subf %114, %125 : vector<32x8xf32>
    %cst_48 = arith.constant 5.000000e-02 : f32
    %127 = vector.broadcast %cst_48 : f32 to vector<32x8xf32>
    %128 = arith.mulf %126, %127 : vector<32x8xf32>
    %129 = arith.fptosi %128 : vector<32x8xf32> to vector<32x8xi32>
    %c0_i32_49 = arith.constant 0 : i32
    %130 = vector.broadcast %c0_i32_49 : i32 to vector<32x8xi32>
    %131 = arith.cmpi sge, %119, %130 : vector<32x8xi32>
    %c16_i32 = arith.constant 16 : i32
    %132 = vector.broadcast %c16_i32 : i32 to vector<32x8xi32>
    %133 = arith.cmpi slt, %119, %132 : vector<32x8xi32>
    %134 = arith.andi %131, %133 : vector<32x8xi1>
    %c0_i32_50 = arith.constant 0 : i32
    %135 = vector.broadcast %c0_i32_50 : i32 to vector<32x8xi32>
    %136 = arith.cmpi sge, %124, %135 : vector<32x8xi32>
    %137 = arith.andi %134, %136 : vector<32x8xi1>
    %c16_i32_51 = arith.constant 16 : i32
    %138 = vector.broadcast %c16_i32_51 : i32 to vector<32x8xi32>
    %139 = arith.cmpi slt, %124, %138 : vector<32x8xi32>
    %140 = arith.andi %137, %139 : vector<32x8xi1>
    %c0_i32_52 = arith.constant 0 : i32
    %141 = vector.broadcast %c0_i32_52 : i32 to vector<32x8xi32>
    %142 = arith.cmpi sge, %129, %141 : vector<32x8xi32>
    %143 = arith.andi %140, %142 : vector<32x8xi1>
    %c1_i32_53 = arith.constant 1 : i32
    %144 = vector.broadcast %c1_i32_53 : i32 to vector<32x8xi32>
    %145 = arith.cmpi slt, %129, %144 : vector<32x8xi32>
    %146 = arith.andi %143, %145 : vector<32x8xi1>
    %c16_i32_54 = arith.constant 16 : i32
    %147 = vector.broadcast %c16_i32_54 : i32 to vector<32x8xi32>
    %148 = arith.muli %119, %147 : vector<32x8xi32>
    %149 = arith.addi %148, %124 : vector<32x8xi32>
    %c-1_i32 = arith.constant -1 : i32
    %150 = vector.broadcast %c-1_i32 : i32 to vector<32x8xi32>
    %151 = arith.select %146, %149, %150 : vector<32x8xi1>, vector<32x8xi32>
    %c2_i32_55 = arith.constant 2 : i32
    %152 = arith.muli %arg0, %c2_i32_55 : i32
    %c1_i32_56 = arith.constant 1 : i32
    %153 = arith.addi %152, %c1_i32_56 : i32
    %c9_i32_57 = arith.constant 9 : i32
    %154 = arith.muli %153, %c9_i32_57 : i32
    %c2_i32_58 = arith.constant 2 : i32
    %155 = arith.muli %arg0, %c2_i32_58 : i32
    %c1_i32_59 = arith.constant 1 : i32
    %156 = arith.addi %155, %c1_i32_59 : i32
    %c3_i32_60 = arith.constant 3 : i32
    %157 = arith.muli %156, %c3_i32_60 : i32
    %c0_i32_61 = arith.constant 0 : i32
    %158 = arith.addi %154, %c0_i32_61 : i32
    %159 = arith.index_cast %158 : i32 to index
    %160 = memref.load %arg1[%159] : memref<36xf32, #tpu.memory_space<smem>>
    %c1_i32_62 = arith.constant 1 : i32
    %161 = arith.addi %154, %c1_i32_62 : i32
    %162 = arith.index_cast %161 : i32 to index
    %163 = memref.load %arg1[%162] : memref<36xf32, #tpu.memory_space<smem>>
    %c2_i32_63 = arith.constant 2 : i32
    %164 = arith.addi %154, %c2_i32_63 : i32
    %165 = arith.index_cast %164 : i32 to index
    %166 = memref.load %arg1[%165] : memref<36xf32, #tpu.memory_space<smem>>
    %c3_i32_64 = arith.constant 3 : i32
    %167 = arith.addi %154, %c3_i32_64 : i32
    %168 = arith.index_cast %167 : i32 to index
    %169 = memref.load %arg1[%168] : memref<36xf32, #tpu.memory_space<smem>>
    %c4_i32_65 = arith.constant 4 : i32
    %170 = arith.addi %154, %c4_i32_65 : i32
    %171 = arith.index_cast %170 : i32 to index
    %172 = memref.load %arg1[%171] : memref<36xf32, #tpu.memory_space<smem>>
    %c5_i32_66 = arith.constant 5 : i32
    %173 = arith.addi %154, %c5_i32_66 : i32
    %174 = arith.index_cast %173 : i32 to index
    %175 = memref.load %arg1[%174] : memref<36xf32, #tpu.memory_space<smem>>
    %c6_i32_67 = arith.constant 6 : i32
    %176 = arith.addi %154, %c6_i32_67 : i32
    %177 = arith.index_cast %176 : i32 to index
    %178 = memref.load %arg1[%177] : memref<36xf32, #tpu.memory_space<smem>>
    %c7_i32_68 = arith.constant 7 : i32
    %179 = arith.addi %154, %c7_i32_68 : i32
    %180 = arith.index_cast %179 : i32 to index
    %181 = memref.load %arg1[%180] : memref<36xf32, #tpu.memory_space<smem>>
    %c8_i32_69 = arith.constant 8 : i32
    %182 = arith.addi %154, %c8_i32_69 : i32
    %183 = arith.index_cast %182 : i32 to index
    %184 = memref.load %arg1[%183] : memref<36xf32, #tpu.memory_space<smem>>
    %c0_i32_70 = arith.constant 0 : i32
    %185 = arith.addi %157, %c0_i32_70 : i32
    %186 = arith.index_cast %185 : i32 to index
    %187 = memref.load %arg2[%186] : memref<12xf32, #tpu.memory_space<smem>>
    %c1_i32_71 = arith.constant 1 : i32
    %188 = arith.addi %157, %c1_i32_71 : i32
    %189 = arith.index_cast %188 : i32 to index
    %190 = memref.load %arg2[%189] : memref<12xf32, #tpu.memory_space<smem>>
    %c2_i32_72 = arith.constant 2 : i32
    %191 = arith.addi %157, %c2_i32_72 : i32
    %192 = arith.index_cast %191 : i32 to index
    %193 = memref.load %arg2[%192] : memref<12xf32, #tpu.memory_space<smem>>
    %194 = vector.broadcast %160 : f32 to vector<32x8xf32>
    %195 = arith.mulf %194, %38 : vector<32x8xf32>
    %196 = vector.broadcast %163 : f32 to vector<32x8xf32>
    %197 = arith.mulf %196, %40 : vector<32x8xf32>
    %198 = arith.addf %195, %197 : vector<32x8xf32>
    %199 = vector.broadcast %166 : f32 to vector<32x8xf32>
    %200 = arith.mulf %199, %42 : vector<32x8xf32>
    %201 = arith.addf %198, %200 : vector<32x8xf32>
    %202 = vector.broadcast %187 : f32 to vector<32x8xf32>
    %203 = arith.addf %201, %202 : vector<32x8xf32>
    %204 = vector.broadcast %169 : f32 to vector<32x8xf32>
    %205 = arith.mulf %204, %38 : vector<32x8xf32>
    %206 = vector.broadcast %172 : f32 to vector<32x8xf32>
    %207 = arith.mulf %206, %40 : vector<32x8xf32>
    %208 = arith.addf %205, %207 : vector<32x8xf32>
    %209 = vector.broadcast %175 : f32 to vector<32x8xf32>
    %210 = arith.mulf %209, %42 : vector<32x8xf32>
    %211 = arith.addf %208, %210 : vector<32x8xf32>
    %212 = vector.broadcast %190 : f32 to vector<32x8xf32>
    %213 = arith.addf %211, %212 : vector<32x8xf32>
    %214 = vector.broadcast %178 : f32 to vector<32x8xf32>
    %215 = arith.mulf %214, %38 : vector<32x8xf32>
    %216 = vector.broadcast %181 : f32 to vector<32x8xf32>
    %217 = arith.mulf %216, %40 : vector<32x8xf32>
    %218 = arith.addf %215, %217 : vector<32x8xf32>
    %219 = vector.broadcast %184 : f32 to vector<32x8xf32>
    %220 = arith.mulf %219, %42 : vector<32x8xf32>
    %221 = arith.addf %218, %220 : vector<32x8xf32>
    %222 = vector.broadcast %193 : f32 to vector<32x8xf32>
    %223 = arith.addf %221, %222 : vector<32x8xf32>
    %cst_73 = arith.constant -8.000000e+00 : f32
    %224 = vector.broadcast %cst_73 : f32 to vector<32x8xf32>
    %225 = arith.subf %203, %224 : vector<32x8xf32>
    %cst_74 = arith.constant 1.000000e+00 : f32
    %226 = vector.broadcast %cst_74 : f32 to vector<32x8xf32>
    %227 = arith.mulf %225, %226 : vector<32x8xf32>
    %228 = arith.fptosi %227 : vector<32x8xf32> to vector<32x8xi32>
    %cst_75 = arith.constant -8.000000e+00 : f32
    %229 = vector.broadcast %cst_75 : f32 to vector<32x8xf32>
    %230 = arith.subf %213, %229 : vector<32x8xf32>
    %cst_76 = arith.constant 1.000000e+00 : f32
    %231 = vector.broadcast %cst_76 : f32 to vector<32x8xf32>
    %232 = arith.mulf %230, %231 : vector<32x8xf32>
    %233 = arith.fptosi %232 : vector<32x8xf32> to vector<32x8xi32>
    %cst_77 = arith.constant -1.000000e+01 : f32
    %234 = vector.broadcast %cst_77 : f32 to vector<32x8xf32>
    %235 = arith.subf %223, %234 : vector<32x8xf32>
    %cst_78 = arith.constant 5.000000e-02 : f32
    %236 = vector.broadcast %cst_78 : f32 to vector<32x8xf32>
    %237 = arith.mulf %235, %236 : vector<32x8xf32>
    %238 = arith.fptosi %237 : vector<32x8xf32> to vector<32x8xi32>
    %c0_i32_79 = arith.constant 0 : i32
    %239 = vector.broadcast %c0_i32_79 : i32 to vector<32x8xi32>
    %240 = arith.cmpi sge, %228, %239 : vector<32x8xi32>
    %c16_i32_80 = arith.constant 16 : i32
    %241 = vector.broadcast %c16_i32_80 : i32 to vector<32x8xi32>
    %242 = arith.cmpi slt, %228, %241 : vector<32x8xi32>
    %243 = arith.andi %240, %242 : vector<32x8xi1>
    %c0_i32_81 = arith.constant 0 : i32
    %244 = vector.broadcast %c0_i32_81 : i32 to vector<32x8xi32>
    %245 = arith.cmpi sge, %233, %244 : vector<32x8xi32>
    %246 = arith.andi %243, %245 : vector<32x8xi1>
    %c16_i32_82 = arith.constant 16 : i32
    %247 = vector.broadcast %c16_i32_82 : i32 to vector<32x8xi32>
    %248 = arith.cmpi slt, %233, %247 : vector<32x8xi32>
    %249 = arith.andi %246, %248 : vector<32x8xi1>
    %c0_i32_83 = arith.constant 0 : i32
    %250 = vector.broadcast %c0_i32_83 : i32 to vector<32x8xi32>
    %251 = arith.cmpi sge, %238, %250 : vector<32x8xi32>
    %252 = arith.andi %249, %251 : vector<32x8xi1>
    %c1_i32_84 = arith.constant 1 : i32
    %253 = vector.broadcast %c1_i32_84 : i32 to vector<32x8xi32>
    %254 = arith.cmpi slt, %238, %253 : vector<32x8xi32>
    %255 = arith.andi %252, %254 : vector<32x8xi1>
    %c16_i32_85 = arith.constant 16 : i32
    %256 = vector.broadcast %c16_i32_85 : i32 to vector<32x8xi32>
    %257 = arith.muli %228, %256 : vector<32x8xi32>
    %258 = arith.addi %257, %233 : vector<32x8xi32>
    %c-1_i32_86 = arith.constant -1 : i32
    %259 = vector.broadcast %c-1_i32_86 : i32 to vector<32x8xi32>
    %260 = arith.select %255, %258, %259 : vector<32x8xi1>, vector<32x8xi32>
    %261 = tpu.concatenate %151, %260 in 0 : vector<32x8xi32>, vector<32x8xi32> -> vector<64x8xi32>
    %262 = tpu.iota {dimensions = array<i32: 1>} : vector<64x128xi32>
    %c0_i32_87 = arith.constant 0 : i32
    %263 = vector.broadcast %c0_i32_87 : i32 to vector<64x128xi32>
    %264 = arith.addi %263, %262 : vector<64x128xi32>
    %cst_88 = arith.constant 0.000000e+00 : f32
    %265 = vector.broadcast %cst_88 : f32 to vector<64x128xf32>
    %266 = vector.extract_strided_slice %261 {offsets = [0, 0], sizes = [64, 1], strides = [1, 1]} : vector<64x8xi32> to vector<64x1xi32>
    %267 = vector.broadcast %266 : vector<64x1xi32> to vector<64x128xi32>
    %268 = arith.cmpi eq, %264, %267 : vector<64x128xi32>
    %269 = vector.extract_strided_slice %36 {offsets = [0, 0], sizes = [64, 1], strides = [1, 1]} : vector<64x8xf32> to vector<64x1xf32>
    %cst_89 = arith.constant 0.000000e+00 : f32
    %270 = vector.shape_cast %269 : vector<64x1xf32> to vector<64x1xf32>
    %271 = vector.broadcast %270 : vector<64x1xf32> to vector<64x128xf32>
    %272 = vector.broadcast %cst_89 : f32 to vector<64x128xf32>
    %273 = arith.select %268, %271, %272 : vector<64x128xi1>, vector<64x128xf32>
    %274 = arith.addf %265, %273 : vector<64x128xf32>
    %275 = vector.extract_strided_slice %261 {offsets = [0, 1], sizes = [64, 1], strides = [1, 1]} : vector<64x8xi32> to vector<64x1xi32>
    %276 = vector.broadcast %275 : vector<64x1xi32> to vector<64x128xi32>
    %277 = arith.cmpi eq, %264, %276 : vector<64x128xi32>
    %278 = vector.extract_strided_slice %36 {offsets = [0, 1], sizes = [64, 1], strides = [1, 1]} : vector<64x8xf32> to vector<64x1xf32>
    %cst_90 = arith.constant 0.000000e+00 : f32
    %279 = vector.shape_cast %278 : vector<64x1xf32> to vector<64x1xf32>
    %280 = vector.broadcast %279 : vector<64x1xf32> to vector<64x128xf32>
    %281 = vector.broadcast %cst_90 : f32 to vector<64x128xf32>
    %282 = arith.select %277, %280, %281 : vector<64x128xi1>, vector<64x128xf32>
    %283 = arith.addf %274, %282 : vector<64x128xf32>
    %284 = vector.extract_strided_slice %261 {offsets = [0, 2], sizes = [64, 1], strides = [1, 1]} : vector<64x8xi32> to vector<64x1xi32>
    %285 = vector.broadcast %284 : vector<64x1xi32> to vector<64x128xi32>
    %286 = arith.cmpi eq, %264, %285 : vector<64x128xi32>
    %287 = vector.extract_strided_slice %36 {offsets = [0, 2], sizes = [64, 1], strides = [1, 1]} : vector<64x8xf32> to vector<64x1xf32>
    %cst_91 = arith.constant 0.000000e+00 : f32
    %288 = vector.shape_cast %287 : vector<64x1xf32> to vector<64x1xf32>
    %289 = vector.broadcast %288 : vector<64x1xf32> to vector<64x128xf32>
    %290 = vector.broadcast %cst_91 : f32 to vector<64x128xf32>
    %291 = arith.select %286, %289, %290 : vector<64x128xi1>, vector<64x128xf32>
    %292 = arith.addf %283, %291 : vector<64x128xf32>
    %293 = vector.extract_strided_slice %261 {offsets = [0, 3], sizes = [64, 1], strides = [1, 1]} : vector<64x8xi32> to vector<64x1xi32>
    %294 = vector.broadcast %293 : vector<64x1xi32> to vector<64x128xi32>
    %295 = arith.cmpi eq, %264, %294 : vector<64x128xi32>
    %296 = vector.extract_strided_slice %36 {offsets = [0, 3], sizes = [64, 1], strides = [1, 1]} : vector<64x8xf32> to vector<64x1xf32>
    %cst_92 = arith.constant 0.000000e+00 : f32
    %297 = vector.shape_cast %296 : vector<64x1xf32> to vector<64x1xf32>
    %298 = vector.broadcast %297 : vector<64x1xf32> to vector<64x128xf32>
    %299 = vector.broadcast %cst_92 : f32 to vector<64x128xf32>
    %300 = arith.select %295, %298, %299 : vector<64x128xi1>, vector<64x128xf32>
    %301 = arith.addf %292, %300 : vector<64x128xf32>
    %302 = vector.extract_strided_slice %261 {offsets = [0, 4], sizes = [64, 1], strides = [1, 1]} : vector<64x8xi32> to vector<64x1xi32>
    %303 = vector.broadcast %302 : vector<64x1xi32> to vector<64x128xi32>
    %304 = arith.cmpi eq, %264, %303 : vector<64x128xi32>
    %305 = vector.extract_strided_slice %36 {offsets = [0, 4], sizes = [64, 1], strides = [1, 1]} : vector<64x8xf32> to vector<64x1xf32>
    %cst_93 = arith.constant 0.000000e+00 : f32
    %306 = vector.shape_cast %305 : vector<64x1xf32> to vector<64x1xf32>
    %307 = vector.broadcast %306 : vector<64x1xf32> to vector<64x128xf32>
    %308 = vector.broadcast %cst_93 : f32 to vector<64x128xf32>
    %309 = arith.select %304, %307, %308 : vector<64x128xi1>, vector<64x128xf32>
    %310 = arith.addf %301, %309 : vector<64x128xf32>
    %311 = vector.extract_strided_slice %261 {offsets = [0, 5], sizes = [64, 1], strides = [1, 1]} : vector<64x8xi32> to vector<64x1xi32>
    %312 = vector.broadcast %311 : vector<64x1xi32> to vector<64x128xi32>
    %313 = arith.cmpi eq, %264, %312 : vector<64x128xi32>
    %314 = vector.extract_strided_slice %36 {offsets = [0, 5], sizes = [64, 1], strides = [1, 1]} : vector<64x8xf32> to vector<64x1xf32>
    %cst_94 = arith.constant 0.000000e+00 : f32
    %315 = vector.shape_cast %314 : vector<64x1xf32> to vector<64x1xf32>
    %316 = vector.broadcast %315 : vector<64x1xf32> to vector<64x128xf32>
    %317 = vector.broadcast %cst_94 : f32 to vector<64x128xf32>
    %318 = arith.select %313, %316, %317 : vector<64x128xi1>, vector<64x128xf32>
    %319 = arith.addf %310, %318 : vector<64x128xf32>
    %320 = vector.extract_strided_slice %261 {offsets = [0, 6], sizes = [64, 1], strides = [1, 1]} : vector<64x8xi32> to vector<64x1xi32>
    %321 = vector.broadcast %320 : vector<64x1xi32> to vector<64x128xi32>
    %322 = arith.cmpi eq, %264, %321 : vector<64x128xi32>
    %323 = vector.extract_strided_slice %36 {offsets = [0, 6], sizes = [64, 1], strides = [1, 1]} : vector<64x8xf32> to vector<64x1xf32>
    %cst_95 = arith.constant 0.000000e+00 : f32
    %324 = vector.shape_cast %323 : vector<64x1xf32> to vector<64x1xf32>
    %325 = vector.broadcast %324 : vector<64x1xf32> to vector<64x128xf32>
    %326 = vector.broadcast %cst_95 : f32 to vector<64x128xf32>
    %327 = arith.select %322, %325, %326 : vector<64x128xi1>, vector<64x128xf32>
    %328 = arith.addf %319, %327 : vector<64x128xf32>
    %329 = vector.extract_strided_slice %261 {offsets = [0, 7], sizes = [64, 1], strides = [1, 1]} : vector<64x8xi32> to vector<64x1xi32>
    %330 = vector.broadcast %329 : vector<64x1xi32> to vector<64x128xi32>
    %331 = arith.cmpi eq, %264, %330 : vector<64x128xi32>
    %332 = vector.extract_strided_slice %36 {offsets = [0, 7], sizes = [64, 1], strides = [1, 1]} : vector<64x8xf32> to vector<64x1xf32>
    %cst_96 = arith.constant 0.000000e+00 : f32
    %333 = vector.shape_cast %332 : vector<64x1xf32> to vector<64x1xf32>
    %334 = vector.broadcast %333 : vector<64x1xf32> to vector<64x128xf32>
    %335 = vector.broadcast %cst_96 : f32 to vector<64x128xf32>
    %336 = arith.select %331, %334, %335 : vector<64x128xi1>, vector<64x128xf32>
    %337 = arith.addf %328, %336 : vector<64x128xf32>
    %cst_97 = arith.constant dense<0.000000e+00> : vector<8x128xf32>
    %338 = tpu.matmul %13, %337, %cst_97 {dimension_numbers = #tpu.dot_dimension_numbers<[1], [0], [0], [1], [0, 0, 1, 1], [], []>} : vector<8x64xf32>, vector<64x128xf32>, vector<8x128xf32> -> vector<8x128xf32>
    %339 = tpu.iota {dimensions = array<i32: 1>} : vector<64x128xi32>
    %c128_i32 = arith.constant 128 : i32
    %340 = vector.broadcast %c128_i32 : i32 to vector<64x128xi32>
    %341 = arith.addi %340, %339 : vector<64x128xi32>
    %cst_98 = arith.constant 0.000000e+00 : f32
    %342 = vector.broadcast %cst_98 : f32 to vector<64x128xf32>
    %343 = vector.extract_strided_slice %261 {offsets = [0, 0], sizes = [64, 1], strides = [1, 1]} : vector<64x8xi32> to vector<64x1xi32>
    %344 = vector.broadcast %343 : vector<64x1xi32> to vector<64x128xi32>
    %345 = arith.cmpi eq, %341, %344 : vector<64x128xi32>
    %346 = vector.extract_strided_slice %36 {offsets = [0, 0], sizes = [64, 1], strides = [1, 1]} : vector<64x8xf32> to vector<64x1xf32>
    %cst_99 = arith.constant 0.000000e+00 : f32
    %347 = vector.shape_cast %346 : vector<64x1xf32> to vector<64x1xf32>
    %348 = vector.broadcast %347 : vector<64x1xf32> to vector<64x128xf32>
    %349 = vector.broadcast %cst_99 : f32 to vector<64x128xf32>
    %350 = arith.select %345, %348, %349 : vector<64x128xi1>, vector<64x128xf32>
    %351 = arith.addf %342, %350 : vector<64x128xf32>
    %352 = vector.extract_strided_slice %261 {offsets = [0, 1], sizes = [64, 1], strides = [1, 1]} : vector<64x8xi32> to vector<64x1xi32>
    %353 = vector.broadcast %352 : vector<64x1xi32> to vector<64x128xi32>
    %354 = arith.cmpi eq, %341, %353 : vector<64x128xi32>
    %355 = vector.extract_strided_slice %36 {offsets = [0, 1], sizes = [64, 1], strides = [1, 1]} : vector<64x8xf32> to vector<64x1xf32>
    %cst_100 = arith.constant 0.000000e+00 : f32
    %356 = vector.shape_cast %355 : vector<64x1xf32> to vector<64x1xf32>
    %357 = vector.broadcast %356 : vector<64x1xf32> to vector<64x128xf32>
    %358 = vector.broadcast %cst_100 : f32 to vector<64x128xf32>
    %359 = arith.select %354, %357, %358 : vector<64x128xi1>, vector<64x128xf32>
    %360 = arith.addf %351, %359 : vector<64x128xf32>
    %361 = vector.extract_strided_slice %261 {offsets = [0, 2], sizes = [64, 1], strides = [1, 1]} : vector<64x8xi32> to vector<64x1xi32>
    %362 = vector.broadcast %361 : vector<64x1xi32> to vector<64x128xi32>
    %363 = arith.cmpi eq, %341, %362 : vector<64x128xi32>
    %364 = vector.extract_strided_slice %36 {offsets = [0, 2], sizes = [64, 1], strides = [1, 1]} : vector<64x8xf32> to vector<64x1xf32>
    %cst_101 = arith.constant 0.000000e+00 : f32
    %365 = vector.shape_cast %364 : vector<64x1xf32> to vector<64x1xf32>
    %366 = vector.broadcast %365 : vector<64x1xf32> to vector<64x128xf32>
    %367 = vector.broadcast %cst_101 : f32 to vector<64x128xf32>
    %368 = arith.select %363, %366, %367 : vector<64x128xi1>, vector<64x128xf32>
    %369 = arith.addf %360, %368 : vector<64x128xf32>
    %370 = vector.extract_strided_slice %261 {offsets = [0, 3], sizes = [64, 1], strides = [1, 1]} : vector<64x8xi32> to vector<64x1xi32>
    %371 = vector.broadcast %370 : vector<64x1xi32> to vector<64x128xi32>
    %372 = arith.cmpi eq, %341, %371 : vector<64x128xi32>
    %373 = vector.extract_strided_slice %36 {offsets = [0, 3], sizes = [64, 1], strides = [1, 1]} : vector<64x8xf32> to vector<64x1xf32>
    %cst_102 = arith.constant 0.000000e+00 : f32
    %374 = vector.shape_cast %373 : vector<64x1xf32> to vector<64x1xf32>
    %375 = vector.broadcast %374 : vector<64x1xf32> to vector<64x128xf32>
    %376 = vector.broadcast %cst_102 : f32 to vector<64x128xf32>
    %377 = arith.select %372, %375, %376 : vector<64x128xi1>, vector<64x128xf32>
    %378 = arith.addf %369, %377 : vector<64x128xf32>
    %379 = vector.extract_strided_slice %261 {offsets = [0, 4], sizes = [64, 1], strides = [1, 1]} : vector<64x8xi32> to vector<64x1xi32>
    %380 = vector.broadcast %379 : vector<64x1xi32> to vector<64x128xi32>
    %381 = arith.cmpi eq, %341, %380 : vector<64x128xi32>
    %382 = vector.extract_strided_slice %36 {offsets = [0, 4], sizes = [64, 1], strides = [1, 1]} : vector<64x8xf32> to vector<64x1xf32>
    %cst_103 = arith.constant 0.000000e+00 : f32
    %383 = vector.shape_cast %382 : vector<64x1xf32> to vector<64x1xf32>
    %384 = vector.broadcast %383 : vector<64x1xf32> to vector<64x128xf32>
    %385 = vector.broadcast %cst_103 : f32 to vector<64x128xf32>
    %386 = arith.select %381, %384, %385 : vector<64x128xi1>, vector<64x128xf32>
    %387 = arith.addf %378, %386 : vector<64x128xf32>
    %388 = vector.extract_strided_slice %261 {offsets = [0, 5], sizes = [64, 1], strides = [1, 1]} : vector<64x8xi32> to vector<64x1xi32>
    %389 = vector.broadcast %388 : vector<64x1xi32> to vector<64x128xi32>
    %390 = arith.cmpi eq, %341, %389 : vector<64x128xi32>
    %391 = vector.extract_strided_slice %36 {offsets = [0, 5], sizes = [64, 1], strides = [1, 1]} : vector<64x8xf32> to vector<64x1xf32>
    %cst_104 = arith.constant 0.000000e+00 : f32
    %392 = vector.shape_cast %391 : vector<64x1xf32> to vector<64x1xf32>
    %393 = vector.broadcast %392 : vector<64x1xf32> to vector<64x128xf32>
    %394 = vector.broadcast %cst_104 : f32 to vector<64x128xf32>
    %395 = arith.select %390, %393, %394 : vector<64x128xi1>, vector<64x128xf32>
    %396 = arith.addf %387, %395 : vector<64x128xf32>
    %397 = vector.extract_strided_slice %261 {offsets = [0, 6], sizes = [64, 1], strides = [1, 1]} : vector<64x8xi32> to vector<64x1xi32>
    %398 = vector.broadcast %397 : vector<64x1xi32> to vector<64x128xi32>
    %399 = arith.cmpi eq, %341, %398 : vector<64x128xi32>
    %400 = vector.extract_strided_slice %36 {offsets = [0, 6], sizes = [64, 1], strides = [1, 1]} : vector<64x8xf32> to vector<64x1xf32>
    %cst_105 = arith.constant 0.000000e+00 : f32
    %401 = vector.shape_cast %400 : vector<64x1xf32> to vector<64x1xf32>
    %402 = vector.broadcast %401 : vector<64x1xf32> to vector<64x128xf32>
    %403 = vector.broadcast %cst_105 : f32 to vector<64x128xf32>
    %404 = arith.select %399, %402, %403 : vector<64x128xi1>, vector<64x128xf32>
    %405 = arith.addf %396, %404 : vector<64x128xf32>
    %406 = vector.extract_strided_slice %261 {offsets = [0, 7], sizes = [64, 1], strides = [1, 1]} : vector<64x8xi32> to vector<64x1xi32>
    %407 = vector.broadcast %406 : vector<64x1xi32> to vector<64x128xi32>
    %408 = arith.cmpi eq, %341, %407 : vector<64x128xi32>
    %409 = vector.extract_strided_slice %36 {offsets = [0, 7], sizes = [64, 1], strides = [1, 1]} : vector<64x8xf32> to vector<64x1xf32>
    %cst_106 = arith.constant 0.000000e+00 : f32
    %410 = vector.shape_cast %409 : vector<64x1xf32> to vector<64x1xf32>
    %411 = vector.broadcast %410 : vector<64x1xf32> to vector<64x128xf32>
    %412 = vector.broadcast %cst_106 : f32 to vector<64x128xf32>
    %413 = arith.select %408, %411, %412 : vector<64x128xi1>, vector<64x128xf32>
    %414 = arith.addf %405, %413 : vector<64x128xf32>
    %cst_107 = arith.constant dense<0.000000e+00> : vector<8x128xf32>
    %415 = tpu.matmul %13, %414, %cst_107 {dimension_numbers = #tpu.dot_dimension_numbers<[1], [0], [0], [1], [0, 0, 1, 1], [], []>} : vector<8x64xf32>, vector<64x128xf32>, vector<8x128xf32> -> vector<8x128xf32>
    %416 = tpu.concatenate %338, %415 in 1 : vector<8x128xf32>, vector<8x128xf32> -> vector<8x256xf32>
    %c0_108 = arith.constant 0 : index
    %c0_109 = arith.constant 0 : index
    %c0_110 = arith.constant 0 : index
    %417 = vector.load %arg18[%c0_108, %c0_109, %c0_110] : memref<1x8x256xf32, #tpu.memory_space<vmem>>, vector<1x8x256xf32>
    %418 = vector.shape_cast %417 : vector<1x8x256xf32> to vector<8x256xf32>
    %419 = vector.shape_cast %416 : vector<8x256xf32> to vector<1x8x256xf32>
    tpu.vector_store %arg18[%c0_108, %c0_109, %c0_110], %419 {strides = array<i32>} : memref<1x8x256xf32, #tpu.memory_space<vmem>>, vector<1x8x256xf32>,
    %c0_111 = arith.constant 0 : index
    %c0_112 = arith.constant 0 : index
    %420 = vector.load %arg14[%c0_111, %c0_112] : memref<16x8xf32, #tpu.memory_space<vmem>>, vector<16x8xf32>
    %cst_113 = arith.constant dense<0.000000e+00> : vector<16x256xf32>
    %421 = tpu.matmul %420, %416, %cst_113 {dimension_numbers = #tpu.dot_dimension_numbers<[1], [0], [0], [1], [0, 0, 1, 1], [], []>} : vector<16x8xf32>, vector<8x256xf32>, vector<16x256xf32> -> vector<16x256xf32>
    %c0_114 = arith.constant 0 : index
    %c0_115 = arith.constant 0 : index
    %422 = vector.load %arg15[%c0_114, %c0_115] : memref<16x1xf32, #tpu.memory_space<vmem>>, vector<16x1xf32>
    %423 = vector.broadcast %422 : vector<16x1xf32> to vector<16x256xf32>
    %424 = arith.addf %421, %423 : vector<16x256xf32>
    %cst_116 = arith.constant 0.000000e+00 : f32
    %425 = vector.broadcast %cst_116 : f32 to vector<16x256xf32>
    %426 = arith.maximumf %424, %425 : vector<16x256xf32>
    %c0_117 = arith.constant 0 : index
    %c0_118 = arith.constant 0 : index
    %427 = vector.load %arg16[%c0_117, %c0_118] : memref<8x16xf32, #tpu.memory_space<vmem>>, vector<8x16xf32>
    %cst_119 = arith.constant dense<0.000000e+00> : vector<8x256xf32>
    %428 = tpu.matmul %427, %426, %cst_119 {dimension_numbers = #tpu.dot_dimension_numbers<[1], [0], [0], [1], [0, 0, 1, 1], [], []>} : vector<8x16xf32>, vector<16x256xf32>, vector<8x256xf32> -> vector<8x256xf32>
    %c0_120 = arith.constant 0 : index
    %c0_121 = arith.constant 0 : index
    %429 = vector.load %arg17[%c0_120, %c0_121] : memref<8x1xf32, #tpu.memory_space<vmem>>, vector<8x1xf32>
    %430 = vector.broadcast %429 : vector<8x1xf32> to vector<8x256xf32>
    %431 = arith.addf %428, %430 : vector<8x256xf32>
    %432 = tpu.iota {dimensions = array<i32: 0>} : vector<8x256xi32>
    %cst_122 = arith.constant 0.000000e+00 : f32
    %433 = vector.broadcast %cst_122 : f32 to vector<8x256xf32>
    %434 = arith.subf %433, %431 : vector<8x256xf32>
    %435 = math.exp %434 : vector<8x256xf32>
    %cst_123 = arith.constant 1.000000e+00 : f32
    %436 = vector.broadcast %cst_123 : f32 to vector<8x256xf32>
    %437 = arith.addf %436, %435 : vector<8x256xf32>
    %cst_124 = arith.constant 1.000000e+00 : f32
    %438 = vector.broadcast %cst_124 : f32 to vector<8x256xf32>
    %439 = arith.divf %438, %437 : vector<8x256xf32>
    %c2_i32_125 = arith.constant 2 : i32
    %440 = vector.broadcast %c2_i32_125 : i32 to vector<8x256xi32>
    %441 = arith.cmpi eq, %432, %440 : vector<8x256xi32>
    %442 = arith.select %441, %439, %431 : vector<8x256xi1>, vector<8x256xf32>
    %c0_126 = arith.constant 0 : index
    %c0_127 = arith.constant 0 : index
    %c0_128 = arith.constant 0 : index
    %443 = vector.load %arg19[%c0_126, %c0_127, %c0_128] : memref<1x8x256xf32, #tpu.memory_space<vmem>>, vector<1x8x256xf32>
    %444 = vector.shape_cast %443 : vector<1x8x256xf32> to vector<8x256xf32>
    %445 = vector.shape_cast %442 : vector<8x256xf32> to vector<1x8x256xf32>
    tpu.vector_store %arg19[%c0_126, %c0_127, %c0_128], %445 {strides = array<i32>} : memref<1x8x256xf32, #tpu.memory_space<vmem>>, vector<1x8x256xf32>,
    return
  }
  func.func @transform_0(%arg0: i32) -> i32 {
    %c0_i32 = arith.constant 0 : i32
    %c0_i32_0 = arith.constant 0 : i32
    return %c0_i32 : i32
  }
  func.func @transform_1(%arg0: i32) -> i32 {
    %c0_i32 = arith.constant 0 : i32
    %c0_i32_0 = arith.constant 0 : i32
    return %c0_i32 : i32
  }
  func.func @transform_2(%arg0: i32) -> (i32, i32, i32) {
    %c0_i32 = arith.constant 0 : i32
    %c0_i32_0 = arith.constant 0 : i32
    %c0_i32_1 = arith.constant 0 : i32
    %c0_i32_2 = arith.constant 0 : i32
    return %c0_i32, %c0_i32_0, %c0_i32_1 : i32, i32, i32
  }
  func.func @transform_3(%arg0: i32) -> (i32, i32, i32) {
    %c0_i32 = arith.constant 0 : i32
    %c0_i32_0 = arith.constant 0 : i32
    %c0_i32_1 = arith.constant 0 : i32
    return %arg0, %c0_i32, %c0_i32_0 : i32, i32, i32
  }
  func.func @transform_4(%arg0: i32) -> (i32, i32, i32) {
    %c0_i32 = arith.constant 0 : i32
    %c0_i32_0 = arith.constant 0 : i32
    %c0_i32_1 = arith.constant 0 : i32
    return %arg0, %c0_i32, %c0_i32_0 : i32, i32, i32
  }
  func.func @transform_5(%arg0: i32) -> (i32, i32) {
    %c0_i32 = arith.constant 0 : i32
    %c0_i32_0 = arith.constant 0 : i32
    %c0_i32_1 = arith.constant 0 : i32
    return %c0_i32, %c0_i32_0 : i32, i32
  }
  func.func @transform_6(%arg0: i32) -> (i32, i32) {
    %c0_i32 = arith.constant 0 : i32
    %c0_i32_0 = arith.constant 0 : i32
    %c0_i32_1 = arith.constant 0 : i32
    return %c0_i32, %c0_i32_0 : i32, i32
  }
  func.func @transform_7(%arg0: i32) -> (i32, i32) {
    %c0_i32 = arith.constant 0 : i32
    %c0_i32_0 = arith.constant 0 : i32
    %c0_i32_1 = arith.constant 0 : i32
    return %c0_i32, %c0_i32_0 : i32, i32
  }
  func.func @transform_8(%arg0: i32) -> (i32, i32) {
    %c0_i32 = arith.constant 0 : i32
    %c0_i32_0 = arith.constant 0 : i32
    %c0_i32_1 = arith.constant 0 : i32
    return %c0_i32, %c0_i32_0 : i32, i32
  }
  func.func @transform_9(%arg0: i32) -> (i32, i32) {
    %c0_i32 = arith.constant 0 : i32
    %c0_i32_0 = arith.constant 0 : i32
    %c0_i32_1 = arith.constant 0 : i32
    return %c0_i32, %c0_i32_0 : i32, i32
  }
  func.func @transform_10(%arg0: i32) -> (i32, i32) {
    %c0_i32 = arith.constant 0 : i32
    %c0_i32_0 = arith.constant 0 : i32
    %c0_i32_1 = arith.constant 0 : i32
    return %c0_i32, %c0_i32_0 : i32, i32
  }
  func.func @transform_11(%arg0: i32) -> (i32, i32) {
    %c0_i32 = arith.constant 0 : i32
    %c0_i32_0 = arith.constant 0 : i32
    %c0_i32_1 = arith.constant 0 : i32
    return %c0_i32, %c0_i32_0 : i32, i32
  }
  func.func @transform_12(%arg0: i32) -> (i32, i32) {
    %c0_i32 = arith.constant 0 : i32
    %c0_i32_0 = arith.constant 0 : i32
    %c0_i32_1 = arith.constant 0 : i32
    return %c0_i32, %c0_i32_0 : i32, i32
  }
  func.func @transform_13(%arg0: i32) -> (i32, i32) {
    %c0_i32 = arith.constant 0 : i32
    %c0_i32_0 = arith.constant 0 : i32
    %c0_i32_1 = arith.constant 0 : i32
    return %c0_i32, %c0_i32_0 : i32, i32
  }
  func.func @transform_14(%arg0: i32) -> (i32, i32) {
    %c0_i32 = arith.constant 0 : i32
    %c0_i32_0 = arith.constant 0 : i32
    %c0_i32_1 = arith.constant 0 : i32
    return %c0_i32, %c0_i32_0 : i32, i32
  }
  func.func @transform_15(%arg0: i32) -> (i32, i32) {
    %c0_i32 = arith.constant 0 : i32
    %c0_i32_0 = arith.constant 0 : i32
    %c0_i32_1 = arith.constant 0 : i32
    return %c0_i32, %c0_i32_0 : i32, i32
  }
  func.func @transform_16(%arg0: i32) -> (i32, i32) {
    %c0_i32 = arith.constant 0 : i32
    %c0_i32_0 = arith.constant 0 : i32
    %c0_i32_1 = arith.constant 0 : i32
    return %c0_i32, %c0_i32_0 : i32, i32
  }
  func.func @transform_17(%arg0: i32) -> (i32, i32, i32) {
    %c0_i32 = arith.constant 0 : i32
    %c0_i32_0 = arith.constant 0 : i32
    %c0_i32_1 = arith.constant 0 : i32
    return %arg0, %c0_i32, %c0_i32_0 : i32, i32, i32
  }
  func.func @transform_18(%arg0: i32) -> (i32, i32, i32) {
    %c0_i32 = arith.constant 0 : i32
    %c0_i32_0 = arith.constant 0 : i32
    %c0_i32_1 = arith.constant 0 : i32
    return %arg0, %c0_i32, %c0_i32_0 : i32, i32, i32
  }
}

</mosaic_0001>

<bundles_post_ra>
// kernel: tpu_custom_call.1
= control target key start
LH: loop header
LB: loop body
LE: loop exit
PB: predicated region body
PF: predicated region fallthrough
CT: control target
= control target key end

     0   :  { %s4866_s0 = inlined_call_operand.vmem [shape: f32[36], index: 0, kind: input, shape index: {}]   ;;  %s4867_s1 = inlined_call_operand.vmem [shape: f32[12], index: 1, kind: input, shape index: {}]   ;;  %s4868_s2 = inlined_call_operand.vmem [shape: f32[3,32,8], index: 2, kind: input, shape index: {}]   ;;  %s4869_s3 = inlined_call_operand.vmem [shape: f32[2,3,64], index: 3, kind: input, shape index: {}]   ;;  %s4870_s4 = inlined_call_operand.vmem [shape: f32[2,64,3], index: 4, kind: input, shape index: {}]   ;;  %s4871_s5 = inlined_call_operand.vmem [shape: f32[16,3], index: 5, kind: input, shape index: {}]   ;;  %s4872_s6 = inlined_call_operand.vmem [shape: f32[16,1], index: 6, kind: input, shape index: {}]   ;;  %s4873_s7 = inlined_call_operand.vmem [shape: f32[3,16], index: 7, kind: input, shape index: {}]   ;;  %s4874_s8 = inlined_call_operand.vmem [shape: f32[1,16], index: 8, kind: input, shape index: {}]   ;;  %s4875_s9 = inlined_call_operand.vmem [shape: f32[8,16], index: 9, kind: input, shape index: {}]   ;;  %s4876_s10 = inlined_call_operand.vmem [shape: f32[8,1], index: 10, kind: input, shape index: {}]   ;;  %s4877_s11 = inlined_call_operand.vmem [shape: f32[16,8], index: 11, kind: input, shape index: {}]   ;;  %s4878_s12 = inlined_call_operand.vmem [shape: f32[1,8], index: 12, kind: input, shape index: {}]   ;;  %s4879_s13 = inlined_call_operand.vmem [shape: f32[16,8], index: 13, kind: input, shape index: {}]   ;;  %s4880_s14 = inlined_call_operand.vmem [shape: f32[16,1], index: 14, kind: input, shape index: {}]   ;;  %s4881_s15 = inlined_call_operand.vmem [shape: f32[8,16], index: 15, kind: input, shape index: {}]   ;;  %s4882_s16 = inlined_call_operand.vmem [shape: f32[8,1], index: 16, kind: input, shape index: {}]   ;;  %s4883_s17 = inlined_call_operand.hbm [shape: f32[2,8,256], index: 17, kind: output, shape index: {0}]   ;;  %s4884_s18 = inlined_call_operand.hbm [shape: f32[2,8,256], index: 18, kind: output, shape index: {1}]  }
   0x1   :  { %4943 = sst [smem:[#allocation54_spill]] %s4866_s0 }
   0x2   :  { %4944 = sst [smem:[#allocation55_spill]] %s4867_s1 }
   0x3   :  { %4945 = sst [smem:[#allocation56_spill]] %s4868_s2 }
   0x4   :  { %4946 = sst [smem:[#allocation57_spill]] %s4869_s3 }
   0x5   :  { %4947 = sst [smem:[#allocation58_spill]] %s4870_s4 }
   0x6   :  { %4948 = sst [smem:[#allocation59_spill]] %s4871_s5 }
   0x7   :  { %4949 = sst [smem:[#allocation60_spill]] %s4872_s6 }
   0x8   :  { %4950 = sst [smem:[#allocation61_spill]] %s4873_s7 }
   0x9   :  { %4951 = sst [smem:[#allocation62_spill]] %s4876_s10 }
   0xa   :  { %4952 = sst [smem:[#allocation63_spill]] %s4883_s17 }
   0xb   :  { %4953 = sst [smem:[#allocation64_spill]] %s4884_s18 }
   0xc   :  { %24 = vsyncpa [#allocation4], 0 }
   0xd   :  { %25 = vsyncpa [#allocation6], 0 }
   0xe   :  { %26 = vsyncpa [#allocation3], 0 }
   0xf   :  { %28 = vsyncpa [#allocation3 + $0x1], 0 }
  0x10   :  { %29 = vsyncpa [#allocation9], 0 }
  0x11   :  { %31 = vsyncpa [#allocation9 + $0x1], 0  ;;  %s3343_s27 = smov 0   ;;  %s3345_s28 = smov 0  }
  0x12   :  { %s3347_s29 = smov 0   ;;  %s3349_s30 = smov 0  }
  0x13 LB: > { %4954 = sst [smem:[#allocation14_spill]] %s3224_s27  ;;  %s3364_s0 = sadd.s32 4294967295, %s3236_s30   ;;  %s3236_s30 = sphi %s3349_s30, %s5075_s30   ;;  %s3232_s29 = sphi %s3347_s29, %s5077_s29   ;;  %s3228_s28 = sphi %s3345_s28, %s5079_s28   ;;  %s3224_s27 = sphi %s3343_s27, %s5078_s27  }
  0x14   : > { %4955 = sst [smem:[#allocation15_spill]] %s3232_s29  ;;  %s2681_s19 = sadd.s32 4294967294, %s3236_s30  }
  0x15   : > { %4956 = sst [smem:[#allocation16_spill]] %s3236_s30  ;;  %s3368_s1 = sadd.s32 1, %s3236_s30  }
  0x16   : > { %4957 = sst [smem:[#allocation17_spill]] %s3368_s1  ;;  %s411_s20 = sadd.s32 1, %s3232_s29 }
  0x17   : > { %s408_s21 = ssub.s32 %s3236_s30, %s3368_s1  ;;  %p421_p0 = scmp.ne.s32.totalorder %s3232_s29, %s3228_s28 }
  0x18   : > { %p409_p1 = scmp.eq.s32.totalorder %s408_s21, 0  ;;  %p422_p2 = scmp.eq.s32.totalorder %s3364_s0, 1 }
  0x19   : > { %p427_p3 = scmp.ne.s32.totalorder %s3228_s28, %s3224_s27  ;;  %p428_p4 = scmp.eq.s32.totalorder %s2681_s19, 1 }
  0x1a   : > { %s3379_s22 = scalar_select %p409_p1, %s3232_s29, %s411_s20  }
  0x1b   : > { %p3381_p5 = por %p422_p2, %p421_p0  ;;  %p3385_p6 = por %p428_p4, %p427_p3 }
  0x1c   : > { %4958 = sst [smem:[#allocation18_spill]] %s3379_s22  ;;  %p2682_p7 = scmp.ge.s32.totalorder %s3236_s30, 1 }
  0x1d   : > { %s4960_s23 = scalar_select %p3385_p6, 1, 0 }
  0x1e   : > { %p461_p8 = scmp.lt.s32.totalorder %s3236_s30, 3  ;;  %p2913_p9 = scmp.eq.s32.totalorder %s3364_s0, 0 }
  0x1f   : > { %4961 = sst [smem:[#allocation19_spill]] %s4960_s23  ;;  %s3238_s1 = smov [#allocation2]  }
  0x20   : > { %p462_p10 = pnand %p2682_p7, %p461_p8  ;;  %s4962_s26 = sld [smem:[#allocation54_spill]] }
  0x21   : > { %s4963_s22 = sld [smem:[#allocation55_spill]]  ;;  %s3239_s23 = smov [#allocation5]  }
  0x22   : > { %p2899_p11 = pneg %p462_p10 }
  0x24   : > { %p2900_p12 = pnand %p2913_p9, %p2899_p11 }
  0x25   : > { %550 = sbr.rel (%p462_p10) target bundleno = 1385 (0x569), region = 88 }
  0x26   : > { %s473_s21 = sshll.u32 %s4962_s26, 4  ;;  %s474_s21 = int_to_ptr.vmem [resolvable:$true] %s473_s21 }
  0x27   : > { %s483_s29 = sshll.u32 %s4963_s22, 4  ;;  %s484_s29 = int_to_ptr.vmem [resolvable:$true] %s483_s29 }
  0x28   : > { %2902 = dma.vmem_to_smem (!%p2900_p12), %s474_s21, 16, %s3238_s1, [#allocation4]  }
  0x29   : > { %2905 = dma.vmem_to_smem (!%p2900_p12), %s484_s29, 16, %s3239_s23, [#allocation6]  }
  0x2a   : > { %3207 = dma.done.wait (%p2913_p9), [#allocation4], 16  }
  0x2b   : > { %3209 = vsyncadd (%p2913_p9), [#allocation4], 4294967280 }
  0x2c   : > { %3211 = dma.done.wait (%p2913_p9), [#allocation6], 16  }
  0x2d   : > { %3213 = vsyncadd (%p2913_p9), [#allocation6], 4294967280 }
  0x2e   : > { %562 = sfence }
  0x2f   : > { %vm651_vm0 = vcmask 1042432   ;;  %s4964_s7 = sld [smem:[#allocation61_spill]]  ;;  %p620_p13 = scmp.lt.s32.totalorder %s3364_s0, 1  ;;  %v4908_v3 = vmov 0   ;;  %vm644_vm1 = vcmask 23552  }
  0x30   : > { %s4965_s6 = sld [smem:[#allocation60_spill]]  ;;  %s3420_s26 = smul.u32 18, %s3364_s0  ;;  %2960 = vset.pattern.permute.xlu0 %v4908_v3  ;;  %2961 = vset.pattern.permute.xlu1 %v4908_v3 }
  0x31   : > { %s4966_s10 = sld [smem:[#allocation62_spill]]  ;;  %s3427_s20 = smul.u32 6, %s3364_s0  ;;  %2962 = vset.pattern.permute.xlu2 %v4908_v3 }
  0x32   : > { %s621_s19 = scalar_select %p620_p13, %s3364_s0, 1 }
  0x33   : > { %s1080_s22 = sld [smem:[#allocation2 + %s3420_s26]]  ;;  %s1083_s18 = sadd.s32 2, %s3420_s26 }
  0x34   : > { %s2691_s24 = sshll.u32 %s621_s19, 2  ;;  %s2764_s29 = sshll.u32 %s621_s19, 6 }
  0x35   : > { %v719_v0 = vld [vmem:[%s4964_s7] sm:$0x7]  ;;  %s4967_s3 = sld [smem:[#allocation57_spill]]  ;;  %s1081_s19 = sadd.s32 1, %s3420_s26 }
  0x36   : > { %2698 = vmatpush.msk.msra.mxu2 %vm651_vm0, %v719_v0  ;;  %v632_v1 = vld [vmem:[%s4965_s6] sm:$0xff]  ;;  %s4968_s4 = sld [smem:[#allocation58_spill]]  ;;  %s1085_s7 = sadd.s32 3, %s3420_s26  ;;  %v633_v7 = vld [vmem:[%s4965_s6 + $0x8] sm:$0xff] }
  0x37   : > { %v681_v2 = vld [vmem:[%s4966_s10] sm:$0xff]  ;;  %636 = vperm.xlu0 %2960, %v632_v1   ;;  %s4969_s5 = sld [smem:[#allocation59_spill]]  ;;  %s1087_s30 = sadd.s32 4, %s3420_s26 }
  0x38   : > { %684 = vperm.xlu1 %2961, %v681_v2   ;;  %s1084_s27 = sld [smem:[#allocation2 + %s1083_s18]]  ;;  %s1091_s18 = sadd.s32 6, %s3420_s26 }
  0x39   : > { %v3459_v9 = vstv %s1080_s22  ;;  %s3466_s21 = sld [smem:[#allocation2 + %s1087_s30]]  ;;  %s1093_s22 = sadd.s32 7, %s3420_s26 }
  0x3a   : > { %s1095_s6 = sadd.s32 8, %s3420_s26  ;;  %s3503_s17 = sld [smem:[#allocation2 + %s1093_s22]] }
  0x3b   : > { %s623_s25 = scalar_lea.vmem %s4967_s3, %s2691_s24  ;;  %s1082_s24 = sld [smem:[#allocation2 + %s1081_s19]] }
  0x3c   : > { %s3437_s10 = scalar_lea.vmem %s4968_s4, %s2764_s29  ;;  %v629_v5 = vld [vmem:[%s623_s25] sm:$0x7]  ;;  %s4970_s25 = sld [smem:[#allocation56_spill]] }
  0x3d   : > { %v630_v4 = vld [vmem:[%s4969_s5] sm:$0xff]  ;;  %2694 = vmatpush.msk.msra.mxu0 %vm651_vm0, %v629_v5  ;;  %s1086_s3 = sld [smem:[#allocation2 + %s1085_s7]]  ;;  %s1089_s4 = sadd.s32 5, %s3420_s26  ;;  %v712_v13 = vld [vmem:[%s3437_s10 + $0x8] sm:$0xff]  ;;  %v713_v42 = vld [vmem:[%s3437_s10 + $0x10] sm:$0xff] }
  0x3e   : > { %v711_v6 = vld [vmem:[%s3437_s10] sm:$0xff]  ;;  %2695 = vmatmul.msk.f32.vlgmr.msra.gmra.mxu0 %vm644_vm1, %v630_v4  ;;  %s3474_s7 = sld [smem:[#allocation2 + %s1089_s4]]  ;;  %v631_v18 = vld [vmem:[%s4969_s5 + $0x8] sm:$0xff]  ;;  %s1100_s30 = sadd.s32 2, %s3427_s20  ;;  %v3513_v21 = vstv %s1084_s27 }
  0x3f   : > { %2699 = vmatmul.msk.f32.vlgmr.msra.gmra.mxu2 %vm644_vm1, %v711_v6  ;;  %641 = vperm.xlu0 %2960, %v633_v7   ;;  %s3488_s19 = sld [smem:[#allocation2 + %s1091_s18]]  ;;  %s1098_s18 = sadd.s32 1, %s3427_s20  ;;  %v3537_v28 = vstv %s3466_s21 }
  0x40   : > { %s3508_s26 = sld [smem:[#allocation2 + %s1095_s6]]  ;;  %v3565_v40 = vstv %s3503_s17 }
  0x41   : > { %v3506_v19 = vstv %s1082_s24  ;;  %s3519_s22 = sld [smem:[#allocation5 + %s3427_s20]]  ;;  %s4971_s24 = sshll.u32 %s3364_s0, 1 }
  0x42   : > { %v3456_v8 = vld [vmem:[%s4970_s25 + $0x10] sm:$0xff]  ;;  %v3464_v10 = vld [vmem:[%s4970_s25] sm:$0xff]  ;;  %s3529_s27 = sadd.s32 1, %s4971_s24  ;;  %s3532_s6 = sld [smem:[#allocation5 + %s1098_s18]] }
  0x43   : > { %v3472_v11 = vld [vmem:[%s4970_s25 + $0x30] sm:$0xff]  ;;  %v3480_v12 = vld [vmem:[%s4970_s25 + $0x20] sm:$0xff]  ;;  %v1105_v15 = vmul.f32 %v3459_v9, %v3456_v8  ;;  %v1103_v17 = vmul.f32 %v3459_v9, %v3464_v10  ;;  %v3523_v24 = vstv %s1086_s3  ;;  %s3540_s3 = smul.u32 9, %s3529_s27  ;;  %s3542_s20 = sld [smem:[#allocation5 + %s1100_s30]] }
  0x44   : > { %v3486_v14 = vld [vmem:[%s4970_s25 + $0x50] sm:$0xff]  ;;  %v3496_v16 = vld [vmem:[%s4970_s25 + $0x40] sm:$0xff]  ;;  %v1110_v20 = vmul.f32 %v3472_v11, %v3506_v19  ;;  %v1108_v22 = vmul.f32 %v3480_v12, %v3506_v19  ;;  %v1133_v27 = vmul.f32 %v3523_v24, %v3456_v8  ;;  %v1138_v30 = vmul.f32 %v3472_v11, %v3537_v28  ;;  %s3611_s17 = smul.u32 3, %s3529_s27 }
  0x45   : > { %v1119_v23 = vmul.f32 %v3486_v14, %v3513_v21  ;;  %v1117_v25 = vmul.f32 %v3496_v16, %v3513_v21  ;;  %v3547_v31 = vstv %s3474_s7  ;;  %v1131_v32 = vmul.f32 %v3523_v24, %v3464_v10  ;;  %s3559_s21 = sld [smem:[#allocation2 + %s3540_s3]]  ;;  %s1275_s4 = sadd.s32 1, %s3540_s3 }
  0x46   : > { %2696 = vmatmul.msk.f32.gmra.mxu0 %vm644_vm1, %v631_v18  ;;  %v1114_v26 = vadd.f32 %v1110_v20, %v1105_v15  ;;  %v1112_v29 = vadd.f32 %v1108_v22, %v1103_v17  ;;  %v1136_v33 = vmul.f32 %v3480_v12, %v3537_v28  ;;  %v1147_v35 = vmul.f32 %v3486_v14, %v3547_v31  ;;  %s1276_s7 = sld [smem:[#allocation2 + %s1275_s4]]  ;;  %s1279_s29 = sadd.s32 3, %s3540_s3  ;;  %v3608_v17 = vld [vmem:[%s4970_s25 + $0x8] sm:$0xff]  ;;  %v714_v18 = vld [vmem:[%s3437_s10 + $0x18] sm:$0xff] }
  0x47   : > { %2700 = vmatmul.msk.f32.gmra.mxu2 %vm644_vm1, %v712_v13  ;;  %v3556_v36 = vstv %s3488_s19  ;;  %v1142_v38 = vadd.f32 %v1138_v30, %v1133_v27  ;;  %v1166_v43 = vmul.f32 %v3472_v11, %v3565_v40  ;;  %v3571_v44 = vstv %s3508_s26  ;;  %s1277_s19 = sadd.s32 2, %s3540_s3  ;;  %s1281_s18 = sadd.s32 4, %s3540_s3 }
  0x48   : > { %v1123_v34 = vadd.f32 %v1119_v23, %v1114_v26  ;;  %v1121_v37 = vadd.f32 %v1117_v25, %v1112_v29  ;;  %v1161_v39 = vmul.f32 %v3556_v36, %v3456_v8  ;;  %v1140_v41 = vadd.f32 %v1136_v33, %v1131_v32  ;;  %s3615_s26 = sld [smem:[#allocation2 + %s1277_s19]]  ;;  %s1285_s27 = sadd.s32 6, %s3540_s3 }
  0x49   : > { %v1145_v45 = vmul.f32 %v3496_v16, %v3547_v31  ;;  %v1159_v46 = vmul.f32 %v3556_v36, %v3464_v10  ;;  %v3578_v47 = vstv %s3519_s22  ;;  %v1151_v48 = vadd.f32 %v1147_v35, %v1142_v38  ;;  %s3618_s30 = sld [smem:[#allocation2 + %s1279_s29]]  ;;  %s1283_s22 = sadd.s32 5, %s3540_s3 }
  0x4a   : > { %v1175_v49 = vmul.f32 %v3486_v14, %v3571_v44  ;;  %v1164_v50 = vmul.f32 %v3480_v12, %v3565_v40  ;;  %v1128_v51 = vadd.f32 %v3578_v47, %v1123_v34  ;;  %v3586_v52 = vstv %s3532_s6  ;;  %s3621_s24 = sld [smem:[#allocation2 + %s1281_s18]]  ;;  %s1287_s4 = sadd.s32 7, %s3540_s3 }
  0x4b   : > { %v1170_v53 = vadd.f32 %v1166_v43, %v1161_v39  ;;  %v1126_v54 = vadd.f32 %v3578_v47, %v1121_v37  ;;  %v1156_v55 = vadd.f32 %v3586_v52, %v1151_v48  ;;  %v3592_v56 = vstv %s3542_s20  ;;  %s3629_s6 = sld [smem:[#allocation5 + %s3611_s17]]  ;;  %s1292_s20 = sadd.s32 1, %s3611_s17 }
  0x4c   : > { %v1149_v57 = vadd.f32 %v1145_v45, %v1140_v41  ;;  %v1168_v58 = vadd.f32 %v1164_v50, %v1159_v46  ;;  %v2725_v60 = vadd.f32 8.0, %v1128_v51  ;;  %v1173_v61 = vmul.f32 %v3496_v16, %v3571_v44  ;;  %v3642_v45 = vld [vmem:[%s4970_s25 + $0x28] sm:$0xff]  ;;  %s3644_s29 = sld [smem:[#allocation2 + %s1285_s27]]  ;;  %s1289_s1 = sadd.s32 8, %s3540_s3 }
  0x4d   : > { %v1179_v59 = vadd.f32 %v1175_v49, %v1170_v53  ;;  %v2723_v62 = vadd.f32 8.0, %v1126_v54  ;;  %v2729_v63 = vadd.f32 8.0, %v1156_v55  ;;  %v3599_v1 = vstv %s3559_s21  ;;  %s3632_s21 = sld [smem:[#allocation2 + %s1283_s22]]  ;;  %v3650_v51 = vld [vmem:[%s4970_s25 + $0x48] sm:$0xff]  ;;  %s1294_s5 = sadd.s32 2, %s3611_s17 }
  0x4e   : > { %v1154_v0 = vadd.f32 %v3586_v52, %v1149_v57  ;;  %v3601_v2 = vstv %s1276_s7  ;;  %vm2777_vm2 = vcmp.lt.s32.totalorder %v2725_v60, 0  ;;  %v2778_v5 = vceil.f32 %v2725_v60  ;;  %s3652_s22 = sld [smem:[#allocation5 + %s1292_s20]]  ;;  %v715_v57 = vld [vmem:[%s3437_s10 + $0x20] sm:$0xff] }
  0x4f   : > { %2701 = vmatmul.msk.f32.gmra.mxu2 %vm644_vm1, %v713_v42  ;;  %v1184_v4 = vadd.f32 %v3592_v56, %v1179_v59  ;;  %v2779_v6 = vfloor.f32 %v2725_v60  ;;  %vm2797_vm3 = vcmp.lt.s32.totalorder %v2729_v63, 0  ;;  %v2798_v7 = vceil.f32 %v2729_v63  ;;  %s3662_s3 = sld [smem:[#allocation2 + %s1287_s4]] }
  0x50   : > { %v2799_v13 = vfloor.f32 %v2729_v63  ;;  %v1177_v15 = vadd.f32 %v1173_v61, %v1168_v58  ;;  %vm2767_vm4 = vcmp.lt.s32.totalorder %v2723_v62, 0  ;;  %v2768_v23 = vceil.f32 %v2723_v62  ;;  %s3666_s27 = sld [smem:[#allocation2 + %s1289_s1]]  ;;  %s2765_s1 = sshll.u32 %s3364_s0, 4 }
  0x51   : > { %v2780_v20 = vsel %vm2777_vm2, %v2778_v5, %v2779_v6  ;;  %v2733_v22 = vadd.f32 10.0, %v1184_v4  ;;  %v2769_v29 = vfloor.f32 %v2723_v62  ;;  %v2727_v33 = vadd.f32 8.0, %v1154_v0  ;;  %s3677_s17 = sld [smem:[#allocation5 + %s1294_s5]] }
  0x52   : > { %v2781_v25 = vcvt.f32.s32 %v2780_v20  ;;  %v2800_v26 = vsel %vm2797_vm3, %v2798_v7, %v2799_v13  ;;  %v1182_v27 = vadd.f32 %v3592_v56, %v1177_v15  ;;  %v1298_v34 = vmul.f32 %v3599_v1, %v3608_v17 }
  0x53   : > { %v2801_v30 = vcvt.f32.s32 %v2800_v26  ;;  %v1208_v32 = vmul.f32 0.05, %v2733_v22  ;;  %v2770_v37 = vsel %vm2767_vm4, %v2768_v23, %v2769_v29  ;;  %vm2787_vm12 = vcmp.lt.s32.totalorder %v2727_v33, 0 }
  0x54   : > { %vm1216_vm5 = vcmp.ge.s32.totalorder %v2781_v25, 0  ;;  %vm1220_vm6 = vcmp.lt.s32.totalorder %v2781_v25, 16  ;;  %v1260_v35 = vmul.u32 16, %v2781_v25  ;;  %v2771_v43 = vcvt.f32.s32 %v2770_v37 }
  0x55   : > { %vm2817_vm7 = vcmp.lt.s32.totalorder %v1208_v32, 0  ;;  %v2818_v38 = vceil.f32 %v1208_v32  ;;  %v2819_v39 = vfloor.f32 %v1208_v32  ;;  %vm1224_vm8 = vmand %vm1216_vm5, %vm1220_vm6  ;;  %vm1228_vm9 = vcmp.ge.s32.totalorder %v2801_v30, 0 }
  0x56   : > { %vm3635_vm10 = vmand %vm1224_vm8, %vm1228_vm9  ;;  %vm1236_vm11 = vcmp.lt.s32.totalorder %v2801_v30, 16  ;;  %v1264_v42 = vadd.s32 %v2801_v30, %v1260_v35  ;;  %v2788_v48 = vceil.f32 %v2727_v33  ;;  %v2789_v49 = vfloor.f32 %v2727_v33 }
  0x57   : > { %2702 = vmatmul.msk.f32.gmra.mxu2 %vm644_vm1, %v714_v18  ;;  %v2820_v46 = vsel %vm2817_vm7, %v2818_v38, %v2819_v39  ;;  %v2731_v50 = vadd.f32 10.0, %v1182_v27  ;;  %vm3658_vm13 = vmand %vm3635_vm10, %vm1236_vm11  ;;  %vm1214_vm14 = vcmp.ge.s32.totalorder %v2771_v43, 0  ;;  %vm1218_vm15 = vcmp.lt.s32.totalorder %v2771_v43, 16 }
  0x58   : > { %v2821_v53 = vcvt.f32.s32 %v2820_v46  ;;  %v1258_v55 = vmul.u32 16, %v2771_v43  ;;  %v2790_v58 = vsel %vm2787_vm12, %v2788_v48, %v2789_v49  ;;  %v1303_v60 = vmul.f32 %v3642_v45, %v3601_v2  ;;  %vm3673_vm3 = vmand %vm1214_vm14, %vm1218_vm15  ;;  %v716_v43 = vld [vmem:[%s3437_s10 + $0x28] sm:$0xff] }
  0x59   : > { %v1206_v59 = vmul.f32 0.05, %v2731_v50  ;;  %v3671_v61 = vstv %s3615_s26  ;;  %v2791_v62 = vcvt.f32.s32 %v2790_v58  ;;  %v3685_v13 = vstv %s3629_s6  ;;  %s4783_s26 = sand.u32 1, %s3228_s28  }
  0x5a   : > { %vm1244_vm0 = vcmp.ge.s32.totalorder %v2821_v53, 0  ;;  %vm1252_vm2 = vcmp.lt.s32.totalorder %v2821_v53, 1  ;;  %v1312_v0 = vmul.f32 %v3650_v51, %v3671_v61  ;;  %v1307_v6 = vadd.f32 %v1303_v60, %v1298_v34  ;;  %s2519_s5 = scalar_lea.sflag [#allocation3], %s4783_s26 }
  0x5b   : > { %vm1248_vm4 = vmand %vm3658_vm13, %vm1244_vm0  ;;  %vm2807_vm5 = vcmp.lt.s32.totalorder %v1206_v59, 0  ;;  %v2808_v4 = vceil.f32 %v1206_v59  ;;  %v2809_v5 = vfloor.f32 %v1206_v59  ;;  %vm1226_vm7 = vcmp.ge.s32.totalorder %v2791_v62, 0 }
  0x5c   : > { %vm1256_vm6 = vmand %vm1248_vm4, %vm1252_vm2  ;;  %vm1234_vm8 = vcmp.lt.s32.totalorder %v2791_v62, 16  ;;  %v1262_v7 = vadd.s32 %v2791_v62, %v1258_v55  ;;  %v1316_v20 = vadd.f32 %v1312_v0, %v1307_v6  ;;  %v3692_v22 = vstv %s3618_s30  ;;  %s2689_s30 = sshll.u32 %s4783_s26, 4 }
  0x5d   : > { %v3687_v15 = vsel %vm1256_vm6, %v1264_v42, 4294967295  ;;  %v2810_v18 = vsel %vm2807_vm5, %v2808_v4, %v2809_v5  ;;  %vm1230_vm9 = vmand %vm3673_vm3, %vm1226_vm7  ;;  %v1326_v26 = vmul.f32 %v3692_v22, %v3608_v17  ;;  %v3702_v27 = vstv %s3621_s24  ;;  %s4791_s20 = scalar_lea.vmem [#allocation7], %s2689_s30 }
  0x5e   : > { %1473 = vperm.xlu1 %2961, %v3687_v15   ;;  %v2811_v23 = vcvt.f32.s32 %v2810_v18  ;;  %vm3695_vm10 = vmand %vm1230_vm9, %vm1234_vm8  ;;  %v3705_v29 = vstv %s3632_s21  ;;  %v1321_v30 = vadd.f32 %v3685_v13, %v1316_v20  ;;  %v1331_v32 = vmul.f32 %v3642_v45, %v3702_v27 }
  0x5f   : > { %2703 = vmatmul.msk.f32.gmra.mxu2 %vm644_vm1, %v715_v57  ;;  %v1340_v33 = vmul.f32 %v3650_v51, %v3705_v29  ;;  %v3713_v34 = vstv %s3652_s22  ;;  %v3716_v35 = vstv %s3644_s29  ;;  %v3719_v37 = vstv %s3662_s3  ;;  %s5070_s22 = sld [smem:[#allocation63_spill]] }
  0x60   : > { %vm1242_vm11 = vcmp.ge.s32.totalorder %v2811_v23, 0  ;;  %vm1250_vm12 = vcmp.lt.s32.totalorder %v2811_v23, 1  ;;  %v1335_v38 = vadd.f32 %v1331_v32, %v1326_v26  ;;  %v1354_v39 = vmul.f32 %v3716_v35, %v3608_v17 }
  0x61   : > { %vm1246_vm13 = vmand %vm3695_vm10, %vm1242_vm11  ;;  %v1359_v41 = vmul.f32 %v3642_v45, %v3719_v37  ;;  %v3728_v42 = vstv %s3666_s27  ;;  %v3734_v48 = vstv %s3677_s17  ;;  %v2737_v49 = vadd.f32 8.0, %v1321_v30  ;;  %s2537_s27 = sshll.u32 %s4791_s20, 4  ;;  %s2538_s27 = int_to_ptr.vmem [resolvable:$true] %s2537_s27 }
  0x62   : > { %vm1254_vm14 = vmand %vm1246_vm13, %vm1250_vm12  ;;  %v1368_v46 = vmul.f32 %v3650_v51, %v3728_v42  ;;  %v1297_v50 = vmul.f32 %v3599_v1, %v3464_v10  ;;  %v1344_v54 = vadd.f32 %v1340_v33, %v1335_v38  ;;  %v1302_v57 = vmul.f32 %v3480_v12, %v3601_v2 }
  0x63   : > { %v3738_v53 = vsel %vm1254_vm14, %v1262_v7, 4294967295  ;;  %v1363_v55 = vadd.f32 %v1359_v41, %v1354_v39  ;;  %vm2832_vm15 = vcmp.lt.s32.totalorder %v2737_v49, 0  ;;  %v2833_v58 = vceil.f32 %v2737_v49 }
  0x64   : > { %1467 = vperm.xlu2 %2962, %v3738_v53   ;;  %v2834_v59 = vfloor.f32 %v2737_v49  ;;  %v1311_v60 = vmul.f32 %v3496_v16, %v3671_v61  ;;  %v1349_v62 = vadd.f32 %v3713_v34, %v1344_v54  ;;  %v1306_v0 = vadd.f32 %v1302_v57, %v1297_v50 }
  0x65   : > { %v1372_v63 = vadd.f32 %v1368_v46, %v1363_v55  ;;  %v1325_v4 = vmul.f32 %v3692_v22, %v3464_v10  ;;  %v1330_v6 = vmul.f32 %v3480_v12, %v3702_v27  ;;  %v1339_v7 = vmul.f32 %v3496_v16, %v3705_v29  ;;  %s2535_s3 = scalar_lea.hbm %s5070_s22, %s2765_s1  ;;  %s3154_s4 = scalar_lea.hbm %s5070_s22, 32 }
  0x66   : > { %v2835_v5 = vsel %vm2832_vm15, %v2833_v58, %v2834_v59  ;;  %v1353_v18 = vmul.f32 %v3716_v35, %v3464_v10  ;;  %v2741_v25 = vadd.f32 8.0, %v1349_v62  ;;  %v1315_v26 = vadd.f32 %v1311_v60, %v1306_v0  ;;  %v717_v59 = vld [vmem:[%s3437_s10 + $0x30] sm:$0xff]  ;;  %s2539_s17 = sshll.u32 %s2535_s3, 4  ;;  %s2540_s17 = int_to_ptr.hbm [resolvable:$true] %s2539_s17 }
  0x67   : > { %2704 = vmatmul.msk.f32.gmra.mxu2 %vm644_vm1, %v716_v43  ;;  %v1377_v20 = vadd.f32 %v3734_v48, %v1372_v63  ;;  %v2836_v23 = vcvt.f32.s32 %v2835_v5  ;;  %v1334_v30 = vadd.f32 %v1330_v6, %v1325_v4  ;;  %v1358_v32 = vmul.f32 %v3480_v12, %v3719_v37  ;;  %s3148_s24 = sshra.s32 %s2540_s17, 4  ;;  %s3149_s24 = int_to_ptr.hbm [resolvable:$true] %s3148_s24 }
  0x68   : > { %v1367_v33 = vmul.f32 %v3496_v16, %v3728_v42  ;;  %vm2852_vm0 = vcmp.lt.s32.totalorder %v2741_v25, 0  ;;  %v2853_v38 = vceil.f32 %v2741_v25  ;;  %v2854_v39 = vfloor.f32 %v2741_v25  ;;  %s3150_s6 = scalar_lea.hbm %s3149_s24, 16  ;;  %p3155_p3 = scmp.lt.s32.totalorder %s3149_s24, %s5070_s22 }
  0x69   : > { %v2745_v41 = vadd.f32 10.0, %v1377_v20  ;;  %vm1409_vm2 = vcmp.ge.s32.totalorder %v2836_v23, 0  ;;  %vm1413_vm3 = vcmp.lt.s32.totalorder %v2836_v23, 16  ;;  %v1453_v10 = vmul.u32 16, %v2836_v23  ;;  %p3151_p0 = scmp.ne.s32.totalorder %s3149_s24, %s3150_s6  ;;  %p3156_p4 = scmp.lt.s32.totalorder %s3154_s4, %s3150_s6 }
  0x6a   : > { %v1320_v43 = vadd.f32 %v3685_v13, %v1315_v26  ;;  %v2855_v46 = vsel %vm2852_vm0, %v2853_v38, %v2854_v39  ;;  %v1343_v50 = vadd.f32 %v1339_v7, %v1334_v30  ;;  %v1362_v54 = vadd.f32 %v1358_v32, %v1353_v18  ;;  %vm3761_vm4 = vmand %vm1409_vm2, %vm1413_vm3 }
  0x6b   : > { %v1401_v49 = vmul.f32 0.05, %v2745_v41  ;;  %v2856_v55 = vcvt.f32.s32 %v2855_v46  ;;  %v1104_v57 = vmul.f32 %v3459_v9, %v3608_v17  ;;  %v1109_v58 = vmul.f32 %v3642_v45, %v3506_v19  ;;  %p3152_p1 = pnand %p3151_p0, %p3381_p5  ;;  %p3157_p7 = por %p3156_p4, %p3155_p3 }
  0x6c   : > { %v2736_v16 = vadd.f32 8.0, %v1320_v43  ;;  %v1348_v63 = vadd.f32 %v3713_v34, %v1343_v50  ;;  %v1371_v4 = vadd.f32 %v1367_v33, %v1362_v54  ;;  %v1118_v32 = vmul.f32 %v3650_v51, %v3513_v21 }
  0x6d   : > { %vm2872_vm5 = vcmp.lt.s32.totalorder %v1401_v49, 0  ;;  %v2873_v60 = vceil.f32 %v1401_v49  ;;  %v2874_v62 = vfloor.f32 %v1401_v49  ;;  %vm1421_vm6 = vcmp.ge.s32.totalorder %v2856_v55, 0  ;;  %p3153_p2 = pneg %p3152_p1 }
  0x6e   : > { %vm1429_vm7 = vcmp.lt.s32.totalorder %v2856_v55, 16  ;;  %v1457_v0 = vadd.s32 %v2856_v55, %v1453_v10  ;;  %vm1425_vm8 = vmand %vm3761_vm4, %vm1421_vm6  ;;  %vm2827_vm9 = vcmp.lt.s32.totalorder %v2736_v16, 0  ;;  %v2828_v6 = vceil.f32 %v2736_v16 }
  0x6f   : > { %2705 = vmatmul.msk.f32.gmra.mxu2 %vm644_vm1, %v717_v59  ;;  %v2875_v5 = vsel %vm2872_vm5, %v2873_v60, %v2874_v62  ;;  %v2829_v7 = vfloor.f32 %v2736_v16  ;;  %vm3774_vm10 = vmand %vm1425_vm8, %vm1429_vm7  ;;  %v1376_v23 = vadd.f32 %v3734_v48, %v1371_v4  ;;  %v2740_v25 = vadd.f32 8.0, %v1348_v63  ;;  %v3804_v63 = vld [vmem:[%s4970_s25 + $0x18] sm:$0xff]  ;;  %p3158_p8 = pnand %p3157_p7, %p3153_p2 }
  0x70   : > { %v2876_v18 = vcvt.f32.s32 %v2875_v5  ;;  %v1113_v26 = vadd.f32 %v1109_v58, %v1104_v57  ;;  %v1132_v33 = vmul.f32 %v3523_v24, %v3608_v17  ;;  %v1137_v38 = vmul.f32 %v3642_v45, %v3537_v28 }
  0x71   : > { %v2830_v30 = vsel %vm2827_vm9, %v2828_v6, %v2829_v7  ;;  %vm2847_vm13 = vcmp.lt.s32.totalorder %v2740_v25, 0  ;;  %v2848_v41 = vceil.f32 %v2740_v25  ;;  %v2849_v10 = vfloor.f32 %v2740_v25  ;;  %v3811_v6 = vld [vmem:[%s4970_s25 + $0x38] sm:$0xff] }
  0x72   : > { %vm1437_vm11 = vcmp.ge.s32.totalorder %v2876_v18, 0  ;;  %vm1445_vm12 = vcmp.lt.s32.totalorder %v2876_v18, 1  ;;  %v2831_v39 = vcvt.f32.s32 %v2830_v30  ;;  %v2744_v43 = vadd.f32 10.0, %v1376_v23  ;;  %v718_v18 = vld [vmem:[%s3437_s10 + $0x38] sm:$0xff] }
  0x73   : > { %vm1441_vm14 = vmand %vm3774_vm10, %vm1437_vm11  ;;  %v1122_v46 = vadd.f32 %v1118_v32, %v1113_v26  ;;  %v1141_v50 = vadd.f32 %v1137_v38, %v1132_v33  ;;  %v2850_v55 = vsel %vm2847_vm13, %v2848_v41, %v2849_v10  ;;  %v1146_v59 = vmul.f32 %v3650_v51, %v3547_v31 }
  0x74   : > { %vm1449_vm15 = vmand %vm1441_vm14, %vm1445_vm12  ;;  %vm1408_vm0 = vcmp.ge.s32.totalorder %v2831_v39, 0  ;;  %vm1412_vm2 = vcmp.lt.s32.totalorder %v2831_v39, 16  ;;  %v1452_v49 = vmul.u32 16, %v2831_v39  ;;  %v1400_v12 = vmul.f32 0.05, %v2744_v43 }
  0x75   : > { %v3787_v54 = vsel %vm1449_vm15, %v1457_v0, 4294967295  ;;  %v1127_v16 = vadd.f32 %v3578_v47, %v1122_v46  ;;  %v2851_v57 = vcvt.f32.s32 %v2850_v55  ;;  %vm3791_vm3 = vmand %vm1408_vm0, %vm1412_vm2  ;;  %v1160_v60 = vmul.f32 %v3556_v36, %v3608_v17  ;;  %v3816_v17 = vld [vmem:[%s4970_s25 + $0x58] sm:$0xff] }
  0x76   : > { %1482 = vperm.xlu1 %2961, %v3787_v54   ;;  %v1165_v62 = vmul.f32 %v3642_v45, %v3565_v40  ;;  %vm2867_vm4 = vcmp.lt.s32.totalorder %v1400_v12, 0  ;;  %v2868_v0 = vceil.f32 %v1400_v12  ;;  %v2869_v4 = vfloor.f32 %v1400_v12 }
  0x77   : > { %v1174_v5 = vmul.f32 %v3650_v51, %v3571_v44  ;;  %vm1420_vm5 = vcmp.ge.s32.totalorder %v2851_v57, 0  ;;  %vm1428_vm6 = vcmp.lt.s32.totalorder %v2851_v57, 16  ;;  %v1456_v45 = vadd.s32 %v2851_v57, %v1452_v49  ;;  %2706 = vmatmul.msk.f32.gmra.mxu2 %vm644_vm1, %v718_v18 }
  0x78   : > { %v1150_v7 = vadd.f32 %v1146_v59, %v1141_v50  ;;  %v2870_v20 = vsel %vm2867_vm4, %v2868_v0, %v2869_v4  ;;  %vm1424_vm7 = vmand %vm3791_vm3, %vm1420_vm5  ;;  %v1169_v51 = vadd.f32 %v1165_v62, %v1160_v60  ;;  %v2724_v23 = vadd.f32 8.0, %v1127_v16 }
  0x79   : > { %v1300_v25 = vmul.f32 %v3599_v1, %v3804_v63  ;;  %v2871_v26 = vcvt.f32.s32 %v2870_v20  ;;  %vm3824_vm8 = vmand %vm1424_vm7, %vm1428_vm6  ;;  %v1305_v33 = vmul.f32 %v3811_v6, %v3601_v2  ;;  %v1314_v38 = vmul.f32 %v3816_v17, %v3671_v61 }
  0x7a   : > { %v1155_v32 = vadd.f32 %v3586_v52, %v1150_v7  ;;  %v1178_v39 = vadd.f32 %v1174_v5, %v1169_v51  ;;  %vm2772_vm9 = vcmp.lt.s32.totalorder %v2724_v23, 0  ;;  %v2773_v41 = vceil.f32 %v2724_v23 }
  0x7b   : > { %v2774_v10 = vfloor.f32 %v2724_v23  ;;  %vm1436_vm10 = vcmp.ge.s32.totalorder %v2871_v26, 0  ;;  %vm1444_vm11 = vcmp.lt.s32.totalorder %v2871_v26, 1  ;;  %v1309_v46 = vadd.f32 %v1305_v33, %v1300_v25 }
  0x7c   : > { %v2728_v43 = vadd.f32 8.0, %v1155_v32  ;;  %vm1440_vm1 = vmand %vm3824_vm8, %vm1436_vm10  ;;  %v1183_v49 = vadd.f32 %v3592_v56, %v1178_v39  ;;  %v1328_v55 = vmul.f32 %v3692_v22, %v3804_v63  ;;  %v1333_v12 = vmul.f32 %v3811_v6, %v3702_v27 }
  0x7d   : > { %v2775_v50 = vsel %vm2772_vm9, %v2773_v41, %v2774_v10  ;;  %vm1448_vm12 = vmand %vm1440_vm1, %vm1444_vm11  ;;  %v4902_v16 = vmov 1   ;;  %v1318_v0 = vadd.f32 %v1314_v38, %v1309_v46  ;;  %v1342_v23 = vmul.f32 %v3816_v17, %v3705_v29 }
  0x7e   : > { %2964 = vset.pattern.permute.xlu1 %v4902_v16  ;;  %v2776_v57 = vcvt.f32.s32 %v2775_v50  ;;  %vm2792_vm13 = vcmp.lt.s32.totalorder %v2728_v43, 0  ;;  %v2793_v58 = vceil.f32 %v2728_v43  ;;  %v2794_v59 = vfloor.f32 %v2728_v43 }
  0x7f   : > { %v3841_v60 = vsel %vm1448_vm12, %v1456_v45, 4294967295  ;;  %v2732_v62 = vadd.f32 10.0, %v1183_v49  ;;  %v1337_v4 = vadd.f32 %v1333_v12, %v1328_v55  ;;  %v1323_v51 = vadd.f32 %v3685_v13, %v1318_v0 }
  0x80   : > { %1479 = vperm.xlu2 %2962, %v3841_v60   ;;  %v2795_v5 = vsel %vm2792_vm13, %v2793_v58, %v2794_v59  ;;  %vm1215_vm14 = vcmp.ge.s32.totalorder %v2776_v57, 0  ;;  %vm1219_vm15 = vcmp.lt.s32.totalorder %v2776_v57, 16  ;;  %v1259_v7 = vmul.u32 16, %v2776_v57 }
  0x81   : > { %v2796_v18 = vcvt.f32.s32 %v2795_v5  ;;  %v1207_v20 = vmul.f32 0.05, %v2732_v62  ;;  %vm1223_vm0 = vmand %vm1215_vm14, %vm1219_vm15  ;;  %v1356_v45 = vmul.f32 %v3716_v35, %v3804_v63  ;;  %v1361_v25 = vmul.f32 %v3811_v6, %v3719_v37 }
  0x82   : > { %v1370_v26 = vmul.f32 %v3816_v17, %v3728_v42  ;;  %v1299_v30 = vmul.f32 %v3599_v1, %v3456_v8  ;;  %v1346_v39 = vadd.f32 %v1342_v23, %v1337_v4  ;;  %v2739_v43 = vadd.f32 8.0, %v1323_v51 }
  0x83   : > { %vm2812_vm2 = vcmp.lt.s32.totalorder %v1207_v20, 0  ;;  %v2813_v32 = vceil.f32 %v1207_v20  ;;  %v2814_v33 = vfloor.f32 %v1207_v20  ;;  %vm1227_vm3 = vcmp.ge.s32.totalorder %v2796_v18, 0 }
  0x84   : > { %vm1231_vm4 = vmand %vm1223_vm0, %vm1227_vm3  ;;  %vm1235_vm5 = vcmp.lt.s32.totalorder %v2796_v18, 16  ;;  %v1263_v38 = vadd.s32 %v2796_v18, %v1259_v7  ;;  %v1365_v41 = vadd.f32 %v1361_v25, %v1356_v45  ;;  %v1304_v46 = vmul.f32 %v3472_v11, %v3601_v2 }
  0x85   : > { %v2815_v10 = vsel %vm2812_vm2, %v2813_v32, %v2814_v33  ;;  %v1313_v49 = vmul.f32 %v3486_v14, %v3671_v61  ;;  %vm3859_vm6 = vmand %vm1231_vm4, %vm1235_vm5  ;;  %v1351_v55 = vadd.f32 %v3713_v34, %v1346_v39  ;;  %v1327_v57 = vmul.f32 %v3692_v22, %v3456_v8 }
  0x86   : > { %v2816_v50 = vcvt.f32.s32 %v2815_v10  ;;  %v1374_v12 = vadd.f32 %v1370_v26, %v1365_v41  ;;  %vm2842_vm7 = vcmp.lt.s32.totalorder %v2739_v43, 0  ;;  %v2843_v58 = vceil.f32 %v2739_v43 }
  0x87   : > { %v2844_v59 = vfloor.f32 %v2739_v43  ;;  %v1308_v62 = vadd.f32 %v1304_v46, %v1299_v30  ;;  %v2743_v61 = vadd.f32 8.0, %v1351_v55  ;;  %v1332_v5 = vmul.f32 %v3472_v11, %v3702_v27 }
  0x88   : > { %vm1243_vm8 = vcmp.ge.s32.totalorder %v2816_v50, 0  ;;  %vm1251_vm9 = vcmp.lt.s32.totalorder %v2816_v50, 1  ;;  %v1379_v2 = vadd.f32 %v3734_v48, %v1374_v12  ;;  %v1341_v22 = vmul.f32 %v3486_v14, %v3705_v29 }
  0x89   : > { %vm1247_vm10 = vmand %vm3859_vm6, %vm1243_vm8  ;;  %v2845_v0 = vsel %vm2842_vm7, %v2843_v58, %v2844_v59  ;;  %v1317_v4 = vadd.f32 %v1313_v49, %v1308_v62  ;;  %vm2862_vm1 = vcmp.lt.s32.totalorder %v2743_v61, 0  ;;  %v2863_v18 = vceil.f32 %v2743_v61 }
  0x8a   : > { %vm1255_vm11 = vmand %vm1247_vm10, %vm1251_vm9  ;;  %v2846_v7 = vcvt.f32.s32 %v2845_v0  ;;  %v2864_v20 = vfloor.f32 %v2743_v61  ;;  %v2747_v23 = vadd.f32 10.0, %v1379_v2  ;;  %v1336_v25 = vadd.f32 %v1332_v5, %v1327_v57 }
  0x8b   : > { %v3873_v51 = vsel %vm1255_vm11, %v1263_v38, 4294967295  ;;  %v1322_v45 = vadd.f32 %v3685_v13, %v1317_v4  ;;  %v1355_v33 = vmul.f32 %v3716_v35, %v3456_v8  ;;  %v1360_v38 = vmul.f32 %v3472_v11, %v3719_v37 }
  0x8c   : > { %1558 = vperm.xlu1 %2964, %v3873_v51   ;;  %v2865_v26 = vsel %vm2862_vm1, %v2863_v18, %v2864_v20  ;;  %vm1411_vm12 = vcmp.ge.s32.totalorder %v2846_v7, 0  ;;  %vm1415_vm13 = vcmp.lt.s32.totalorder %v2846_v7, 16  ;;  %v1455_v27 = vmul.u32 16, %v2846_v7  ;;  %1470 = vperm.xlu0 %2960, %v3873_v51  }
  0x8d   : > { %v2866_v29 = vcvt.f32.s32 %v2865_v26  ;;  %v1403_v30 = vmul.f32 0.05, %v2747_v23  ;;  %vm1419_vm14 = vmand %vm1411_vm12, %vm1415_vm13  ;;  %v1345_v32 = vadd.f32 %v1341_v22, %v1336_v25  ;;  %v1369_v13 = vmul.f32 %v3486_v14, %v3728_v42 }
  0x8e   : > { %v2738_v39 = vadd.f32 8.0, %v1322_v45  ;;  %v1106_v41 = vmul.f32 %v3459_v9, %v3804_v63  ;;  %v1364_v8 = vadd.f32 %v1360_v38, %v1355_v33  ;;  %v1111_v1 = vmul.f32 %v3811_v6, %v3506_v19 }
  0x8f   : > { %vm2882_vm15 = vcmp.lt.s32.totalorder %v1403_v30, 0  ;;  %v2883_v10 = vceil.f32 %v1403_v30  ;;  %v2884_v43 = vfloor.f32 %v1403_v30  ;;  %vm1423_vm0 = vcmp.ge.s32.totalorder %v2866_v29, 0 }
  0x90   : > { %vm1427_vm2 = vmand %vm1419_vm14, %vm1423_vm0  ;;  %vm1431_vm3 = vcmp.lt.s32.totalorder %v2866_v29, 16  ;;  %v1459_v46 = vadd.s32 %v2866_v29, %v1455_v27  ;;  %v1350_v49 = vadd.f32 %v3713_v34, %v1345_v32  ;;  %vm2837_vm4 = vcmp.lt.s32.totalorder %v2738_v39, 0 }
  0x91   : > { %v2885_v35 = vsel %vm2882_vm15, %v2883_v10, %v2884_v43  ;;  %v2838_v11 = vceil.f32 %v2738_v39  ;;  %v2839_v37 = vfloor.f32 %v2738_v39  ;;  %vm3887_vm5 = vmand %vm1427_vm2, %vm1431_vm3  ;;  %v1373_v9 = vadd.f32 %v1369_v13, %v1364_v8 }
  0x92   : > { %v2886_v50 = vcvt.f32.s32 %v2885_v35  ;;  %v2742_v42 = vadd.f32 8.0, %v1350_v49  ;;  %v1120_v12 = vmul.f32 %v3816_v17, %v3513_v21  ;;  %v1134_v34 = vmul.f32 %v3523_v24, %v3804_v63 }
  0x93   : > { %v2840_v55 = vsel %vm2837_vm4, %v2838_v11, %v2839_v37  ;;  %v1139_v57 = vmul.f32 %v3811_v6, %v3537_v28  ;;  %v1378_v58 = vadd.f32 %v3734_v48, %v1373_v9  ;;  %v1115_v21 = vadd.f32 %v1111_v1, %v1106_v41 }
  0x94   : > { %vm1439_vm6 = vcmp.ge.s32.totalorder %v2886_v50, 0  ;;  %vm1447_vm7 = vcmp.lt.s32.totalorder %v2886_v50, 1  ;;  %1567 = vperm.xlu1 %2964, %v3841_v60   ;;  %v2841_v59 = vcvt.f32.s32 %v2840_v55  ;;  %vm2857_vm9 = vcmp.lt.s32.totalorder %v2742_v42, 0  ;;  %v3949_v55 = vld [vmem:[%s4874_s8] ss:$0 sm:$0xff] }
  0x95   : > { %vm1443_vm8 = vmand %vm3887_vm5, %vm1439_vm6  ;;  %v2858_v19 = vceil.f32 %v2742_v42  ;;  %v2859_v62 = vfloor.f32 %v2742_v42  ;;  %v2746_v2 = vadd.f32 10.0, %v1378_v58  ;;  %v1124_v61 = vadd.f32 %v1120_v12, %v1115_v21  ;;  %v801_v12 = vld [vmem:[%s4877_s11 + $0x8] sm:$0xff]  ;;  %v800_v21 = vld [vmem:[%s4877_s11] sm:$0xff] }
  0x96   : > { %vm1451_vm10 = vmand %vm1443_vm8, %vm1447_vm7  ;;  %vm1410_vm11 = vcmp.ge.s32.totalorder %v2841_v59, 0  ;;  %vm1414_vm1 = vcmp.lt.s32.totalorder %v2841_v59, 16  ;;  %v1143_v0 = vadd.f32 %v1139_v57, %v1134_v34  ;;  %v1148_v5 = vmul.f32 %v3816_v17, %v3547_v31  ;;  %844 = vmatpush.msra.mxu3 %v801_v12 }
  0x97   : > { %v3903_v24 = vsel %vm1451_vm10, %v1459_v46, 4294967295  ;;  %v2860_v28 = vsel %vm2857_vm9, %v2858_v19, %v2859_v62  ;;  %v1402_v4 = vmul.f32 0.05, %v2746_v2  ;;  %vm1418_vm12 = vmand %vm1410_vm11, %vm1414_vm1  ;;  %v1162_v22 = vmul.f32 %v3556_v36, %v3804_v63 }
  0x98   : > { %1488 = vperm.xlu2 %2962, %v3903_v24   ;;  %v2861_v48 = vcvt.f32.s32 %v2860_v28  ;;  %v1454_v7 = vmul.u32 16, %v2841_v59  ;;  %v1129_v18 = vadd.f32 %v3578_v47, %v1124_v61  ;;  %v1167_v20 = vmul.f32 %v3811_v6, %v3565_v40  ;;  %845 = vmatpush.msra.mxu3 %v800_v21 }
  0x99   : > { %v1176_v23 = vmul.f32 %v3816_v17, %v3571_v44  ;;  %vm2877_vm13 = vcmp.lt.s32.totalorder %v1402_v4, 0  ;;  %v2878_v45 = vceil.f32 %v1402_v4  ;;  %v2879_v25 = vfloor.f32 %v1402_v4 }
  0x9a   : > { %vm1422_vm14 = vcmp.ge.s32.totalorder %v2861_v48, 0  ;;  %vm1430_vm0 = vcmp.lt.s32.totalorder %v2861_v48, 16  ;;  %v1152_v26 = vadd.f32 %v1148_v5, %v1143_v0  ;;  %v1171_v31 = vadd.f32 %v1167_v20, %v1162_v22  ;;  %v680_v22 = vld [vmem:[%s4875_s9] sm:$0xff] }
  0x9b   : > { %vm1426_vm15 = vmand %vm1418_vm12, %vm1422_vm14  ;;  %v2880_v27 = vsel %vm2877_vm13, %v2878_v45, %v2879_v25  ;;  %v2726_v29 = vadd.f32 8.0, %v1129_v18  ;;  %v1458_v6 = vadd.s32 %v2861_v48, %v1454_v7  ;;  %v4906_v50 = vmov 2  }
  0x9c   : > { %v2881_v36 = vcvt.f32.s32 %v2880_v27  ;;  %vm3915_vm2 = vmand %vm1426_vm15, %vm1430_vm0  ;;  %v1157_v40 = vadd.f32 %v3586_v52, %v1152_v26  ;;  %v1180_v47 = vadd.f32 %v1176_v23, %v1171_v31  ;;  %v4904_v9 = vmov 3  }
  0x9d   : > { %vm2782_vm3 = vcmp.lt.s32.totalorder %v2726_v29, 0  ;;  %v2783_v44 = vceil.f32 %v2726_v29  ;;  %v2784_v17 = vfloor.f32 %v2726_v29  ;;  %v4896_v61 = vmov 4  }
  0x9e   : > { %vm1438_vm4 = vcmp.ge.s32.totalorder %v2881_v36, 0  ;;  %vm1446_vm5 = vcmp.lt.s32.totalorder %v2881_v36, 1  ;;  %v1185_v30 = vadd.f32 %v3592_v56, %v1180_v47  ;;  %v2730_v32 = vadd.f32 8.0, %v1157_v40 }
  0x9f   : > { %vm1442_vm6 = vmand %vm3915_vm2, %vm1438_vm4  ;;  %v2785_v33 = vsel %vm2782_vm3, %v2783_v44, %v2784_v17  ;;  %v4894_v18 = vmov 7   ;;  %v4900_v26 = vmov 5   ;;  %v4898_v31 = vmov 6  }
  0xa0   : > { %2963 = vset.pattern.permute.xlu2 %v4902_v16  ;;  %vm1450_vm7 = vmand %vm1442_vm6, %vm1446_vm5  ;;  %v2786_v52 = vcvt.f32.s32 %v2785_v33  ;;  %vm2802_vm8 = vcmp.lt.s32.totalorder %v2730_v32, 0  ;;  %v2803_v38 = vceil.f32 %v2730_v32  ;;  %v2804_v13 = vfloor.f32 %v2730_v32 }
  0xa1   : > { %1555 = vperm.xlu2 %2963, %v3738_v53   ;;  %v3925_v39 = vsel %vm1450_vm7, %v1458_v6, 4294967295  ;;  %v2734_v41 = vadd.f32 10.0, %v1185_v30  ;;  %vm687_vm5 = vcmask 130048   ;;  %vm871_vm6 = vcmask 64512  }
  0xa2   : > { %1573 = vperm.xlu1 %2964, %v3925_v39   ;;  %v2805_v56 = vsel %vm2802_vm8, %v2803_v38, %v2804_v13  ;;  %vm1217_vm9 = vcmp.ge.s32.totalorder %v2786_v52, 0  ;;  %vm1221_vm10 = vcmp.lt.s32.totalorder %v2786_v52, 16  ;;  %v1261_v46 = vmul.u32 16, %v2786_v52 }
  0xa3   : > { %v2806_v10 = vcvt.f32.s32 %v2805_v56  ;;  %v1209_v43 = vmul.f32 0.05, %v2734_v41  ;;  %vm1225_vm11 = vmand %vm1217_vm9, %vm1221_vm10 }
  0xa5   : > { %vm2822_vm1 = vcmp.lt.s32.totalorder %v1209_v43, 0  ;;  %v2823_v49 = vceil.f32 %v1209_v43  ;;  %v2824_v8 = vfloor.f32 %v1209_v43  ;;  %vm1229_vm12 = vcmp.ge.s32.totalorder %v2806_v10, 0 }
  0xa6   : > { %vm1233_vm13 = vmand %vm1225_vm11, %vm1229_vm12  ;;  %vm1237_vm14 = vcmp.lt.s32.totalorder %v2806_v10, 16  ;;  %v1265_v37 = vadd.s32 %v2806_v10, %v1261_v46 }
  0xa7   : > { %v2825_v35 = vsel %vm2822_vm1, %v2823_v49, %v2824_v8  ;;  %vm1241_vm15 = vmand %vm1233_vm13, %vm1237_vm14 }
  0xa8   : > { %v2826_v11 = vcvt.f32.s32 %v2825_v35 }
  0xa9   : > { %v637_v42 = vpop.permute.xlu0 %636 }
  0xaa   : > { %vm1245_vm0 = vcmp.ge.s32.totalorder %v2826_v11, 0  ;;  %vm1253_vm2 = vcmp.lt.s32.totalorder %v2826_v11, 1  ;;  %2967 = vset.pattern.permute.xlu1 %v4906_v50  ;;  %v3995_v47 = vpop.permute.xlu1 %684 }
  0xab   : > { %vm1249_vm3 = vmand %vm1241_vm15, %vm1245_vm0  ;;  %1641 = vperm.xlu1 %2967, %v3687_v15   ;;  %4994 = vst [vmem:[#allocation20_spill] sm:$0xff] %v3995_v47 }
  0xac   : > { %vm1257_vm4 = vmand %vm1249_vm3, %vm1253_vm2 }
  0xad   : > { %v3930_v14 = vsel %vm1257_vm4, %v1265_v37, 4294967295 }
  0xae   : > { %1564 = vperm.xlu2 %2963, %v3930_v14   ;;  %1476 = vperm.xlu0 %2960, %v3930_v14  }
  0xb1   : > { %v642_v19 = vpop.permute.xlu0 %641 }
  0xb3   : > { %1647 = vperm.xlu1 %2967, %v3841_v60  }
  0xb6   : > { %1570 = vperm.xlu2 %2963, %v3787_v54   ;;  %1485 = vperm.xlu0 %2960, %v3925_v39  }
  0xbb   : > { %1656 = vperm.xlu1 %2967, %v3903_v24   ;;  %v672_v1 = vpop.f32.mrf.mxu0 }
  0xbc   : > { %v673_v59 = vadd.f32 %v672_v1, %v637_v42 }
  0xbe   : > { %2966 = vset.pattern.permute.xlu2 %v4906_v50  ;;  %2965 = vset.pattern.permute.xlu0 %v4902_v16  ;;  %v678_v48 = vmax.f32 %v673_v59, 0.0  ;;  %v4015_v13 = vpop.permute.xlu2 %1467 }
  0xbf   : > { %1638 = vperm.xlu2 %2966, %v3873_v51   ;;  %1561 = vperm.xlu0 %2965, %v3687_v15  }
  0xc2   : > { %v768_v34 = vpop.f32.mrf.mxu2 }
  0xc3   : > { %2968 = vset.pattern.permute.xlu1 %v4904_v9  ;;  %v769_v57 = vadd.f32 %v3949_v55, %v768_v34  ;;  %v675_v62 = vpop.f32.mrf.mxu0 }
  0xc4   : > { %1715 = vperm.xlu1 %2968, %v3738_v53   ;;  %v676_v2 = vadd.f32 %v675_v62, %v642_v19  ;;  %v3063_v62 = vld [vmem:[%s4878_s12] ss:$0 sm:$0xff] }
  0xc5   : > { %v792_v58 = vmax.f32 %v769_v57, 0.0 }
  0xc6   : > { %v679_v4 = vmax.f32 %v676_v2, 0.0 }
  0xc7   : > { %1644 = vperm.xlu2 %2966, %v3930_v14   ;;  %1576 = vperm.xlu0 %2965, %v3903_v24  }
  0xc8   : > { %2707 = vmatmul.msk.f32.vlgmr.msra.gmra.mxu3 %vm687_vm5, %v792_v58  ;;  %705 = vmatpush.msra.mxu1 %v679_v4 }
  0xca   : > { %v771_v28 = vpop.f32.mrf.mxu2  ;;  %706 = vmatpush.msra.mxu1 %v678_v48 }
  0xcb   : > { %v772_v0 = vadd.f32 %v3949_v55, %v771_v28  ;;  %2697 = vmatmul.msk.f32.vlgmr.msra.gmra.mxu1 %vm687_vm5, %v680_v22 }
  0xcc   : > { %1733 = vperm.xlu1 %2968, %v3925_v39  }
  0xcd   : > { %v793_v5 = vmax.f32 %v772_v0, 0.0 }
  0xcf   : > { %1653 = vperm.xlu2 %2966, %v3925_v39   ;;  %2969 = vset.pattern.permute.xlu0 %v4904_v9 }
  0xd0   : > { %1736 = vperm.xlu0 %2969, %v3903_v24   ;;  %2708 = vmatmul.msk.f32.gmra.mxu3 %vm687_vm5, %v793_v5  ;;  %v4006_v32 = vpop.permute.xlu1 %1473 }
  0xd2   : > { %v774_v7 = vpop.f32.mrf.mxu2 }
  0xd3   : > { %v775_v20 = vadd.f32 %v3949_v55, %v774_v7 }
  0xd4   : > { %2972 = vset.pattern.permute.xlu1 %v4896_v61 }
  0xd5   : > { %1813 = vperm.xlu1 %2972, %v3925_v39   ;;  %v794_v23 = vmax.f32 %v775_v20, 0.0 }
  0xd7   : > { %2970 = vset.pattern.permute.xlu2 %v4896_v61 }
  0xd8   : > { %1816 = vperm.xlu2 %2970, %v3903_v24   ;;  %2983 = vset.pattern.permute.xlu0 %v4894_v18 }
  0xd9   : > { %2053 = vperm.xlu0 %2983, %v3925_v39   ;;  %2709 = vmatmul.msk.f32.gmra.mxu3 %vm687_vm5, %v794_v23 }
  0xda   : > { %v777_v45 = vpop.f32.mrf.mxu2 }
  0xdb   : > { %v778_v25 = vadd.f32 %v3949_v55, %v777_v45 }
  0xdd   : > { %2974 = vset.pattern.permute.xlu1 %v4904_v9  ;;  %v795_v27 = vmax.f32 %v778_v25, 0.0 }
  0xde   : > { %1727 = vperm.xlu1 %2974, %v3841_v60  }
  0xe0   : > { %2971 = vset.pattern.permute.xlu2 %v4904_v9 }
  0xe1   : > { %1730 = vperm.xlu2 %2971, %v3787_v54   ;;  %2986 = vset.pattern.permute.xlu0 %v4900_v26 }
  0xe2   : > { %1884 = vperm.xlu0 %2986, %v3930_v14   ;;  %v780_v29 = vpop.f32.mrf.mxu2  ;;  %2710 = vmatmul.msk.f32.gmra.mxu3 %vm687_vm5, %v795_v27 }
  0xe3   : > { %v781_v36 = vadd.f32 %v3949_v55, %v780_v29 }
  0xe5   : > { %v796_v63 = vmax.f32 %v781_v36, 0.0 }
  0xe6   : > { %2975 = vset.pattern.permute.xlu1 %v4898_v31 }
  0xe7   : > { %1976 = vperm.xlu1 %2975, %v3903_v24  }
  0xe9   : > { %2973 = vset.pattern.permute.xlu2 %v4900_v26 }
  0xea   : > { %1896 = vperm.xlu2 %2973, %v3903_v24   ;;  %2997 = vset.pattern.permute.xlu0 %v4898_v31  ;;  %v783_v40 = vpop.f32.mrf.mxu2 }
  0xeb   : > { %1958 = vperm.xlu0 %2997, %v3873_v51   ;;  %2711 = vmatmul.msk.f32.gmra.mxu3 %vm687_vm5, %v796_v63  ;;  %v784_v6 = vadd.f32 %v3949_v55, %v783_v40 }
  0xed   : > { %v797_v44 = vmax.f32 %v784_v6, 0.0 }
  0xef   : > { %2976 = vset.pattern.permute.xlu1 %v4904_v9 }
  0xf0   : > { %1724 = vperm.xlu1 %2976, %v3930_v14  }
  0xf2   : > { %1893 = vperm.xlu2 %2973, %v3925_v39   ;;  %v786_v17 = vpop.f32.mrf.mxu2 }
  0xf3   : > { %2998 = vset.pattern.permute.xlu0 %v4906_v50  ;;  %2712 = vmatmul.msk.f32.gmra.mxu3 %vm687_vm5, %v797_v44  ;;  %v787_v30 = vadd.f32 %v3949_v55, %v786_v17 }
  0xf4   : > { %1635 = vperm.xlu0 %2998, %v3738_v53  }
  0xf5   : > { %v798_v33 = vmax.f32 %v787_v30, 0.0 }
  0xf8   : > { %2977 = vset.pattern.permute.xlu1 %v4898_v31 }
  0xf9   : > { %1973 = vperm.xlu1 %2977, %v3925_v39   ;;  %v4017_v39 = vpop.permute.xlu1 %1482 }
  0xfa   : > { %1890 = vperm.xlu2 %2973, %v3787_v54   ;;  %v789_v52 = vpop.f32.mrf.mxu2  ;;  %4995 = vst [vmem:[#allocation21_spill] sm:$0xff] %v4017_v39 }
  0xfb   : > { %2713 = vmatmul.msk.f32.gmra.mxu3 %vm687_vm5, %v798_v33  ;;  %v790_v38 = vadd.f32 %v3949_v55, %v789_v52 }
  0xfc   : > { %1650 = vperm.xlu0 %2998, %v3787_v54  }
  0xfd   : > { %v799_v41 = vmax.f32 %v790_v38, 0.0 }
  0xfe   : > { %v4117_v29 = vpop.permute.xlu0 %1470 }
 0x101   : > { %2980 = vset.pattern.permute.xlu1 %v4896_v61  ;;  %v4026_v56 = vpop.permute.xlu1 %1558 }
 0x102   : > { %2978 = vset.pattern.permute.xlu2 %v4894_v18  ;;  %1804 = vperm.xlu1 %2980, %v3930_v14  }
 0x103   : > { %2056 = vperm.xlu2 %2978, %v3903_v24   ;;  %2714 = vmatmul.msk.f32.gmra.mxu3 %vm687_vm5, %v799_v41  ;;  %v4024_v24 = vpop.permute.xlu2 %1479 }
 0x104   : > { %4996 = vst [vmem:[#allocation22_spill] sm:$0xff] %v4024_v24 }
 0x109   : > { %v4034_v43 = vpop.permute.xlu1 %1567 }
 0x10a   : > { %2982 = vset.pattern.permute.xlu1 %v4898_v31  ;;  %4998 = vst [vmem:[#allocation24_spill] sm:$0xff] %v4034_v43 }
 0x10b   : > { %2979 = vset.pattern.permute.xlu2 %v4904_v9  ;;  %1970 = vperm.xlu1 %2982, %v3787_v54   ;;  %v4032_v10 = vpop.permute.xlu2 %1488 }
 0x10c   : > { %1721 = vperm.xlu2 %2979, %v3687_v15   ;;  %4997 = vst [vmem:[#allocation23_spill] sm:$0xff] %v4032_v10 }
 0x113   : > { %2985 = vset.pattern.permute.xlu1 %v4896_v61  ;;  %v4040_v46 = vpop.permute.xlu2 %1555 }
 0x114   : > { %2981 = vset.pattern.permute.xlu2 %v4900_v26  ;;  %1801 = vperm.xlu1 %2985, %v3687_v15   ;;  %v4043_v49 = vpop.permute.xlu1 %1573 }
 0x115   : > { %1887 = vperm.xlu2 %2981, %v3841_v60   ;;  %4999 = vst [vmem:[#allocation25_spill] sm:$0xff] %v4043_v49 }
 0x11b   : > { %v4048_v8 = vpop.permute.xlu2 %1564 }
 0x11c   : > { %2988 = vset.pattern.permute.xlu1 %v4894_v18 }
 0x11d   : > { %2984 = vset.pattern.permute.xlu2 %v4904_v9  ;;  %2050 = vperm.xlu1 %2988, %v3787_v54   ;;  %v4053_v35 = vpop.permute.xlu1 %1641 }
 0x11e   : > { %1718 = vperm.xlu2 %2984, %v3873_v51  }
 0x120   : > { %v4129_v30 = vpop.permute.xlu0 %1476 }
 0x123   : > { %v4056_v11 = vpop.permute.xlu2 %1570 }
 0x124   : > { %5000 = vst [vmem:[#allocation26_spill] sm:$0xff] %v4056_v11 }
 0x125   : > { %2990 = vset.pattern.permute.xlu1 %v4898_v31  ;;  %v4062_v37 = vpop.permute.xlu1 %1647 }
 0x126   : > { %2987 = vset.pattern.permute.xlu2 %v4898_v31  ;;  %1964 = vperm.xlu1 %2990, %v3930_v14  }
 0x127   : > { %1967 = vperm.xlu2 %2987, %v3841_v60  }
 0x12b   : > { %v4065_v42 = vpop.permute.xlu2 %1638 }
 0x12d   : > { %v4070_v1 = vpop.permute.xlu1 %1656 }
 0x12e   : > { %2993 = vset.pattern.permute.xlu1 %v4900_v26  ;;  %5001 = vst [vmem:[#allocation27_spill] sm:$0xff] %v4070_v1 }
 0x12f   : > { %2989 = vset.pattern.permute.xlu2 %v4900_v26  ;;  %1878 = vperm.xlu1 %2993, %v3873_v51  }
 0x130   : > { %1881 = vperm.xlu2 %2989, %v3687_v15  }
 0x136   : > { %v4077_v55 = vpop.permute.xlu1 %1715 }
 0x137   : > { %2995 = vset.pattern.permute.xlu1 %v4894_v18 }
 0x138   : > { %2991 = vset.pattern.permute.xlu2 %v4894_v18  ;;  %2044 = vperm.xlu1 %2995, %v3930_v14   ;;  %v4074_v14 = vpop.permute.xlu2 %1644 }
 0x139   : > { %2047 = vperm.xlu2 %2991, %v3841_v60  }
 0x13e   : > { %v4083_v34 = vpop.permute.xlu1 %1733 }
 0x13f   : > { %5003 = vst [vmem:[#allocation29_spill] sm:$0xff] %v4083_v34 }
 0x140   : > { %2996 = vset.pattern.permute.xlu1 %v4900_v26  ;;  %v4081_v12 = vpop.permute.xlu2 %1653 }
 0x141   : > { %2992 = vset.pattern.permute.xlu2 %v4896_v61  ;;  %1875 = vperm.xlu1 %2996, %v3738_v53   ;;  %5002 = vst [vmem:[#allocation28_spill] sm:$0xff] %v4081_v12  ;;  %v5030_v12 = vmov 1  }
 0x142   : > { %1795 = vperm.xlu2 %2992, %v3738_v53  }
 0x147   : > { %v4088_v59 = vpop.permute.xlu1 %1813 }
 0x148   : > { %v4086_v58 = vpop.permute.xlu2 %1816  ;;  %5005 = vst [vmem:[#allocation31_spill] sm:$0xff] %v4088_v59 }
 0x149   : > { %3000 = vset.pattern.permute.xlu1 %v4908_v3  ;;  %5004 = vst [vmem:[#allocation30_spill] sm:$0xff] %v4086_v58 }
 0x14a   : > { %2994 = vset.pattern.permute.xlu2 %v4898_v31 }
 0x14b   : > { %1961 = vperm.xlu2 %2994, %v3687_v15   ;;  %v847_v57 = vpop.f32.mrf.mxu3 }
 0x14c   : > { %v4093_v21 = vadd.f32 %v3063_v62, %v847_v57 }
 0x14e   : > { %v872_v0 = vsel %vm871_vm6, %v4093_v21, -inf }
 0x150   : > { %v4097_v28 = vpop.permute.xlu1 %1727 }
 0x153   : > { %2999 = vset.pattern.permute.xlu2 %v4894_v18  ;;  %v850_v19 = vpop.f32.mrf.mxu3 }
 0x154   : > { %2041 = vperm.xlu2 %2999, %v3687_v15   ;;  %v4095_v15 = vpop.permute.xlu2 %1730  ;;  %v4109_v20 = vadd.f32 %v3063_v62, %v850_v19  ;;  %v4139_v19 = vpop.permute.xlu0 %1485 }
 0x155   : > { %5006 = vst [vmem:[#allocation32_spill] sm:$0xff] %v4095_v15 }
 0x156   : > { %v875_v23 = vsel %vm871_vm6, %v4109_v20, -inf  ;;  %5013 = vst [vmem:[#allocation39_spill] sm:$0xff] %v4139_v19 }
 0x159   : > { %v4105_v22 = vpop.permute.xlu1 %1976 }
 0x15a   : > { %5008 = vst [vmem:[#allocation34_spill] sm:$0xff] %v4105_v22 }
 0x15c   : > { %3001 = vset.pattern.permute.xlu2 %v4902_v16  ;;  %v853_v2 = vpop.f32.mrf.mxu3  ;;  %v4103_v5 = vpop.permute.xlu2 %1896 }
 0x15d   : > { %5007 = vst [vmem:[#allocation33_spill] sm:$0xff] %v4103_v5  ;;  %v4119_v36 = vadd.f32 %v3063_v62, %v853_v2 }
 0x15f   : > { %v878_v63 = vsel %vm871_vm6, %v4119_v36, -inf }
 0x162   : > { %v4115_v25 = vpop.permute.xlu1 %1724 }
 0x164   : > { %v4113_v45 = vpop.permute.xlu2 %1893 }
 0x165   : > { %v856_v48 = vpop.f32.mrf.mxu3  ;;  %5009 = vst [vmem:[#allocation35_spill] sm:$0xff] %v4113_v45 }
 0x166   : > { %v4101_v4 = vadd.f32 %v3063_v62, %v856_v48 }
 0x168   : > { %v881_v7 = vsel %vm871_vm6, %v4101_v4, -inf }
 0x169   : > { %882 = vmax.xlane.f32.xlu0 %v881_v7 }
 0x16b   : > { %873 = vmax.xlane.f32.xlu1 %v872_v0  ;;  %v4125_v6 = vpop.permute.xlu1 %1973 }
 0x16c   : > { %v4123_v40 = vpop.permute.xlu2 %1890  ;;  %5011 = vst [vmem:[#allocation37_spill] sm:$0xff] %v4125_v6 }
 0x16d   : > { %5010 = vst [vmem:[#allocation36_spill] sm:$0xff] %v4123_v40 }
 0x16e   : > { %v859_v27 = vpop.f32.mrf.mxu3 }
 0x16f   : > { %v4127_v44 = vadd.f32 %v3063_v62, %v859_v27 }
 0x171   : > { %v884_v33 = vsel %vm871_vm6, %v4127_v44, -inf }
 0x174   : > { %v4133_v52 = vpop.permute.xlu2 %2056  ;;  %v4137_v41 = vpop.permute.xlu1 %1804 }
 0x175   : > { %5012 = vst [vmem:[#allocation38_spill] sm:$0xff] %v4133_v52 }
 0x176   : > { %v862_v17 = vpop.f32.mrf.mxu3 }
 0x177   : > { %v4135_v38 = vadd.f32 %v3063_v62, %v862_v17 }
 0x179   : > { %v887_v2 = vsel %vm871_vm6, %v4135_v38, -inf }
 0x17c   : > { %v4145_v48 = vpop.permute.xlu2 %1721 }
 0x17d   : > { %876 = vmax.xlane.f32.xlu2 %v875_v23  ;;  %v4147_v7 = vpop.permute.xlu1 %1970  ;;  %v4149_v23 = vpop.permute.xlu0 %1561 }
 0x17e   : > { %v865_v57 = vpop.f32.mrf.mxu3  ;;  %5014 = vst [vmem:[#allocation40_spill] sm:$0xff] %v4147_v7 }
 0x17f   : > { %v4143_v0 = vadd.f32 %v3063_v62, %v865_v57 }
 0x181   : > { %v890_v27 = vsel %vm871_vm6, %v4143_v0, -inf }
 0x185   : > { %879 = vmax.xlane.f32.xlu2 %v878_v63  ;;  %v4161_v18 = vpop.permute.xlu0 %1576 }
 0x186   : > { %v868_v63 = vpop.f32.mrf.mxu3  ;;  %v4159_v57 = vpop.permute.xlu1 %1801  ;;  %5015 = vst [vmem:[#allocation41_spill] sm:$0xff] %v4161_v18 }
 0x187   : > { %v4153_v17 = vadd.f32 %v3063_v62, %v868_v63 }
 0x18d   : > { %885 = vmax.xlane.f32.xlu2 %v884_v33  ;;  %v4155_v33 = vpop.permute.xlu2 %1887  ;;  %v4165_v31 = vpop.permute.xlu0 %1736 }
 0x18e   : > { %5016 = vst [vmem:[#allocation42_spill] sm:$0xff] %v4165_v31 }
 0x18f   : > { %v4167_v26 = vpop.permute.xlu1 %2050 }
 0x190   : > { %5017 = vst [vmem:[#allocation43_spill] sm:$0xff] %v4167_v26 }
 0x195   : > { %888 = vmax.xlane.f32.xlu2 %v887_v2  ;;  %v893_v2 = vsel %vm871_vm6, %v4153_v17, -inf  ;;  %v4163_v61 = vpop.permute.xlu2 %1718  ;;  %v4171_v62 = vpop.permute.xlu0 %2053 }
 0x196   : > { %5019 = vst [vmem:[#allocation45_spill] sm:$0xff] %v4171_v62 }
 0x19d   : > { %891 = vmax.xlane.f32.xlu2 %v890_v27  ;;  %v4169_v16 = vpop.permute.xlu2 %1967  ;;  %v4173_v27 = vpop.permute.xlu1 %1964 }
 0x19e   : > { %5018 = vst [vmem:[#allocation44_spill] sm:$0xff] %v4169_v16  ;;  %v4177_v9 = vpop.permute.xlu0 %1884  ;;  %v5035_v16 = vmov 7  }
 0x19f   : > { %5020 = vst [vmem:[#allocation46_spill] sm:$0xff] %v4173_v27 }
 0x1a5   : > { %894 = vmax.xlane.f32.xlu2 %v893_v2  ;;  %v4175_v63 = vpop.permute.xlu2 %1881  ;;  %v4179_v50 = vpop.permute.xlu1 %1878 }
 0x1a6   : > { %v4183_v2 = vpop.permute.xlu0 %1958 }
 0x1a7   : > { %5022 = vst [vmem:[#allocation48_spill] sm:$0xff] %v4183_v2 }
 0x1ad   : > { %v4181_v3 = vpop.permute.xlu2 %2047  ;;  %v4185_v47 = vpop.permute.xlu1 %2044 }
 0x1ae   : > { %5021 = vst [vmem:[#allocation47_spill] sm:$0xff] %v4181_v3  ;;  %v4189_v22 = vpop.permute.xlu0 %1635 }
 0x1b5   : > { %v4187_v52 = vpop.permute.xlu2 %1795  ;;  %v4191_v5 = vpop.permute.xlu1 %1875 }
 0x1b6   : > { %5023 = vst [vmem:[#allocation49_spill] sm:$0xff] %v4187_v52  ;;  %v4195_v31 = vpop.permute.xlu0 %1650 }
 0x1b7   : > { %5024 = vst [vmem:[#allocation50_spill] sm:$0xff] %v4191_v5 }
 0x1b8   : > { %5025 = vst [vmem:[#allocation51_spill] sm:$0xff] %v4195_v31 }
 0x1bd   : > { %v4193_v58 = vpop.permute.xlu2 %1961 }
 0x1c5   : > { %v4199_v2 = vpop.permute.xlu2 %2041 }
 0x1c6   : > { %5026 = vst [vmem:[#allocation52_spill] sm:$0xff] %v4199_v2 }
 0x1dc   : > { %v883_v3 = vpop.xlane.xlu0 %882 }
 0x1dd   : > { %v899_v62 = vsub.f32 %v4101_v4, %v883_v3 }
 0x1de   : > { %v874_v1 = vpop.xlane.xlu1 %873 }
 0x1df   : > { %v896_v10 = vsub.f32 %v4093_v21, %v874_v1  ;;  %v910_v52 = vmul.f32 1.442695, %v899_v62 }
 0x1e1   : > { %v904_v18 = vmul.f32 1.442695, %v896_v10 }
 0x1e3   : > { %3064 = vpow2.f32 %v904_v18 }
 0x1e4   : > { %3066 = vpow2.f32 %v910_v52 }
 0x1e9   : > { %v4201_v6 = vpop.eup %3064 }
 0x1ea   : > { %v920_v5 = vsel %vm871_vm6, %v4201_v6, 0.0  ;;  %v4205_v34 = vpop.eup %3066 }
 0x1eb   : > { %921 = vadd.xlane.f32.xlu2 %v920_v5  ;;  %v929_v18 = vsel %vm871_vm6, %v4205_v34, 0.0 }
 0x1ec   : > { %930 = vadd.xlane.f32.xlu0 %v929_v18 }
 0x1f0   : > { %v877_v45 = vpop.xlane.xlu2 %876 }
 0x1f1   : > { %v897_v1 = vsub.f32 %v4109_v20, %v877_v45 }
 0x1f3   : > { %v906_v10 = vmul.f32 1.442695, %v897_v1 }
 0x1f5   : > { %3068 = vpow2.f32 %v906_v10 }
 0x1f8   : > { %v880_v3 = vpop.xlane.xlu2 %879 }
 0x1f9   : > { %v898_v21 = vsub.f32 %v4119_v36, %v880_v3 }
 0x1fb   : > { %v4211_v4 = vpop.eup %3068  ;;  %v908_v62 = vmul.f32 1.442695, %v898_v21 }
 0x1fc   : > { %v923_v5 = vsel %vm871_vm6, %v4211_v4, 0.0 }
 0x1fd   : > { %3070 = vpow2.f32 %v908_v62  ;;  %924 = vadd.xlane.f32.xlu1 %v923_v5 }
 0x200   : > { %v886_v52 = vpop.xlane.xlu2 %885 }
 0x201   : > { %v900_v20 = vsub.f32 %v4127_v44, %v886_v52 }
 0x203   : > { %v4216_v45 = vpop.eup %3070  ;;  %v912_v2 = vmul.f32 1.442695, %v900_v20 }
 0x204   : > { %v926_v1 = vsel %vm871_vm6, %v4216_v45, 0.0 }
 0x205   : > { %927 = vadd.xlane.f32.xlu2 %v926_v1  ;;  %3072 = vpow2.f32 %v912_v2 }
 0x208   : > { %v889_v36 = vpop.xlane.xlu2 %888 }
 0x209   : > { %v901_v18 = vsub.f32 %v4135_v38, %v889_v36 }
 0x20b   : > { %v4221_v10 = vpop.eup %3072  ;;  %v914_v3 = vmul.f32 1.442695, %v901_v18 }
 0x20c   : > { %v932_v21 = vsel %vm871_vm6, %v4221_v10, 0.0 }
 0x20d   : > { %3074 = vpow2.f32 %v914_v3  ;;  %933 = vadd.xlane.f32.xlu1 %v932_v21 }
 0x210   : > { %v892_v44 = vpop.xlane.xlu2 %891 }
 0x211   : > { %v902_v62 = vsub.f32 %v4143_v0, %v892_v44 }
 0x213   : > { %v4226_v5 = vpop.eup %3074  ;;  %v916_v52 = vmul.f32 1.442695, %v902_v62 }
 0x214   : > { %v935_v2 = vsel %vm871_vm6, %v4226_v5, 0.0 }
 0x215   : > { %3076 = vpow2.f32 %v916_v52  ;;  %936 = vadd.xlane.f32.xlu2 %v935_v2 }
 0x218   : > { %v895_v38 = vpop.xlane.xlu2 %894 }
 0x219   : > { %v903_v20 = vsub.f32 %v4153_v17, %v895_v38 }
 0x21b   : > { %v4231_v1 = vpop.eup %3076  ;;  %v918_v36 = vmul.f32 1.442695, %v903_v20 }
 0x21c   : > { %v938_v18 = vsel %vm871_vm6, %v4231_v1, 0.0 }
 0x21d   : > { %3078 = vpow2.f32 %v918_v36  ;;  %939 = vadd.xlane.f32.xlu0 %v938_v18 }
 0x223   : > { %v4235_v0 = vpop.eup %3078 }
 0x224   : > { %v941_v3 = vsel %vm871_vm6, %v4235_v0, 0.0 }
 0x225   : > { %942 = vadd.xlane.f32.xlu1 %v941_v3 }
 0x25e   : > { %v922_v21 = vpop.xlane.xlu2 %921 }
 0x25f   : > { %3080 = vrcp.f32 %v922_v21  ;;  %v955_v17 = vand.u32 2147483648, %v922_v21  ;;  %v953_v38 = vand.u32 2147483647, %v922_v21  ;;  %vm949_vm8 = vweird.f32 %v922_v21 }
 0x261   : > { %v956_v36 = vor.u32 1.1754944e-38, %v955_v17  ;;  %vm954_vm10 = vcmp.eq.f32.partialorder %v953_v38, 8.507059e+37  ;;  %v5027_v17 = vmov 0  }
 0x265   : > { %v3081_v44 = vpop.eup %3080 }
 0x266   : > { %v945_v62 = vmul.f32 %v3081_v44, %v922_v21  ;;  %vm950_vm7 = vweird.f32 %v3081_v44 }
 0x267   : > { %vm951_vm9 = vmor %vm949_vm8, %vm950_vm7 }
 0x268   : > { %v946_v52 = vsub.f32 1.0, %v945_v62 }
 0x26a   : > { %v947_v2 = vmul.f32 %v3081_v44, %v946_v52 }
 0x26c   : > { %v948_v20 = vadd.f32 %v3081_v44, %v947_v2 }
 0x26e   : > { %v952_v18 = vsel %vm951_vm9, %v3081_v44, %v948_v20  ;;  %v5028_v44 = vmov 2  }
 0x26f   : > { %v957_v7 = vsel %vm954_vm10, %v956_v36, %v952_v18 }
 0x270   : > { %v4240_v19 = vmul.f32 %v4201_v6, %v957_v7  ;;  %v925_v3 = vpop.xlane.xlu1 %924  ;;  %v4247_v6 = vpop.xlane.xlu0 %930  ;;  %v5029_v7 = vmov 3  }
 0x271   : > { %3082 = vrcp.f32 %v925_v3  ;;  %v970_v38 = vand.u32 2147483648, %v925_v3  ;;  %v968_v36 = vand.u32 2147483647, %v925_v3  ;;  %vm964_vm1 = vweird.f32 %v925_v3 }
 0x272   : > { %1667 = vperm.xlu0 %2998, %v4240_v19   ;;  %1587 = vperm.xlu2 %3001, %v4240_v19   ;;  %vm994_vm4 = vweird.f32 %v4247_v6 }
 0x273   : > { %1500 = vperm.xlu1 %3000, %v4240_v19   ;;  %vm969_vm13 = vcmp.eq.f32.partialorder %v968_v36, 8.507059e+37 }
 0x277   : > { %v3083_v62 = vpop.eup %3082 }
 0x278   : > { %v960_v52 = vmul.f32 %v3083_v62, %v925_v3  ;;  %v928_v2 = vpop.xlane.xlu2 %927  ;;  %vm965_vm11 = vweird.f32 %v3083_v62 }
 0x279   : > { %3084 = vrcp.f32 %v928_v2  ;;  %vm966_vm12 = vmor %vm964_vm1, %vm965_vm11  ;;  %v985_v24 = vand.u32 2147483648, %v928_v2  ;;  %vm979_vm15 = vweird.f32 %v928_v2 }
 0x27a   : > { %v961_v21 = vsub.f32 1.0, %v960_v52  ;;  %3003 = vset.pattern.permute.xlu0 %v5027_v17  ;;  %3005 = vset.pattern.permute.xlu2 %v5028_v44  ;;  %3086 = vrcp.f32 %v4247_v6  ;;  %v971_v52 = vor.u32 1.1754944e-38, %v970_v38  ;;  %v5031_v38 = vmov 5  }
 0x27b   : > { %3002 = vset.pattern.permute.xlu1 %v5029_v7 }
 0x27c   : > { %v962_v20 = vmul.f32 %v3083_v62, %v961_v21  ;;  %1747 = vperm.xlu1 %3002, %v4240_v19  }
 0x27e   : > { %v963_v18 = vadd.f32 %v3083_v62, %v962_v20  ;;  %v983_v20 = vand.u32 2147483647, %v928_v2 }
 0x27f   : > { %v3085_v40 = vpop.eup %3084 }
 0x280   : > { %v967_v49 = vsel %vm966_vm12, %v3083_v62, %v963_v18  ;;  %v975_v26 = vmul.f32 %v3085_v40, %v928_v2  ;;  %v3087_v21 = vpop.eup %3086  ;;  %vm980_vm14 = vweird.f32 %v3085_v40  ;;  %v934_v3 = vpop.xlane.xlu1 %933  ;;  %vm984_vm2 = vcmp.eq.f32.partialorder %v983_v20, 8.507059e+37 }
 0x281   : > { %v972_v59 = vsel %vm969_vm13, %v971_v52, %v967_v49  ;;  %vm981_vm0 = vmor %vm979_vm15, %vm980_vm14  ;;  %v990_v49 = vmul.f32 %v3087_v21, %v4247_v6  ;;  %3088 = vrcp.f32 %v934_v3  ;;  %vm995_vm3 = vweird.f32 %v3087_v21 }
 0x282   : > { %v4253_v15 = vmul.f32 %v4211_v4, %v972_v59  ;;  %v976_v31 = vsub.f32 1.0, %v975_v26  ;;  %v1000_v2 = vand.u32 2147483648, %v4247_v6  ;;  %vm996_vm7 = vmor %vm994_vm4, %vm995_vm3  ;;  %vm1009_vm10 = vweird.f32 %v934_v3 }
 0x283   : > { %v991_v4 = vsub.f32 1.0, %v990_v49 }
 0x284   : > { %v977_v43 = vmul.f32 %v3085_v40, %v976_v31  ;;  %1671 = vperm.xlu2 %3005, %v4253_v15   ;;  %1505 = vperm.xlu0 %3003, %v4253_v15   ;;  %v986_v31 = vor.u32 1.1754944e-38, %v985_v24  ;;  %v1001_v49 = vor.u32 1.1754944e-38, %v1000_v2  ;;  %v5034_v2 = vmov 4  }
 0x285   : > { %3004 = vset.pattern.permute.xlu1 %v5030_v12 }
 0x286   : > { %v978_v62 = vadd.f32 %v3085_v40, %v977_v43  ;;  %1591 = vperm.xlu1 %3004, %v4253_v15   ;;  %v992_v43 = vmul.f32 %v3087_v21, %v991_v4  ;;  %v1015_v4 = vand.u32 2147483648, %v934_v3 }
 0x287   : > { %v3089_v36 = vpop.eup %3088 }
 0x288   : > { %v982_v26 = vsel %vm981_vm0, %v3085_v40, %v978_v62  ;;  %v1005_v24 = vmul.f32 %v3089_v36, %v934_v3  ;;  %v993_v40 = vadd.f32 %v3087_v21, %v992_v43  ;;  %v5033_v62 = vmov 6  }
 0x289   : > { %v987_v59 = vsel %vm984_vm2, %v986_v31, %v982_v26  ;;  %vm1010_vm9 = vweird.f32 %v3089_v36  ;;  %v1013_v43 = vand.u32 2147483647, %v934_v3 }
 0x28a   : > { %v4263_v18 = vmul.f32 %v4216_v45, %v987_v59  ;;  %v1006_v52 = vsub.f32 1.0, %v1005_v24  ;;  %v998_v45 = vand.u32 2147483647, %v4247_v6  ;;  %v997_v20 = vsel %vm996_vm7, %v3087_v21, %v993_v40  ;;  %vm1011_vm11 = vmor %vm1009_vm10, %vm1010_vm9  ;;  %v937_v21 = vpop.xlane.xlu2 %936 }
 0x28b   : > { %v1016_v40 = vor.u32 1.1754944e-38, %v1015_v4  ;;  %vm1014_vm1 = vcmp.eq.f32.partialorder %v1013_v43, 8.507059e+37  ;;  %3090 = vrcp.f32 %v937_v21  ;;  %v1030_v4 = vand.u32 2147483648, %v937_v21 }
 0x28c   : > { %3007 = vset.pattern.permute.xlu2 %v5031_v38  ;;  %3006 = vset.pattern.permute.xlu0 %v5029_v7  ;;  %5032 = vst [vmem:[#allocation53_spill] sm:$0xff] %v4263_v18  ;;  %v1007_v26 = vmul.f32 %v3089_v36, %v1006_v52  ;;  %vm999_vm8 = vcmp.eq.f32.partialorder %v998_v45, 8.507059e+37  ;;  %vm1024_vm13 = vweird.f32 %v937_v21 }
 0x28d   : > { %1911 = vperm.xlu2 %3007, %v4253_v15   ;;  %1751 = vperm.xlu0 %3006, %v4253_v15   ;;  %v1002_v31 = vsel %vm999_vm8, %v1001_v49, %v997_v20 }
 0x28e   : > { %3010 = vset.pattern.permute.xlu1 %v5028_v44  ;;  %v1008_v59 = vadd.f32 %v3089_v36, %v1007_v26  ;;  %v4279_v6 = vmul.f32 %v4205_v34, %v1002_v31 }
 0x28f   : > { %1675 = vperm.xlu1 %3010, %v4263_v18  }
 0x290   : > { %v1012_v24 = vsel %vm1011_vm11, %v3089_v36, %v1008_v59  ;;  %v940_v45 = vpop.xlane.xlu0 %939 }
 0x291   : > { %v1017_v34 = vsel %vm1014_vm1, %v1016_v40, %v1012_v24  ;;  %v3091_v52 = vpop.eup %3090  ;;  %3092 = vrcp.f32 %v940_v45  ;;  %v1028_v24 = vand.u32 2147483647, %v937_v21  ;;  %v1045_v27 = vand.u32 2147483648, %v940_v45 }
 0x292   : > { %v4288_v3 = vmul.f32 %v4221_v10, %v1017_v34  ;;  %v1020_v36 = vmul.f32 %v3091_v52, %v937_v21  ;;  %vm1025_vm12 = vweird.f32 %v3091_v52  ;;  %vm1039_vm2 = vweird.f32 %v940_v45 }
 0x293   : > { %vm1026_vm14 = vmor %vm1024_vm13, %vm1025_vm12  ;;  %vm1029_vm15 = vcmp.eq.f32.partialorder %v1028_v24, 8.507059e+37 }
 0x294   : > { %v1021_v20 = vsub.f32 1.0, %v1020_v36  ;;  %v1031_v36 = vor.u32 1.1754944e-38, %v1030_v4 }
 0x295   : > { %3008 = vset.pattern.permute.xlu2 %v5027_v17  ;;  %3009 = vset.pattern.permute.xlu0 %v5030_v12 }
 0x296   : > { %1510 = vperm.xlu2 %3008, %v4263_v18   ;;  %1595 = vperm.xlu0 %3009, %v4263_v18   ;;  %v1022_v26 = vmul.f32 %v3091_v52, %v1021_v20 }
 0x297   : > { %3014 = vset.pattern.permute.xlu1 %v5033_v62  ;;  %v3093_v10 = vpop.eup %3092 }
 0x298   : > { %1995 = vperm.xlu1 %3014, %v4263_v18   ;;  %v943_v49 = vpop.xlane.xlu1 %942  ;;  %v1035_v31 = vmul.f32 %v3093_v10, %v940_v45  ;;  %v1023_v59 = vadd.f32 %v3091_v52, %v1022_v26  ;;  %vm1040_vm0 = vweird.f32 %v3093_v10 }
 0x299   : > { %3094 = vrcp.f32 %v943_v49  ;;  %vm1041_vm3 = vmor %vm1039_vm2, %vm1040_vm0  ;;  %v1060_v24 = vand.u32 2147483648, %v943_v49  ;;  %vm1054_vm8 = vweird.f32 %v943_v49 }
 0x29a   : > { %v1036_v43 = vsub.f32 1.0, %v1035_v31  ;;  %v1027_v34 = vsel %vm1026_vm14, %v3091_v52, %v1023_v59  ;;  %v1046_v59 = vor.u32 1.1754944e-38, %v1045_v27 }
 0x29b   : > { %v1032_v21 = vsel %vm1029_vm15, %v1031_v36, %v1027_v34  ;;  %v1058_v34 = vand.u32 2147483647, %v943_v49  ;;  %v1061_v27 = vor.u32 1.1754944e-38, %v1060_v24 }
 0x29c   : > { %v1037_v20 = vmul.f32 %v3093_v10, %v1036_v43  ;;  %v4309_v11 = vmul.f32 %v4226_v5, %v1032_v21 }
 0x29d   : > { %vm1059_vm10 = vcmp.eq.f32.partialorder %v1058_v34, 8.507059e+37 }
 0x29e   : > { %3011 = vset.pattern.permute.xlu2 %v5029_v7  ;;  %3017 = vset.pattern.permute.xlu0 %v5028_v44  ;;  %v1038_v31 = vadd.f32 %v3093_v10, %v1037_v20 }
 0x29f   : > { %1755 = vperm.xlu2 %3011, %v4263_v18   ;;  %1679 = vperm.xlu0 %3017, %v4279_v6   ;;  %v3095_v40 = vpop.eup %3094 }
 0x2a0   : > { %3015 = vset.pattern.permute.xlu1 %v5027_v17  ;;  %v1050_v26 = vmul.f32 %v3095_v40, %v943_v49  ;;  %v1042_v52 = vsel %vm1041_vm3, %v3093_v10, %v1038_v31  ;;  %vm1055_vm7 = vweird.f32 %v3095_v40  ;;  %v1464_v10 = vlaneseq }
 0x2a1   : > { %1515 = vperm.xlu1 %3015, %v4279_v6   ;;  %vm1056_vm9 = vmor %vm1054_vm8, %vm1055_vm7 }
 0x2a2   : > { %v1051_v39 = vsub.f32 1.0, %v1050_v26  ;;  %v4336_v49 = vand.u32 127, %v1464_v10 }
 0x2a4   : > { %v1052_v4 = vmul.f32 %v3095_v40, %v1051_v39  ;;  %vm1490_vm11 = vcmp.eq.s32.totalorder %v4336_v49, %v4015_v13  ;;  %vm1658_vm1 = vcmp.eq.s32.totalorder %v4336_v49, %v4189_v22  ;;  %vm1578_vm13 = vcmp.eq.s32.totalorder %v4336_v49, %v4040_v46 }
 0x2a5   : > { %vm1899_vm15 = vcmp.eq.s32.totalorder %v4336_v49, %v4179_v50  ;;  %vm1738_vm3 = vcmp.eq.s32.totalorder %v4336_v49, %v4077_v55  ;;  %vm1491_vm7 = vcmp.eq.s32.totalorder %v4336_v49, %v4117_v29 }
 0x2a6   : > { %v1053_v43 = vadd.f32 %v3095_v40, %v1052_v4 }
 0x2a7   : > { %3012 = vset.pattern.permute.xlu2 %v5034_v2  ;;  %3023 = vset.pattern.permute.xlu0 %v5027_v17 }
 0x2a8   : > { %1835 = vperm.xlu2 %3012, %v4263_v18   ;;  %1520 = vperm.xlu0 %3023, %v4288_v3   ;;  %v1057_v39 = vsel %vm1056_vm9, %v3095_v40, %v1053_v43  ;;  %v4346_v40 = vadd.s32 128, %v4336_v49  ;;  %vm1659_vm9 = vcmp.eq.s32.totalorder %v4336_v49, %v4065_v42 }
 0x2a9   : > { %3018 = vset.pattern.permute.xlu1 %v5029_v7 }
 0x2aa   : > { %1759 = vperm.xlu1 %3018, %v4279_v6   ;;  %vm2187_vm12 = vcmp.eq.s32.totalorder %v4346_v40, %v4189_v22  ;;  %vm2139_vm14 = vcmp.eq.s32.totalorder %v4346_v40, %v4015_v13  ;;  %vm2163_vm0 = vcmp.eq.s32.totalorder %v4346_v40, %v4040_v46  ;;  %vm2260_vm2 = vcmp.eq.s32.totalorder %v4346_v40, %v4179_v50 }
 0x2ab   : > { %vm2140_vm8 = vcmp.eq.s32.totalorder %v4346_v40, %v4117_v29 }
 0x2b0   : > { %3013 = vset.pattern.permute.xlu2 %v5031_v38  ;;  %3026 = vset.pattern.permute.xlu0 %v5029_v7 }
 0x2b1   : > { %1915 = vperm.xlu2 %3013, %v4263_v18   ;;  %1763 = vperm.xlu0 %3026, %v4288_v3   ;;  %v1043_v18 = vand.u32 2147483647, %v940_v45 }
 0x2b2   : > { %3019 = vset.pattern.permute.xlu1 %v5034_v2 }
 0x2b3   : > { %1839 = vperm.xlu1 %3019, %v4279_v6   ;;  %vm1044_vm4 = vcmp.eq.f32.partialorder %v1043_v18, 8.507059e+37 }
 0x2b4   : > { %v1047_v5 = vsel %vm1044_vm4, %v1046_v59, %v1042_v52  ;;  %vm2211_vm4 = vcmp.eq.s32.totalorder %v4346_v40, %v4077_v55 }
 0x2b5   : > { %v4318_v45 = vmul.f32 %v4231_v1, %v1047_v5  ;;  %v1062_v1 = vsel %vm1059_vm10, %v1061_v27, %v1057_v39  ;;  %vm2188_vm10 = vcmp.eq.s32.totalorder %v4346_v40, %v4065_v42 }
 0x2b6   : > { %v4327_v18 = vmul.f32 %v4235_v0, %v1062_v1 }
 0x2b9   : > { %3016 = vset.pattern.permute.xlu2 %v5030_v12  ;;  %3027 = vset.pattern.permute.xlu0 %v5031_v38 }
 0x2ba   : > { %1599 = vperm.xlu2 %3016, %v4279_v6   ;;  %1923 = vperm.xlu0 %3027, %v4288_v3  }
 0x2bb   : > { %3020 = vset.pattern.permute.xlu1 %v5031_v38 }
 0x2bc   : > { %1919 = vperm.xlu1 %3020, %v4279_v6  }
 0x2c2   : > { %3022 = vset.pattern.permute.xlu2 %v5035_v16  ;;  %3030 = vset.pattern.permute.xlu0 %v5030_v12 }
 0x2c3   : > { %2079 = vperm.xlu2 %3022, %v4279_v6   ;;  %1607 = vperm.xlu0 %3030, %v4309_v11  }
 0x2c4   : > { %3021 = vset.pattern.permute.xlu1 %v5033_v62 }
 0x2c5   : > { %1999 = vperm.xlu1 %3021, %v4279_v6  }
 0x2cb   : > { %3025 = vset.pattern.permute.xlu2 %v5028_v44  ;;  %3039 = vset.pattern.permute.xlu0 %v5028_v44 }
 0x2cc   : > { %1683 = vperm.xlu2 %3025, %v4288_v3   ;;  %1691 = vperm.xlu0 %3039, %v4318_v45   ;;  %v1588_v6 = vpop.permute.xlu2 %1587 }
 0x2cd   : > { %3024 = vset.pattern.permute.xlu1 %v5030_v12  ;;  %v1618_v31 = vsel %vm1578_vm13, %v1588_v6, 0.0  ;;  %v2171_v52 = vsel %vm2163_vm0, %v1588_v6, 0.0  ;;  %vm2213_vm13 = vcmp.eq.s32.totalorder %v4346_v40, %v4145_v48  ;;  %vm1660_vm0 = vcmp.eq.s32.totalorder %v4336_v49, %v4053_v35 }
 0x2ce   : > { %1603 = vperm.xlu1 %3024, %v4288_v3  }
 0x2d4   : > { %3028 = vset.pattern.permute.xlu2 %v5033_v62  ;;  %3044 = vset.pattern.permute.xlu0 %v5027_v17 }
 0x2d5   : > { %2003 = vperm.xlu2 %3028, %v4288_v3   ;;  %1535 = vperm.xlu0 %3044, %v4327_v18  }
 0x2d6   : > { %3031 = vset.pattern.permute.xlu1 %v5028_v44 }
 0x2d7   : > { %1687 = vperm.xlu1 %3031, %v4309_v11  }
 0x2dd   : > { %3029 = vset.pattern.permute.xlu2 %v5027_v17  ;;  %3049 = vset.pattern.permute.xlu0 %v5033_v62 }
 0x2de   : > { %v4340_v0 = vpop.permute.xlu2 %1671  ;;  %1525 = vperm.xlu2 %3029, %v4309_v11   ;;  %1955 = vperm.xlu0 %3049, %v3738_v53  }
 0x2df   : > { %3032 = vset.pattern.permute.xlu1 %v5029_v7 }
 0x2e0   : > { %1767 = vperm.xlu1 %3032, %v4309_v11  }
 0x2e4   : > { %v1668_v36 = vpop.permute.xlu0 %1667 }
 0x2e5   : > { %v1698_v20 = vsel %vm1658_vm1, %v1668_v36, 0.0  ;;  %v2195_v26 = vsel %vm2187_vm12, %v1668_v36, 0.0  ;;  %v1501_v21 = vpop.permute.xlu1 %1500  ;;  %vm2164_vm1 = vcmp.eq.s32.totalorder %v4346_v40, %v4026_v56  ;;  %vm1740_vm12 = vcmp.eq.s32.totalorder %v4336_v49, %v4145_v48 }
 0x2e6   : > { %3033 = vset.pattern.permute.xlu2 %v5034_v2  ;;  %3050 = vset.pattern.permute.xlu0 %v5034_v2  ;;  %v1538_v22 = vsel %vm1490_vm11, %v1501_v21, 0.0  ;;  %v2147_v59 = vsel %vm2139_vm14, %v1501_v21, 0.0  ;;  %vm1579_vm11 = vcmp.eq.s32.totalorder %v4336_v49, %v4026_v56  ;;  %v1699_v56 = vsel %vm1659_vm9, %v4340_v0, 0.0 }
 0x2e7   : > { %v1912_v13 = vpop.permute.xlu2 %1911  ;;  %1847 = vperm.xlu2 %3033, %v4309_v11   ;;  %1851 = vperm.xlu0 %3050, %v4318_v45   ;;  %v1626_v46 = vadd.f32 %v1618_v31, %v1538_v22  ;;  %v2179_v4 = vadd.f32 %v2171_v52, %v2147_v59  ;;  %v2196_v48 = vsel %vm2188_vm10, %v4340_v0, 0.0  ;;  %vm1739_vm14 = vcmp.eq.s32.totalorder %v4336_v49, %v4163_v61 }
 0x2e8   : > { %v4372_v5 = vsel %vm1899_vm15, %v1912_v13, 0.0  ;;  %v4374_v43 = vsel %vm2260_vm2, %v1912_v13, 0.0  ;;  %3036 = vset.pattern.permute.xlu1 %v5035_v16  ;;  %vm2212_vm15 = vcmp.eq.s32.totalorder %v4346_v40, %v4163_v61  ;;  %vm2189_vm2 = vcmp.eq.s32.totalorder %v4346_v40, %v4053_v35 }
 0x2e9   : > { %2087 = vperm.xlu1 %3036, %v4309_v11   ;;  %v1706_v2 = vadd.f32 %v1698_v20, %v1626_v46  ;;  %v2203_v24 = vadd.f32 %v2195_v26, %v2179_v4  ;;  %vm1492_vm9 = vcmp.eq.s32.totalorder %v4336_v49, %v4006_v32  ;;  %vm2141_vm10 = vcmp.eq.s32.totalorder %v4346_v40, %v4006_v32 }
 0x2ee   : > { %v1748_v34 = vpop.permute.xlu1 %1747 }
 0x2ef   : > { %3034 = vset.pattern.permute.xlu2 %v5031_v38  ;;  %1810 = vperm.xlu0 %3050, %v3787_v54   ;;  %v1778_v50 = vsel %vm1738_vm3, %v1748_v34, 0.0  ;;  %v2219_v39 = vsel %vm2211_vm4, %v1748_v34, 0.0  ;;  %vm1820_vm3 = vcmp.eq.s32.totalorder %v4336_v49, %v4159_v57  ;;  %vm2237_vm4 = vcmp.eq.s32.totalorder %v4346_v40, %v4159_v57 }
 0x2f0   : > { %v4384_v27 = vpop.permute.xlu2 %1510  ;;  %1927 = vperm.xlu2 %3034, %v4309_v11   ;;  %v4387_v1 = vadd.f32 %v1778_v50, %v1706_v2  ;;  %v4389_v6 = vadd.f32 %v2219_v39, %v2203_v24 }
 0x2f1   : > { %3037 = vset.pattern.permute.xlu1 %v5027_v17  ;;  %v1540_v39 = vsel %vm1492_vm9, %v4384_v27, 0.0  ;;  %vm2061_vm9 = vcmp.eq.s32.totalorder %v4336_v49, %v4185_v47 }
 0x2f2   : > { %1530 = vperm.xlu1 %3037, %v4318_v45  }
 0x2f6   : > { %v1506_v54 = vpop.permute.xlu0 %1505 }
 0x2f7   : > { %v1539_v55 = vsel %vm1491_vm7, %v1506_v54, 0.0  ;;  %v2148_v36 = vsel %vm2140_vm8, %v1506_v54, 0.0  ;;  %1807 = vperm.xlu0 %3050, %v3841_v60   ;;  %vm1580_vm7 = vcmp.eq.s32.totalorder %v4336_v49, %v4149_v23  ;;  %vm2165_vm8 = vcmp.eq.s32.totalorder %v4346_v40, %v4149_v23 }
 0x2f8   : > { %3035 = vset.pattern.permute.xlu2 %v5033_v62  ;;  %v1592_v29 = vpop.permute.xlu1 %1591  ;;  %v2149_v54 = vsel %vm2141_vm10, %v4384_v27, 0.0  ;;  %vm2310_vm10 = vcmp.eq.s32.totalorder %v4346_v40, %v4185_v47 }
 0x2f9   : > { %v1756_v60 = vpop.permute.xlu2 %1755  ;;  %2007 = vperm.xlu2 %3035, %v4309_v11   ;;  %v1619_v20 = vsel %vm1579_vm11, %v1592_v29, 0.0  ;;  %v2172_v26 = vsel %vm2164_vm1, %v1592_v29, 0.0  ;;  %vm1980_vm11 = vcmp.eq.s32.totalorder %v4336_v49, %v4193_v58  ;;  %vm2285_vm1 = vcmp.eq.s32.totalorder %v4346_v40, %v4193_v58 }
 0x2fa   : > { %v1780_v21 = vsel %vm1740_vm12, %v1756_v60, 0.0  ;;  %v2221_v31 = vsel %vm2213_vm13, %v1756_v60, 0.0  ;;  %v1627_v52 = vadd.f32 %v1619_v20, %v1539_v55  ;;  %v2180_v22 = vadd.f32 %v2172_v26, %v2148_v36  ;;  %3040 = vset.pattern.permute.xlu1 %v5029_v7 }
 0x2fb   : > { %1771 = vperm.xlu1 %3040, %v4318_v45   ;;  %vm1900_vm12 = vcmp.eq.s32.totalorder %v4336_v49, %v4175_v63  ;;  %vm2261_vm13 = vcmp.eq.s32.totalorder %v4346_v40, %v4175_v63 }
 0x2fc   : > { %v1707_v11 = vadd.f32 %v1699_v56, %v1627_v52  ;;  %v2204_v59 = vadd.f32 %v2196_v48, %v2180_v22 }
 0x2ff   : > { %v1752_v13 = vpop.permute.xlu0 %1751  ;;  %1843 = vperm.xlu0 %3050, %v4288_v3  }
 0x300   : > { %v1779_v46 = vsel %vm1739_vm14, %v1752_v13, 0.0  ;;  %v2220_v4 = vsel %vm2212_vm15, %v1752_v13, 0.0  ;;  %vm1493_vm14 = vcmp.eq.s32.totalorder %v4336_v49, %v4129_v30  ;;  %vm2142_vm15 = vcmp.eq.s32.totalorder %v4346_v40, %v4129_v30 }
 0x301   : > { %3038 = vset.pattern.permute.xlu2 %v5030_v12  ;;  %v1676_v42 = vpop.permute.xlu1 %1675  ;;  %v4432_v0 = vadd.f32 %v1779_v46, %v1707_v11  ;;  %v4434_v2 = vadd.f32 %v2220_v4, %v2204_v59 }
 0x302   : > { %v1836_v61 = vpop.permute.xlu2 %1835  ;;  %1611 = vperm.xlu2 %3038, %v4318_v45   ;;  %v1700_v24 = vsel %vm1660_vm0, %v1676_v42, 0.0  ;;  %v2197_v34 = vsel %vm2189_vm2, %v1676_v42, 0.0  ;;  %vm1581_vm0 = vcmp.eq.s32.totalorder %v4336_v49, %v4048_v8  ;;  %vm2166_vm2 = vcmp.eq.s32.totalorder %v4346_v40, %v4048_v8 }
 0x303   : > { %v1860_v50 = vsel %vm1820_vm3, %v1836_v61, 0.0  ;;  %v2245_v35 = vsel %vm2237_vm4, %v1836_v61, 0.0  ;;  %3041 = vset.pattern.permute.xlu1 %v5031_v38  ;;  %vm1661_vm3 = vcmp.eq.s32.totalorder %v4336_v49, %v4074_v14  ;;  %vm2190_vm4 = vcmp.eq.s32.totalorder %v4346_v40, %v4074_v14 }
 0x304   : > { %1931 = vperm.xlu1 %3041, %v4318_v45  }
 0x307   : > { %1798 = vperm.xlu0 %3050, %v3873_v51  }
 0x308   : > { %v1596_v57 = vpop.permute.xlu0 %1595 }
 0x309   : > { %v1620_v55 = vsel %vm1580_vm7, %v1596_v57, 0.0  ;;  %v2173_v36 = vsel %vm2165_vm8, %v1596_v57, 0.0  ;;  %vm1741_vm7 = vcmp.eq.s32.totalorder %v4336_v49, %v4115_v25  ;;  %vm2214_vm8 = vcmp.eq.s32.totalorder %v4346_v40, %v4115_v25 }
 0x30a   : > { %v1628_v23 = vadd.f32 %v1620_v55, %v1540_v39  ;;  %v2181_v29 = vadd.f32 %v2173_v36, %v2149_v54  ;;  %3047 = vset.pattern.permute.xlu2 %v5033_v62  ;;  %v1996_v60 = vpop.permute.xlu1 %1995 }
 0x30b   : > { %v1916_v32 = vpop.permute.xlu2 %1915  ;;  %1991 = vperm.xlu2 %3047, %v4253_v15   ;;  %v2020_v27 = vsel %vm1980_vm11, %v1996_v60, 0.0  ;;  %v2293_v20 = vsel %vm2285_vm1, %v1996_v60, 0.0  ;;  %vm1742_vm11 = vcmp.eq.s32.totalorder %v4336_v49, %v4097_v28  ;;  %vm2215_vm1 = vcmp.eq.s32.totalorder %v4346_v40, %v4097_v28 }
 0x30c   : > { %v1708_v26 = vadd.f32 %v1700_v24, %v1628_v23  ;;  %v2205_v52 = vadd.f32 %v2197_v34, %v2181_v29  ;;  %v1940_v22 = vsel %vm1900_vm12, %v1916_v32, 0.0  ;;  %v2269_v58 = vsel %vm2261_vm13, %v1916_v32, 0.0  ;;  %3042 = vset.pattern.permute.xlu1 %v5033_v62 }
 0x30d   : > { %2011 = vperm.xlu1 %3042, %v4318_v45   ;;  %vm1821_vm12 = vcmp.eq.s32.totalorder %v4336_v49, %v4137_v41  ;;  %vm2238_vm13 = vcmp.eq.s32.totalorder %v4346_v40, %v4137_v41 }
 0x30e   : > { %v1788_v56 = vadd.f32 %v1780_v21, %v1708_v26  ;;  %v2229_v48 = vadd.f32 %v2221_v31, %v2205_v52 }
 0x30f   : > { %1831 = vperm.xlu0 %3050, %v4253_v15  }
 0x310   : > { %v1868_v11 = vadd.f32 %v1860_v50, %v1788_v56  ;;  %v2253_v59 = vadd.f32 %v2245_v35, %v2229_v48  ;;  %v5036_v48 = vld [vmem:[#allocation44_spill] sm:$0xff] }
 0x311   : > { %v1680_v63 = vpop.permute.xlu0 %1679 }
 0x312   : > { %v1948_v13 = vadd.f32 %v1940_v22, %v1868_v11  ;;  %v2277_v46 = vadd.f32 %v2269_v58, %v2253_v59  ;;  %v1701_v50 = vsel %vm1661_vm3, %v1680_v63, 0.0  ;;  %v2198_v35 = vsel %vm2190_vm4, %v1680_v63, 0.0 }
 0x313   : > { %3051 = vset.pattern.permute.xlu2 %v5028_v44  ;;  %v1516_v21 = vpop.permute.xlu1 %1515  ;;  %vm1901_vm3 = vcmp.eq.s32.totalorder %v4336_v49, %v4177_v9  ;;  %vm2262_vm4 = vcmp.eq.s32.totalorder %v4346_v40, %v4177_v9 }
 0x314   : > { %v4476_v31 = vadd.f32 %v2020_v27, %v1948_v13  ;;  %v4478_v4 = vadd.f32 %v2293_v20, %v2277_v46  ;;  %v1600_v42 = vpop.permute.xlu2 %1599  ;;  %1695 = vperm.xlu2 %3051, %v4327_v18   ;;  %v1541_v61 = vsel %vm1493_vm14, %v1516_v21, 0.0  ;;  %v2150_v24 = vsel %vm2142_vm15, %v1516_v21, 0.0  ;;  %v5037_v21 = vld [vmem:[#allocation53_spill] sm:$0xff] }
 0x315   : > { %v1621_v34 = vsel %vm1581_vm0, %v1600_v42, 0.0  ;;  %v2174_v30 = vsel %vm2166_vm2, %v1600_v42, 0.0  ;;  %3043 = vset.pattern.permute.xlu1 %v5035_v16  ;;  %vm1662_vm14 = vcmp.eq.s32.totalorder %v4336_v49, %v4062_v37  ;;  %vm2191_vm15 = vcmp.eq.s32.totalorder %v4346_v40, %v4062_v37 }
 0x316   : > { %v1629_v8 = vadd.f32 %v1621_v34, %v1541_v61  ;;  %v2182_v44 = vadd.f32 %v2174_v30, %v2150_v24  ;;  %2091 = vperm.xlu1 %3043, %v4318_v45   ;;  %vm1902_vm0 = vcmp.eq.s32.totalorder %v4336_v49, %v4155_v33  ;;  %vm2263_vm2 = vcmp.eq.s32.totalorder %v4346_v40, %v4155_v33  ;;  %v5038_v61 = vld [vmem:[#allocation21_spill] sm:$0xff] }
 0x317   : > { %1827 = vperm.xlu0 %3050, %v4240_v19  }
 0x318   : > { %v1709_v57 = vadd.f32 %v1701_v50, %v1629_v8  ;;  %v2206_v39 = vadd.f32 %v2198_v35, %v2182_v44 }
 0x31a   : > { %v4488_v54 = vpop.permute.xlu0 %1520 }
 0x31c   : > { %3052 = vset.pattern.permute.xlu2 %v5029_v7  ;;  %v1760_v14 = vpop.permute.xlu1 %1759 }
 0x31d   : > { %v2080_v45 = vpop.permute.xlu2 %2079  ;;  %1775 = vperm.xlu2 %3052, %v4327_v18   ;;  %v1781_v55 = vsel %vm1741_vm7, %v1760_v14, 0.0  ;;  %v2222_v36 = vsel %vm2214_vm8, %v1760_v14, 0.0  ;;  %vm1982_vm7 = vcmp.eq.s32.totalorder %v4336_v49, %v5036_v48  ;;  %vm2287_vm8 = vcmp.eq.s32.totalorder %v4346_v40, %v5036_v48 }
 0x31e   : > { %v4500_v23 = vsel %vm2061_vm9, %v2080_v45, 0.0  ;;  %v4502_v29 = vsel %vm2310_vm10, %v2080_v45, 0.0  ;;  %v1789_v60 = vadd.f32 %v1781_v55, %v1709_v57  ;;  %v2230_v25 = vadd.f32 %v2222_v36, %v2206_v39  ;;  %3045 = vset.pattern.permute.xlu1 %v5030_v12 }
 0x31f   : > { %1855 = vperm.xlu0 %3050, %v4327_v18   ;;  %1615 = vperm.xlu1 %3045, %v4327_v18   ;;  %vm1495_vm9 = vcmp.eq.s32.totalorder %v4336_v49, %v5038_v61  ;;  %vm2144_vm10 = vcmp.eq.s32.totalorder %v4346_v40, %v5038_v61 }
 0x323   : > { %v1764_v47 = vpop.permute.xlu0 %1763 }
 0x324   : > { %v4511_v7 = vsel %vm1742_vm11, %v1764_v47, 0.0  ;;  %v4513_v32 = vsel %vm2215_vm1, %v1764_v47, 0.0 }
 0x325   : > { %3053 = vset.pattern.permute.xlu2 %v5031_v38  ;;  %v1840_v12 = vpop.permute.xlu1 %1839 }
 0x326   : > { %v1684_v28 = vpop.permute.xlu2 %1683  ;;  %1935 = vperm.xlu2 %3053, %v4327_v18   ;;  %v1861_v27 = vsel %vm1821_vm12, %v1840_v12, 0.0  ;;  %v2246_v20 = vsel %vm2238_vm13, %v1840_v12, 0.0  ;;  %v5043_v12 = vld [vmem:[#allocation24_spill] sm:$0xff] }
 0x327   : > { %v4525_v26 = vsel %vm1662_vm14, %v1684_v28, 0.0  ;;  %v4527_v52 = vsel %vm2191_vm15, %v1684_v28, 0.0  ;;  %3055 = vset.pattern.permute.xlu0 %v5035_v16  ;;  %v1869_v41 = vadd.f32 %v1861_v27, %v1789_v60  ;;  %v2254_v22 = vadd.f32 %v2246_v20, %v2230_v25  ;;  %3046 = vset.pattern.permute.xlu1 %v5031_v38  ;;  %v5042_v25 = vld [vmem:[#allocation22_spill] sm:$0xff] }
 0x328   : > { %2095 = vperm.xlu0 %3055, %v4327_v18   ;;  %1907 = vperm.xlu1 %3046, %v4240_v19  }
 0x32c   : > { %v1924_v37 = vpop.permute.xlu0 %1923 }
 0x32d   : > { %v4537_v58 = vsel %vm1902_vm0, %v1924_v37, 0.0  ;;  %v4539_v56 = vsel %vm2263_vm2, %v1924_v37, 0.0  ;;  %vm1494_vm0 = vcmp.eq.s32.totalorder %v4336_v49, %v5042_v25  ;;  %vm1582_vm2 = vcmp.eq.s32.totalorder %v4336_v49, %v5043_v12 }
 0x32e   : > { %3054 = vset.pattern.permute.xlu2 %v5033_v62  ;;  %v1920_v38 = vpop.permute.xlu1 %1919 }
 0x32f   : > { %v2004_v33 = vpop.permute.xlu2 %2003  ;;  %2015 = vperm.xlu2 %3054, %v4327_v18   ;;  %v1941_v11 = vsel %vm1901_vm3, %v1920_v38, 0.0  ;;  %v2270_v59 = vsel %vm2262_vm4, %v1920_v38, 0.0  ;;  %v5039_v18 = vld [vmem:[#allocation46_spill] sm:$0xff]  ;;  %vm2167_vm3 = vcmp.eq.s32.totalorder %v4346_v40, %v5043_v12  ;;  %vm2143_vm4 = vcmp.eq.s32.totalorder %v4346_v40, %v5042_v25 }
 0x330   : > { %v4551_v63 = vsel %vm1982_vm7, %v2004_v33, 0.0  ;;  %v4553_v13 = vsel %vm2287_vm8, %v2004_v33, 0.0  ;;  %2083 = vperm.xlu0 %3055, %v4288_v3   ;;  %v1949_v9 = vadd.f32 %v1941_v11, %v1869_v41  ;;  %v2278_v46 = vadd.f32 %v2270_v59, %v2254_v22  ;;  %3048 = vset.pattern.permute.xlu1 %v5035_v16  ;;  %v5040_v3 = vld [vmem:[#allocation26_spill] sm:$0xff]  ;;  %v5044_v11 = vld [vmem:[#allocation51_spill] sm:$0xff] }
 0x331   : > { %2075 = vperm.xlu1 %3048, %v5037_v21   ;;  %vm1981_vm11 = vcmp.eq.s32.totalorder %v4336_v49, %v5039_v18  ;;  %vm2286_vm1 = vcmp.eq.s32.totalorder %v4346_v40, %v5039_v18  ;;  %vm1583_vm12 = vcmp.eq.s32.totalorder %v4336_v49, %v5040_v3  ;;  %vm2168_vm13 = vcmp.eq.s32.totalorder %v4346_v40, %v5040_v3 }
 0x332   : > { %v2151_v28 = vsel %vm2143_vm4, %v4488_v54, 0.0  ;;  %vm1663_vm7 = vcmp.eq.s32.totalorder %v4336_v49, %v5044_v11  ;;  %vm2192_vm8 = vcmp.eq.s32.totalorder %v4346_v40, %v5044_v11  ;;  %v5051_v11 = vld [vmem:[#allocation40_spill] sm:$0xff] }
 0x335   : > { %v1608_v42 = vpop.permute.xlu0 %1607 }
 0x336   : > { %v1623_v34 = vsel %vm1583_vm12, %v1608_v42, 0.0  ;;  %v2176_v30 = vsel %vm2168_vm13, %v1608_v42, 0.0 }
 0x337   : > { %v2000_v24 = vpop.permute.xlu1 %1999  ;;  %3056 = vset.pattern.permute.xlu2 %v5035_v16 }
 0x338   : > { %v1526_v8 = vpop.permute.xlu2 %1525  ;;  %2071 = vperm.xlu0 %3055, %v4253_v15   ;;  %v2021_v44 = vsel %vm1981_vm11, %v2000_v24, 0.0  ;;  %v2294_v50 = vsel %vm2286_vm1, %v2000_v24, 0.0  ;;  %2038 = vperm.xlu2 %3056, %v3873_v51   ;;  %v5041_v15 = vld [vmem:[#allocation28_spill] sm:$0xff]  ;;  %v5046_v24 = vld [vmem:[#allocation31_spill] sm:$0xff] }
 0x339   : > { %v1543_v35 = vsel %vm1495_vm9, %v1526_v8, 0.0  ;;  %v2152_v57 = vsel %vm2144_vm10, %v1526_v8, 0.0  ;;  %v2029_v39 = vadd.f32 %v2021_v44, %v1949_v9  ;;  %v2302_v14 = vadd.f32 %v2294_v50, %v2278_v46  ;;  %3057 = vset.pattern.permute.xlu1 %v5033_v62  ;;  %v5045_v9 = vld [vmem:[#allocation32_spill] sm:$0xff]  ;;  %v5047_v8 = vld [vmem:[#allocation43_spill] sm:$0xff] }
 0x33a   : > { %v1631_v45 = vadd.f32 %v1623_v34, %v1543_v35  ;;  %v2184_v55 = vadd.f32 %v2176_v30, %v2152_v57  ;;  %1987 = vperm.xlu1 %3057, %v4240_v19   ;;  %vm1664_vm14 = vcmp.eq.s32.totalorder %v4336_v49, %v5041_v15  ;;  %vm2193_vm15 = vcmp.eq.s32.totalorder %v4346_v40, %v5041_v15 }
 0x33b   : > { %v4576_v36 = vadd.f32 %v4500_v23, %v2029_v39  ;;  %v4579_v60 = vadd.f32 %v4502_v29, %v2302_v14  ;;  %v1542_v29 = vsel %vm1494_vm0, %v4488_v54, 0.0  ;;  %vm1743_vm9 = vcmp.eq.s32.totalorder %v4336_v49, %v5045_v9  ;;  %v5048_v39 = vld [vmem:[#allocation25_spill] sm:$0xff] }
 0x33c   : > { %vm2216_vm10 = vcmp.eq.s32.totalorder %v4346_v40, %v5045_v9  ;;  %vm1824_vm11 = vcmp.eq.s32.totalorder %v4336_v49, %v5046_v24  ;;  %vm2241_vm1 = vcmp.eq.s32.totalorder %v4346_v40, %v5046_v24  ;;  %vm2063_vm12 = vcmp.eq.s32.totalorder %v4336_v49, %v5047_v8 }
 0x33d   : > { %vm2312_vm13 = vcmp.eq.s32.totalorder %v4346_v40, %v5047_v8 }
 0x33e   : > { %v1692_v51 = vpop.permute.xlu0 %1691 }
 0x33f   : > { %v4587_v62 = vsel %vm1664_vm14, %v1692_v51, 0.0  ;;  %v4589_v47 = vsel %vm2193_vm15, %v1692_v51, 0.0  ;;  %vm1584_vm14 = vcmp.eq.s32.totalorder %v4336_v49, %v5048_v39  ;;  %vm2169_vm15 = vcmp.eq.s32.totalorder %v4346_v40, %v5048_v39  ;;  %v5050_v51 = vld [vmem:[#allocation39_spill] sm:$0xff] }
 0x340   : > { %v1604_v23 = vpop.permute.xlu1 %1603  ;;  %2035 = vperm.xlu2 %3056, %v3738_v53   ;;  %3061 = vset.pattern.permute.xlu0 %v5027_v17 }
 0x341   : > { %v1622_v27 = vsel %vm1582_vm2, %v1604_v23, 0.0  ;;  %v2175_v20 = vsel %vm2167_vm3, %v1604_v23, 0.0  ;;  %v1848_v37 = vpop.permute.xlu2 %1847 }
 0x342   : > { %v1630_v41 = vadd.f32 %v1622_v27, %v1542_v29  ;;  %v2183_v22 = vadd.f32 %v2175_v20, %v2151_v28  ;;  %3058 = vset.pattern.permute.xlu1 %v5035_v16 }
 0x343   : > { %2067 = vperm.xlu1 %3058, %v4240_v19  }
 0x344   : > { %v1710_v38 = vadd.f32 %v4525_v26, %v1630_v41  ;;  %v2207_v48 = vadd.f32 %v4527_v52, %v2183_v22 }
 0x346   : > { %v4606_v53 = vadd.f32 %v4511_v7, %v1710_v38  ;;  %v4609_v33 = vadd.f32 %v4513_v32, %v2207_v48 }
 0x347   : > { %v4611_v54 = vpop.permute.xlu0 %1535 }
 0x348   : > { %3059 = vset.pattern.permute.xlu2 %v5027_v17 }
 0x349   : > { %v1688_v16 = vpop.permute.xlu1 %1687 }
 0x34a   : > { %v1703_v19 = vsel %vm1663_vm7, %v1688_v16, 0.0  ;;  %v2200_v26 = vsel %vm2192_vm8, %v1688_v16, 0.0  ;;  %v1928_v7 = vpop.permute.xlu2 %1927  ;;  %vm1496_vm7 = vcmp.eq.s32.totalorder %v4336_v49, %v5050_v51  ;;  %vm2145_vm8 = vcmp.eq.s32.totalorder %v4346_v40, %v5050_v51 }
 0x34b   : > { %v1711_v52 = vadd.f32 %v1703_v19, %v1631_v45  ;;  %v2208_v59 = vadd.f32 %v2200_v26, %v2184_v55  ;;  %3060 = vset.pattern.permute.xlu1 %v5027_v17  ;;  %v5049_v45 = vld [vmem:[#allocation36_spill] sm:$0xff] }
 0x34c   : > { %vm1903_vm3 = vcmp.eq.s32.totalorder %v4336_v49, %v5049_v45  ;;  %vm2264_vm4 = vcmp.eq.s32.totalorder %v4346_v40, %v5049_v45 }
 0x34d   : > { %v1943_v41 = vsel %vm1903_vm3, %v1928_v7, 0.0  ;;  %v2272_v22 = vsel %vm2264_vm4, %v1928_v7, 0.0 }
 0x350   : > { %v4619_v32 = vpop.permute.xlu0 %1955 }
 0x352   : > { %v1768_v46 = vpop.permute.xlu1 %1767 }
 0x353   : > { %v1783_v21 = vsel %vm1743_vm9, %v1768_v46, 0.0  ;;  %v2224_v42 = vsel %vm2216_vm10, %v1768_v46, 0.0  ;;  %v2008_v3 = vpop.permute.xlu2 %2007  ;;  %vm1983_vm9 = vcmp.eq.s32.totalorder %v4336_v49, %v5051_v11  ;;  %vm2288_vm10 = vcmp.eq.s32.totalorder %v4346_v40, %v5051_v11  ;;  %v5055_v11 = vld [vmem:[#allocation48_spill] sm:$0xff] }
 0x354   : > { %v1791_v61 = vadd.f32 %v1783_v21, %v1711_v52  ;;  %v2232_v18 = vadd.f32 %v2224_v42, %v2208_v59  ;;  %v2023_v19 = vsel %vm1983_vm9, %v2008_v3, 0.0  ;;  %v2296_v26 = vsel %vm2288_vm10, %v2008_v3, 0.0 }
 0x359   : > { %v1852_v17 = vpop.permute.xlu0 %1851 }
 0x35a   : > { %v1864_v34 = vsel %vm1824_vm11, %v1852_v17, 0.0  ;;  %v2249_v30 = vsel %vm2241_vm1, %v1852_v17, 0.0 }
 0x35b   : > { %v2088_v44 = vpop.permute.xlu1 %2087 }
 0x35c   : > { %v2103_v50 = vsel %vm2063_vm12, %v2088_v44, 0.0  ;;  %v2320_v35 = vsel %vm2312_vm13, %v2088_v44, 0.0  ;;  %v1612_v14 = vpop.permute.xlu2 %1611 }
 0x35d   : > { %v1624_v29 = vsel %vm1584_vm14, %v1612_v14, 0.0  ;;  %v2177_v28 = vsel %vm2169_vm15, %v1612_v14, 0.0 }
 0x361   : > { %v1811_v57 = vpop.permute.xlu0 %1810 }
 0x362   : > { %vm1823_vm0 = vcmp.eq.s32.totalorder %v4336_v49, %v1811_v57  ;;  %vm2240_vm2 = vcmp.eq.s32.totalorder %v4346_v40, %v1811_v57 }
 0x363   : > { %v1863_v55 = vsel %vm1823_vm0, %v1848_v37, 0.0  ;;  %v2248_v15 = vsel %vm2240_vm2, %v1848_v37, 0.0 }
 0x364   : > { %v1871_v25 = vadd.f32 %v1863_v55, %v1791_v61  ;;  %v2256_v12 = vadd.f32 %v2248_v15, %v2232_v18  ;;  %v1531_v23 = vpop.permute.xlu1 %1530  ;;  %v5052_v61 = vld [vmem:[#allocation29_spill] sm:$0xff]  ;;  %v5053_v15 = vld [vmem:[#allocation35_spill] sm:$0xff] }
 0x365   : > { %v1544_v27 = vsel %vm1496_vm7, %v1531_v23, 0.0  ;;  %v2153_v20 = vsel %vm2145_vm8, %v1531_v23, 0.0  ;;  %vm1744_vm11 = vcmp.eq.s32.totalorder %v4336_v49, %v5052_v61  ;;  %vm2217_vm1 = vcmp.eq.s32.totalorder %v4346_v40, %v5052_v61  ;;  %v1992_v8 = vpop.permute.xlu2 %1991 }
 0x366   : > { %v1632_v38 = vadd.f32 %v1624_v29, %v1544_v27  ;;  %v2185_v48 = vadd.f32 %v2177_v28, %v2153_v20  ;;  %v1951_v37 = vadd.f32 %v1943_v41, %v1871_v25  ;;  %v2280_v16 = vadd.f32 %v2272_v22, %v2256_v12 }
 0x367   : > { %vm1904_vm14 = vcmp.eq.s32.totalorder %v4336_v49, %v5053_v15  ;;  %vm2265_vm15 = vcmp.eq.s32.totalorder %v4346_v40, %v5053_v15  ;;  %vm1979_vm7 = vcmp.eq.s32.totalorder %v4336_v49, %v5055_v11  ;;  %vm2284_vm8 = vcmp.eq.s32.totalorder %v4346_v40, %v5055_v11 }
 0x368   : > { %v1712_v52 = vadd.f32 %v4587_v62, %v1632_v38  ;;  %v2209_v59 = vadd.f32 %v4589_v47, %v2185_v48  ;;  %v2031_v46 = vadd.f32 %v2023_v19, %v1951_v37  ;;  %v2304_v21 = vadd.f32 %v2296_v26, %v2280_v16 }
 0x369   : > { %v1808_v9 = vpop.permute.xlu0 %1807  ;;  %v2019_v26 = vsel %vm1979_vm7, %v1992_v8, 0.0 }
 0x36a   : > { %v4653_v7 = vadd.f32 %v2103_v50, %v2031_v46  ;;  %v4655_v42 = vadd.f32 %v2320_v35, %v2304_v21  ;;  %vm1822_vm12 = vcmp.eq.s32.totalorder %v4336_v49, %v1808_v9  ;;  %vm2239_vm13 = vcmp.eq.s32.totalorder %v4346_v40, %v1808_v9  ;;  %v5057_v46 = vld [vmem:[#allocation49_spill] sm:$0xff] }
 0x36d   : > { %v1772_v18 = vpop.permute.xlu1 %1771 }
 0x36e   : > { %v1784_v24 = vsel %vm1744_vm11, %v1772_v18, 0.0  ;;  %v2225_v3 = vsel %vm2217_vm1, %v1772_v18, 0.0  ;;  %v1696_v23 = vpop.permute.xlu2 %1695  ;;  %vm1818_vm11 = vcmp.eq.s32.totalorder %v4336_v49, %v5057_v46  ;;  %vm2235_vm1 = vcmp.eq.s32.totalorder %v4346_v40, %v5057_v46 }
 0x36f   : > { %v1792_v17 = vadd.f32 %v1784_v24, %v1712_v52  ;;  %v2233_v62 = vadd.f32 %v2225_v3, %v2209_v59  ;;  %v2292_v52 = vsel %vm2284_vm8, %v1992_v8, 0.0 }
 0x371   : > { %v1844_v47 = vpop.permute.xlu0 %1843  ;;  %v1872_v44 = vadd.f32 %v1864_v34, %v1792_v17  ;;  %v2257_v50 = vadd.f32 %v2249_v30, %v2233_v62 }
 0x372   : > { %v1862_v35 = vsel %vm1822_vm12, %v1844_v47, 0.0  ;;  %v2247_v57 = vsel %vm2239_vm13, %v1844_v47, 0.0  ;;  %v5058_v47 = vld [vmem:[#allocation41_spill] sm:$0xff] }
 0x373   : > { %v1870_v39 = vadd.f32 %v1862_v35, %v4606_v53  ;;  %v2255_v14 = vadd.f32 %v2247_v57, %v4609_v33  ;;  %vm1585_vm12 = vcmp.eq.s32.totalorder %v4336_v49, %v5058_v47  ;;  %vm2170_vm13 = vcmp.eq.s32.totalorder %v4346_v40, %v5058_v47 }
 0x375   : > { %v1950_v45 = vadd.f32 %v4537_v58, %v1870_v39  ;;  %v2279_v55 = vadd.f32 %v4539_v56, %v2255_v14  ;;  %v5054_v56 = vld [vmem:[#allocation37_spill] sm:$0xff]  ;;  %v5060_v14 = vld [vmem:[#allocation27_spill] sm:$0xff] }
 0x376   : > { %v1932_v51 = vpop.permute.xlu1 %1931  ;;  %vm1984_vm0 = vcmp.eq.s32.totalorder %v4336_v49, %v5054_v56  ;;  %vm2289_vm2 = vcmp.eq.s32.totalorder %v4346_v40, %v5054_v56 }
 0x377   : > { %v1944_v25 = vsel %vm1904_vm14, %v1932_v51, 0.0  ;;  %v2273_v34 = vsel %vm2265_vm15, %v1932_v51, 0.0  ;;  %v4672_v30 = vadd.f32 %v4551_v63, %v1950_v45  ;;  %v4675_v53 = vadd.f32 %v4553_v13, %v2279_v55  ;;  %v1776_v37 = vpop.permute.xlu2 %1775 }
 0x378   : > { %v1952_v33 = vadd.f32 %v1944_v25, %v1872_v44  ;;  %v2281_v12 = vadd.f32 %v2273_v34, %v2257_v50  ;;  %v5059_v44 = vld [vmem:[#allocation23_spill] sm:$0xff]  ;;  %v5061_v25 = vld [vmem:[#allocation42_spill] sm:$0xff] }
 0x379   : > { %v1799_v58 = vpop.permute.xlu0 %1798  ;;  %vm1497_vm14 = vcmp.eq.s32.totalorder %v4336_v49, %v5059_v44  ;;  %vm2146_vm15 = vcmp.eq.s32.totalorder %v4346_v40, %v5059_v44 }
 0x37a   : > { %vm1819_vm3 = vcmp.eq.s32.totalorder %v4336_v49, %v1799_v58  ;;  %vm2236_vm4 = vcmp.eq.s32.totalorder %v4346_v40, %v1799_v58  ;;  %v2154_v35 = vsel %vm2146_vm15, %v4611_v54, 0.0  ;;  %v5062_v58 = vld [vmem:[#allocation30_spill] sm:$0xff] }
 0x37b   : > { %vm1825_vm7 = vcmp.eq.s32.totalorder %v4336_v49, %v5062_v58  ;;  %vm2242_vm8 = vcmp.eq.s32.totalorder %v4346_v40, %v5062_v58 }
 0x37f   : > { %v2012_v29 = vpop.permute.xlu1 %2011 }
 0x380   : > { %v2024_v28 = vsel %vm1984_vm0, %v2012_v29, 0.0  ;;  %v2297_v27 = vsel %vm2289_vm2, %v2012_v29, 0.0  ;;  %v1936_v8 = vpop.permute.xlu2 %1935  ;;  %vm1665_vm0 = vcmp.eq.s32.totalorder %v4336_v49, %v5060_v14  ;;  %vm2194_vm2 = vcmp.eq.s32.totalorder %v4346_v40, %v5060_v14  ;;  %v5068_v14 = vld [vmem:[#allocation52_spill] sm:$0xff] }
 0x381   : > { %v1832_v63 = vpop.permute.xlu0 %1831  ;;  %v2032_v13 = vadd.f32 %v2024_v28, %v1952_v33  ;;  %v2305_v20 = vadd.f32 %v2297_v27, %v2281_v12  ;;  %v1705_v15 = vsel %vm1665_vm0, %v1696_v23, 0.0  ;;  %v2202_v51 = vsel %vm2194_vm2, %v1696_v23, 0.0  ;;  %v5063_v27 = vld [vmem:[#allocation33_spill] sm:$0xff] }
 0x382   : > { %v1859_v41 = vsel %vm1819_vm3, %v1832_v63, 0.0  ;;  %v2244_v22 = vsel %vm2236_vm4, %v1832_v63, 0.0  ;;  %vm1745_vm3 = vcmp.eq.s32.totalorder %v4336_v49, %v5061_v25  ;;  %vm2218_vm4 = vcmp.eq.s32.totalorder %v4346_v40, %v5061_v25 }
 0x383   : > { %v1867_v38 = vadd.f32 %v1859_v41, %v4432_v0  ;;  %v2252_v48 = vadd.f32 %v2244_v22, %v4434_v2  ;;  %v5056_v0 = vld [vmem:[#allocation45_spill] sm:$0xff]  ;;  %v1785_v33 = vsel %vm1745_vm3, %v1776_v37, 0.0  ;;  %v2226_v12 = vsel %vm2218_vm4, %v1776_v37, 0.0  ;;  %v5064_v41 = vld [vmem:[#allocation34_spill] sm:$0xff] }
 0x384   : > { %vm2064_vm9 = vcmp.eq.s32.totalorder %v4336_v49, %v5056_v0  ;;  %vm2313_vm10 = vcmp.eq.s32.totalorder %v4346_v40, %v5056_v0  ;;  %v5065_v22 = vld [vmem:[#allocation50_spill] sm:$0xff]  ;;  %vm2060_vm3 = vcmp.eq.s32.totalorder %v4336_v49, %v5068_v14  ;;  %vm2309_vm4 = vcmp.eq.s32.totalorder %v4346_v40, %v5068_v14 }
 0x385   : > { %v1947_v16 = vadd.f32 %v4372_v5, %v1867_v38  ;;  %v2276_v19 = vadd.f32 %v4374_v43, %v2252_v48 }
 0x387   : > { %v4691_v59 = vadd.f32 %v2019_v26, %v1947_v16  ;;  %v4693_v9 = vadd.f32 %v2292_v52, %v2276_v19 }
 0x388   : > { %v2092_v2 = vpop.permute.xlu1 %2091 }
 0x389   : > { %v1828_v5 = vpop.permute.xlu0 %1827  ;;  %v2104_v43 = vsel %vm2064_vm9, %v2092_v2, 0.0  ;;  %v2321_v21 = vsel %vm2313_vm10, %v2092_v2, 0.0  ;;  %vm1905_vm9 = vcmp.eq.s32.totalorder %v4336_v49, %v5063_v27  ;;  %vm2266_vm10 = vcmp.eq.s32.totalorder %v4346_v40, %v5063_v27  ;;  %v2016_v63 = vpop.permute.xlu2 %2015  ;;  %v2424_v27 = vld [vmem:[%s4882_s16] sm:$0xff] }
 0x38a   : > { %v1858_v61 = vsel %vm1818_vm11, %v1828_v5, 0.0  ;;  %v2243_v18 = vsel %vm2235_vm1, %v1828_v5, 0.0  ;;  %v4705_v17 = vadd.f32 %v2104_v43, %v2032_v13  ;;  %v4707_v62 = vadd.f32 %v2321_v21, %v2305_v20  ;;  %v5066_v43 = vld [vmem:[#allocation38_spill] sm:$0xff]  ;;  %2427 = vperm.xlu0 %3061, %v2424_v27  }
 0x38b   : > { %v1866_v24 = vadd.f32 %v1858_v61, %v4387_v1  ;;  %v2251_v3 = vadd.f32 %v2243_v18, %v4389_v6  ;;  %v1545_v6 = vsel %vm1497_vm14, %v4611_v54, 0.0  ;;  %vm1985_vm11 = vcmp.eq.s32.totalorder %v4336_v49, %v5064_v41 }
 0x38c   : > { %vm2290_vm1 = vcmp.eq.s32.totalorder %v4346_v40, %v5064_v41  ;;  %v1945_v11 = vsel %vm1905_vm9, %v1936_v8, 0.0  ;;  %v2274_v37 = vsel %vm2266_vm10, %v1936_v8, 0.0  ;;  %v2025_v46 = vsel %vm1985_vm11, %v2016_v63, 0.0 }
 0x38d   : > { %v2298_v5 = vsel %vm2290_vm1, %v2016_v63, 0.0  ;;  %vm2065_vm14 = vcmp.eq.s32.totalorder %v4336_v49, %v5066_v43  ;;  %vm2314_vm15 = vcmp.eq.s32.totalorder %v4346_v40, %v5066_v43  ;;  %vm1978_vm9 = vcmp.eq.s32.totalorder %v4336_v49, %v4619_v32 }
 0x38e   : > { %vm2283_vm10 = vcmp.eq.s32.totalorder %v4346_v40, %v4619_v32 }
 0x391   : > { %v1856_v1 = vpop.permute.xlu0 %1855  ;;  %v1616_v50 = vpop.permute.xlu1 %1615 }
 0x392   : > { %v1625_v57 = vsel %vm1585_vm12, %v1616_v50, 0.0  ;;  %v2178_v39 = vsel %vm2170_vm13, %v1616_v50, 0.0  ;;  %v1865_v28 = vsel %vm1825_vm7, %v1856_v1, 0.0  ;;  %v2250_v23 = vsel %vm2242_vm8, %v1856_v1, 0.0  ;;  %v5067_v1 = vld [vmem:[#allocation47_spill] sm:$0xff] }
 0x393   : > { %v1633_v45 = vadd.f32 %v1625_v57, %v1545_v6  ;;  %v2186_v55 = vadd.f32 %v2178_v39, %v2154_v35  ;;  %vm1898_vm12 = vcmp.eq.s32.totalorder %v4336_v49, %v5065_v22  ;;  %vm2259_vm13 = vcmp.eq.s32.totalorder %v4346_v40, %v5065_v22  ;;  %v2039_v39 = vpop.permute.xlu2 %2038 }
 0x394   : > { %vm2062_vm0 = vcmp.eq.s32.totalorder %v4336_v49, %v5067_v1  ;;  %vm2311_vm2 = vcmp.eq.s32.totalorder %v4346_v40, %v5067_v1  ;;  %vm2059_vm7 = vcmp.eq.s32.totalorder %v4336_v49, %v2039_v39  ;;  %vm2308_vm8 = vcmp.eq.s32.totalorder %v4346_v40, %v2039_v39 }
 0x395   : > { %v1713_v34 = vadd.f32 %v1705_v15, %v1633_v45  ;;  %v2210_v54 = vadd.f32 %v2202_v51, %v2186_v55 }
 0x397   : > { %v1793_v56 = vadd.f32 %v1785_v33, %v1713_v34  ;;  %v2234_v29 = vadd.f32 %v2226_v12, %v2210_v54  ;;  %v708_v34 = vpop.f32.mrf.mxu1 }
 0x399   : > { %v1873_v13 = vadd.f32 %v1865_v28, %v1793_v56  ;;  %v2258_v20 = vadd.f32 %v2250_v23, %v2234_v29  ;;  %v2355_v56 = vld [vmem:[%s4880_s14] sm:$0xff]  ;;  %v2354_v23 = vld [vmem:[%s4879_s13 + $0x8] sm:$0xff] }
 0x39a   : > { %v2096_v38 = vpop.permute.xlu0 %2095  ;;  %v1908_v48 = vpop.permute.xlu1 %1907  ;;  %2359 = vperm.xlu1 %3060, %v2355_v56  }
 0x39b   : > { %v1938_v16 = vsel %vm1898_vm12, %v1908_v48, 0.0  ;;  %v2267_v19 = vsel %vm2259_vm13, %v1908_v48, 0.0  ;;  %v1953_v0 = vadd.f32 %v1945_v11, %v1873_v13  ;;  %v2282_v2 = vadd.f32 %v2274_v37, %v2258_v20 }
 0x39c   : > { %v1946_v26 = vadd.f32 %v1938_v16, %v1866_v24  ;;  %v2275_v52 = vadd.f32 %v2267_v19, %v2251_v3  ;;  %v2105_v18 = vsel %vm2065_vm14, %v2096_v38, 0.0  ;;  %v2322_v47 = vsel %vm2314_vm15, %v2096_v38, 0.0 }
 0x39d   : > { %v2033_v21 = vadd.f32 %v2025_v46, %v1953_v0  ;;  %v2306_v61 = vadd.f32 %v2298_v5, %v2282_v2  ;;  %vm2114_vm12 = vcmask 523264   ;;  %v2423_v2 = vld [vmem:[%s4881_s15] sm:$0xff] }
 0x39f   : > { %v2113_v44 = vadd.f32 %v2105_v18, %v2033_v21  ;;  %v2330_v8 = vadd.f32 %v2322_v47, %v2306_v61 }
 0x3a1   : > { %2126 = vmatpush.msrb.mxu0 %v2113_v44  ;;  %2339 = vmatpush.msrb.mxu1 %v2330_v8 }
 0x3a2   : > { %v2084_v24 = vpop.permute.xlu0 %2083 }
 0x3a3   : > { %v2102_v3 = vsel %vm2062_vm0, %v2084_v24, 0.0  ;;  %v2319_v50 = vsel %vm2311_vm2, %v2084_v24, 0.0  ;;  %v2076_v6 = vpop.permute.xlu1 %2075  ;;  %2127 = vmatpush.msrb.mxu0 %v4705_v17  ;;  %2340 = vmatpush.msrb.mxu1 %v4707_v62 }
 0x3a4   : > { %v2110_v35 = vadd.f32 %v2102_v3, %v4672_v30  ;;  %v2327_v57 = vadd.f32 %v2319_v50, %v4675_v53  ;;  %v2100_v45 = vsel %vm2060_vm3, %v2076_v6, 0.0  ;;  %v2317_v55 = vsel %vm2309_vm4, %v2076_v6, 0.0 }
 0x3a5   : > { %2128 = vmatpush.msrb.mxu0 %v4653_v7  ;;  %2341 = vmatpush.msrb.mxu1 %v4655_v42  ;;  %v2108_v53 = vadd.f32 %v2100_v45, %v4476_v31  ;;  %v2325_v17 = vadd.f32 %v2317_v55, %v4478_v4  ;;  %v2036_v4 = vpop.permute.xlu2 %2035 }
 0x3a6   : > { %vm2058_vm11 = vcmp.eq.s32.totalorder %v4336_v49, %v2036_v4  ;;  %vm2307_vm1 = vcmp.eq.s32.totalorder %v4346_v40, %v2036_v4  ;;  %v2356_v49 = vld [vmem:[%s4880_s14 + $0x8] sm:$0xff]  ;;  %v2353_v40 = vld [vmem:[%s4879_s13] sm:$0xff] }
 0x3a7   : > { %2129 = vmatpush.msrb.mxu0 %v2110_v35  ;;  %2342 = vmatpush.msrb.mxu1 %v2327_v57 }
 0x3a8   : > { %2364 = vperm.xlu2 %3059, %v2356_v49  }
 0x3a9   : > { %2130 = vmatpush.msrb.mxu0 %v4576_v36  ;;  %2343 = vmatpush.msrb.mxu1 %v4579_v60 }
 0x3aa   : > { %v2072_v30 = vpop.permute.xlu0 %2071 }
 0x3ab   : > { %v2099_v7 = vsel %vm2059_vm7, %v2072_v30, 0.0  ;;  %v2316_v42 = vsel %vm2308_vm8, %v2072_v30, 0.0  ;;  %2131 = vmatpush.msrb.mxu0 %v2108_v53  ;;  %2344 = vmatpush.msrb.mxu1 %v2325_v17 }
 0x3ac   : > { %v1988_v62 = vpop.permute.xlu1 %1987  ;;  %v2107_v15 = vadd.f32 %v2099_v7, %v4691_v59  ;;  %v2324_v36 = vadd.f32 %v2316_v42, %v4693_v9  ;;  %v5069_v9 = vld [vmem:[#allocation20_spill] sm:$0xff] }
 0x3ad   : > { %v2018_v60 = vsel %vm1978_vm9, %v1988_v62, 0.0  ;;  %v2291_v51 = vsel %vm2283_vm10, %v1988_v62, 0.0  ;;  %v709_v58 = vadd.f32 %v708_v34, %v5069_v9 }
 0x3ae   : > { %v2026_v31 = vadd.f32 %v2018_v60, %v1946_v26  ;;  %v2299_v25 = vadd.f32 %v2291_v51, %v2275_v52  ;;  %2132 = vmatpush.msrb.mxu0 %v2107_v15  ;;  %2345 = vmatpush.msrb.mxu1 %v2324_v36 }
 0x3b5   : > { %v2068_v32 = vpop.permute.xlu1 %2067 }
 0x3b6   : > { %v2098_v54 = vsel %vm2058_vm11, %v2068_v32, 0.0  ;;  %v2315_v33 = vsel %vm2307_vm1, %v2068_v32, 0.0 }
 0x3b7   : > { %v2106_v12 = vadd.f32 %v2098_v54, %v2026_v31  ;;  %v2323_v59 = vadd.f32 %v2315_v33, %v2299_v25 }
 0x3b9   : > { %2133 = vmatpush.msrb.mxu0 %v2106_v12  ;;  %2346 = vmatpush.msrb.mxu1 %v2323_v59 }
 0x3ba   : > { %2748 = vmatmul.msk.f32.vlgmr.msrb.gmra.mxu0 %vm2114_vm12, %v709_v58  ;;  %2749 = vmatmul.msk.f32.vlgmr.msrb.gmra.mxu1 %vm2114_vm12, %v709_v58 }
 0x402   : > { %v2365_v41 = vpop.permute.xlu2 %2364 }
 0x40c   : > { %v2360_v20 = vpop.permute.xlu1 %2359 }
 0x437   : > { %v2135_v29 = vpop.f32.mrf.mxu0  ;;  %v2348_v28 = vpop.f32.mrf.mxu1 }
 0x438   : > { %2351 = vst [vmem:[%s4791_s20] sm:$0xff] %v2135_v29  ;;  %2388 = vmatpush.msra.mxu0 %v2135_v29  ;;  %2411 = vmatpush.msra.mxu1 %v2348_v28 }
 0x439   : > { %2352 = vst [vmem:[%s4791_s20 + $0x8] sm:$0xff] %v2348_v28  ;;  %2750 = vmatmul.msk.f32.vlgmr.msra.gmra.mxu0 %vm871_vm6, %v2353_v40  ;;  %2752 = vmatmul.msk.f32.vlgmr.msra.gmra.mxu1 %vm871_vm6, %v2353_v40 }
 0x441   : > { %2751 = vmatmul.msk.f32.gmra.mxu0 %vm871_vm6, %v2354_v23  ;;  %2753 = vmatmul.msk.f32.gmra.mxu1 %vm871_vm6, %v2354_v23 }
 0x4b6   : > { %v2390_v63 = vpop.f32.mrf.mxu0  ;;  %v2413_v13 = vpop.f32.mrf.mxu1 }
 0x4b7   : > { %v2391_v48 = vadd.f32 %v2390_v63, %v2360_v20  ;;  %v2414_v11 = vadd.f32 %v2413_v13, %v2360_v20 }
 0x4b9   : > { %v2419_v52 = vmax.f32 %v2391_v48, 0.0  ;;  %v2420_v0 = vmax.f32 %v2414_v11, 0.0 }
 0x4be   : > { %v2393_v22 = vpop.f32.mrf.mxu0  ;;  %v2416_v38 = vpop.f32.mrf.mxu1 }
 0x4bf   : > { %v2394_v37 = vadd.f32 %v2393_v22, %v2365_v41  ;;  %v2417_v16 = vadd.f32 %v2416_v38, %v2365_v41 }
 0x4c1   : > { %v2421_v19 = vmax.f32 %v2394_v37, 0.0  ;;  %v2422_v26 = vmax.f32 %v2417_v16, 0.0 }
 0x4c3   : > { %2447 = vmatpush.msrb.mxu0 %v2421_v19  ;;  %2467 = vmatpush.msrb.mxu1 %v2422_v26 }
 0x4c5   : > { %2448 = vmatpush.msrb.mxu0 %v2419_v52  ;;  %2468 = vmatpush.msrb.mxu1 %v2420_v0 }
 0x4c6   : > { %2754 = vmatmul.msk.f32.vlgmr.msrb.gmra.mxu0 %vm687_vm5, %v2423_v2  ;;  %2755 = vmatmul.msk.f32.vlgmr.msrb.gmra.mxu1 %vm687_vm5, %v2423_v2 }
 0x4c7   : > { %3161 = shalt.err (!%p3158_p8)
}
 0x4c8   : > { %2895 = dma.vmem_to_hbm [thread:$0]  (%p3381_p5), %s2538_s27, 256, %s2540_s17, %s2519_s5   ;;  %v2428_v46 = vpop.permute.xlu0 %2427  ;;  %v2474_v45 = vshrl.u32 %v1464_v10, 7 }
 0x4c9   : > { %s5071_s23 = sld [smem:[#allocation64_spill]]  ;;  %s619_s3 = scalar_lea.vmem [#allocation8], %s2689_s30 }
 0x4ca   : > { %vm2513_vm15 = vcmp.eq.s32.totalorder %v2474_v45, 2  ;;  %s2552_s27 = sshll.u32 %s619_s3, 4  ;;  %s2524_s0 = scalar_lea.sflag [#allocation9], %s4783_s26  ;;  %s2553_s27 = int_to_ptr.vmem [resolvable:$true] %s2552_s27 }
 0x4cf   : > { %s2550_s18 = scalar_lea.hbm %s5071_s23, %s2765_s1  ;;  %s3182_s6 = scalar_lea.hbm %s5071_s23, 32 }
 0x4d0   : > { %s2554_s17 = sshll.u32 %s2550_s18, 4  ;;  %s2555_s17 = int_to_ptr.hbm [resolvable:$true] %s2554_s17 }
 0x4d1   : > { %s3176_s30 = sshra.s32 %s2555_s17, 4  ;;  %s3177_s30 = int_to_ptr.hbm [resolvable:$true] %s3176_s30 }
 0x4d2   : > { %s3178_s1 = scalar_lea.hbm %s3177_s30, 16  ;;  %p3183_p12 = scmp.lt.s32.totalorder %s3177_s30, %s5071_s23 }
 0x4d3   : > { %p3179_p9 = scmp.ne.s32.totalorder %s3177_s30, %s3178_s1  ;;  %p3184_p13 = scmp.lt.s32.totalorder %s3182_s6, %s3178_s1 }
 0x4d5   : > { %p3180_p10 = pnand %p3179_p9, %p3381_p5  ;;  %p3185_p0 = por %p3184_p13, %p3183_p12 }
 0x4d7   : > { %p3181_p11 = pneg %p3180_p10 }
 0x4d9   : > { %p3186_p1 = pnand %p3185_p0, %p3181_p11 }
 0x543   : > { %v2450_v5 = vpop.f32.mrf.mxu0  ;;  %v2470_v43 = vpop.f32.mrf.mxu1 }
 0x544   : > { %v2451_v21 = vadd.f32 %v2450_v5, %v2428_v46  ;;  %v2471_v61 = vadd.f32 %v2470_v43, %v2428_v46 }
 0x546   : > { %v2475_v18 = vsub.f32 0.0, %v2451_v21  ;;  %v2476_v47 = vsub.f32 0.0, %v2471_v61 }
 0x548   : > { %v2477_v44 = vmul.f32 1.442695, %v2475_v18  ;;  %v2479_v8 = vmul.f32 1.442695, %v2476_v47 }
 0x54a   : > { %3096 = vpow2.f32 %v2477_v44 }
 0x54b   : > { %3098 = vpow2.f32 %v2479_v8 }
 0x550   : > { %v3097_v1 = vpop.eup %3096 }
 0x551   : > { %v3099_v24 = vpop.eup %3098  ;;  %v2481_v3 = vadd.f32 1.0, %v3097_v1 }
 0x552   : > { %v2482_v50 = vadd.f32 1.0, %v3099_v24 }
 0x553   : > { %3100 = vrcp.f32 %v2481_v3  ;;  %v2494_v55 = vand.u32 2147483648, %v2481_v3  ;;  %v2492_v17 = vand.u32 2147483647, %v2481_v3  ;;  %vm2488_vm13 = vweird.f32 %v2481_v3 }
 0x554   : > { %3102 = vrcp.f32 %v2482_v50  ;;  %v2509_v7 = vand.u32 2147483648, %v2482_v50  ;;  %v2507_v62 = vand.u32 2147483647, %v2482_v50  ;;  %vm2503_vm0 = vweird.f32 %v2482_v50 }
 0x555   : > { %v2495_v36 = vor.u32 1.1754944e-38, %v2494_v55  ;;  %vm2493_vm2 = vcmp.eq.f32.partialorder %v2492_v17, 8.507059e+37 }
 0x556   : > { %v2510_v51 = vor.u32 1.1754944e-38, %v2509_v7  ;;  %vm2508_vm4 = vcmp.eq.f32.partialorder %v2507_v62, 8.507059e+37 }
 0x559   : > { %v3101_v6 = vpop.eup %3100 }
 0x55a   : > { %v3103_v35 = vpop.eup %3102  ;;  %v2484_v57 = vmul.f32 %v3101_v6, %v2481_v3  ;;  %vm2489_vm5 = vweird.f32 %v3101_v6 }
 0x55b   : > { %v2499_v39 = vmul.f32 %v3103_v35, %v2482_v50  ;;  %vm2504_vm6 = vweird.f32 %v3103_v35  ;;  %vm2490_vm14 = vmor %vm2488_vm13, %vm2489_vm5 }
 0x55c   : > { %v2485_v14 = vsub.f32 1.0, %v2484_v57  ;;  %vm2505_vm3 = vmor %vm2503_vm0, %vm2504_vm6 }
 0x55d   : > { %v2500_v30 = vsub.f32 1.0, %v2499_v39 }
 0x55e   : > { %v2486_v53 = vmul.f32 %v3101_v6, %v2485_v14 }
 0x55f   : > { %v2501_v42 = vmul.f32 %v3103_v35, %v2500_v30 }
 0x560   : > { %v2487_v15 = vadd.f32 %v3101_v6, %v2486_v53 }
 0x561   : > { %v2502_v10 = vadd.f32 %v3103_v35, %v2501_v42 }
 0x562   : > { %v2491_v60 = vsel %vm2490_vm14, %v3101_v6, %v2487_v15 }
 0x563   : > { %v2496_v31 = vsel %vm2493_vm2, %v2495_v36, %v2491_v60  ;;  %v2506_v25 = vsel %vm2505_vm3, %v3103_v35, %v2502_v10 }
 0x564   : > { %v2514_v4 = vsel %vm2513_vm15, %v2496_v31, %v2451_v21  ;;  %v2511_v34 = vsel %vm2508_vm4, %v2510_v51, %v2506_v25 }
 0x565   : > { %2516 = vst [vmem:[%s619_s3] sm:$0xff] %v2514_v4  ;;  %v2515_v32 = vsel %vm2513_vm15, %v2511_v34, %v2471_v61 }
 0x566   : > { %2517 = vst [vmem:[%s619_s3 + $0x8] sm:$0xff] %v2515_v32 }
 0x567   : > { %3189 = shalt.err (!%p3186_p1)
}
 0x568   : > { %2896 = dma.vmem_to_hbm [thread:$0]  (%p3381_p5), %s2553_s27, 256, %s2555_s17, %s2524_s0  }
 0x569 PF: > { %s5072_s26 = sld [smem:[#allocation16_spill]] }
 0x56a   : > { %s5073_s4 = sld [smem:[#allocation14_spill]] }
 0x56f   : > { %p2917_p2 = scmp.ge.s32.totalorder %s5072_s26, 2 }
 0x570   : > { %s2566_s19 = sand.u32 1, %s5073_s4  }
 0x571   : > { %p2907_p3 = pnand %p2917_p2, %p3385_p6  ;;  %s2567_s20 = scalar_lea.sflag [#allocation3], %s2566_s19 }
 0x573   : > { %p2908_p4 = pneg %p2907_p3 }
 0x575   : > { %3215 = dma.done.wait (%p2908_p4), %s2567_s20, 256  }
 0x576   : > { %3217 = vsyncadd (%p2908_p4), %s2567_s20, 4294967040  ;;  %s2577_s29 = scalar_lea.sflag [#allocation9], %s2566_s19 }
 0x577   : > { %3219 = dma.done.wait (%p2908_p4), %s2577_s29, 256  }
 0x578   : > { %3221 = vsyncadd (%p2908_p4), %s2577_s29, 4294967040  ;;  %s5075_s30 = sld [smem:[#allocation17_spill]]  ;;  %s5078_s27 = smov %s3228_s28 }
 0x579   : > { %s5076_s18 = sld [smem:[#allocation15_spill]] }
 0x57a   : > { %s5077_s29 = sld [smem:[#allocation18_spill]] }
 0x57e   : > { %p34_p5 = scmp.ge.s32.totalorder %s5075_s30, 4  }
 0x57f   : > { %s5079_s28 = smov %s5076_s18 }
 0x580   :  { %36 = sbr.rel (!%p34_p5) target bundleno = 19 (0x13), region = 154 }
 0x585   :  { %2583 = vsyncpa [#allocation3], 1 }
 0x586   :  { %2585 = vsyncpa [#allocation3 + $0x1], 1 }
 0x587   :  { %2586 = vsyncpa [#allocation9], 1 }
 0x588   :  { %2588 = vsyncpa [#allocation9 + $0x1], 1 }
 0x589   :  { %2589 = vsyncpa [#allocation4], 1 }
 0x58a   :  { %2591 = vsyncpa [#allocation4 + $0x1], 1 }
 0x58b   :  { %2592 = vsyncpa [#allocation6], 1 }

</bundles_post_ra>
